<compile_context>
chip_gen: v5e
topology: v5e:2x2
jax: 0.10.0
libtpu: 0.0.40
codegen_flags: <defaults>
</compile_context>

<pallas_src>
import jax
import jax.numpy as jnp
from jax.experimental import pallas as pl
from jax.experimental.pallas import tpu as pltpu

# ---------------- problem configuration (small, self-consistent) -------------
N = 32                                  # batch (multiple of 8 for clean sublanes)
CIN = 4                                 # input channels (scaled down)
C4 = 8                                  # conv2d_4 output channels (scaled)
H = W = 2                               # spatial size (makes conv2d_6 output 1x1)
K, STRIDE, PAD = 7, 2, 3                # conv2d_6 geometry
HO = (H + 2 * PAD - K) // STRIDE + 1    # = 1
WO = (W + 2 * PAD - K) // STRIDE + 1    # = 1
assert HO == 1 and WO == 1, "v66 = v63*v13 broadcast requires 1x1 conv2d_6 output"

HW = H * W                              # spatial positions per sample (4)
KKC = K * K * CIN                       # 196 = im2col patch length
D1 = 128                                # padded [x_flat | 1] width  (lane-dense K)
DC = 256                                # padded [im2col | 1] width  (lane-dense K)
COUT = 128                              # padded output-channel block (lane-dense N)


# ------------------------------ Pallas kernel --------------------------------
def _fused_v68_kernel(x_ref, xc_ref, wa_ref, wc_ref, out_ref):
    """Whole problem in one block (grid=(1,)).

    x_ref  : (rows, D1)   rows are SPATIAL-MAJOR (row = p*n + s); cols=[x|1|0pad]
    xc_ref : (n, DC)      one im2col row per sample; cols=[patch|1|0pad]
    wa_ref : (D1, 2*COUT) column-stacked fused weights [ W58 | W63 ], bias folded
    wc_ref : (DC, COUT)   fused weights for v13, bias folded
    out_ref: (rows, COUT) v68 rows (first C4 lanes valid, rest = pow(0,0)=1)
    """
    # One column-stacked MXU push for both per-position results.
    v = jnp.dot(x_ref[...], wa_ref[...], preferred_element_type=jnp.float32)
    v58 = v[:, :COUT]                     # vreg-aligned lane split
    v63 = v[:, COUT:]
    # v13 once per sample (7x7 stride-2 conv has a single 1x1 output position),
    # then broadcast across the HW spatial rows: spatial-major ordering makes
    # this a sublane-aligned concatenate (no row replication in HBM).
    v13s = jnp.dot(xc_ref[...], wc_ref[...], preferred_element_type=jnp.float32)
    v13 = jnp.concatenate([v13s] * HW, axis=0)
    # v66 = v63 * v13 ; v68 = v66 ** v58 (NaN for negative bases == torch.pow)
    out_ref[...] = jnp.power(v63 * v13, v58)


# ------------------------------ wrapper glue ----------------------------------
def _pack_inputs(x1):
    """Build the two lane-dense data slabs (no im2col row replication)."""
    n = x1.shape[0]
    # spatial-major row ordering: row = (h*W + w)*n + s
    x_sm = jnp.transpose(x1, (2, 3, 0, 1)).reshape(HW * n, CIN)     # (HW*n, CIN)
    X = jnp.zeros((HW * n, D1), jnp.float32)
    X = X.at[:, :CIN].set(x_sm).at[:, CIN].set(1.0)                 # bias column

    # im2col for the single (HO=WO=1) output position of the 7x7 stride-2 conv
    x_pad = jnp.pad(x1, ((0, 0), (0, 0), (PAD, PAD), (PAD, PAD)))   # (n,CIN,H+6,W+6)
    patch = x_pad[:, :, :K, :K]                                     # (n,CIN,K,K)
    x_col = jnp.transpose(patch, (0, 2, 3, 1)).reshape(n, KKC)      # (kh,kw,c) flat
    Xc = jnp.zeros((n, DC), jnp.float32)
    Xc = Xc.at[:, :KKC].set(x_col).at[:, KKC].set(1.0)              # bias column
    return X, Xc


def _pack_weights(params):
    """Algebraically fuse the conv chains; pack lane-dense, column-stacked."""
    w4_t, b4, wt_t, bt, w6_t, b6 = params
    W4 = w4_t[:, :, 0, 0].T                                         # (CIN, C4)
    Wt = wt_t[:, :, 0, 0]                                           # (C4, CIN) ConvT (in,out,kh,kw)
    W6 = jnp.transpose(w6_t, (2, 3, 1, 0)).reshape(KKC, CIN)        # (KKC, CIN)

    # v63 = ((x@W4+b4)@Wt+bt)@W4+b4 = x@(W4@Wt@W4) + b63
    W63 = W4 @ Wt @ W4                                              # (CIN, C4)
    b63 = (b4 @ Wt + bt) @ W4 + b4                                  # (C4,)
    # v13 = (x_col@W6+b6)@W4+b4 = x_col@(W6@W4) + b13
    W13 = W6 @ W4                                                   # (KKC, C4)
    b13 = b6 @ W4 + b4                                              # (C4,)

    Wa = jnp.zeros((D1, 2 * COUT), jnp.float32)
    Wa = Wa.at[:CIN, :C4].set(W4).at[CIN, :C4].set(b4)              # block for v58
    Wa = Wa.at[:CIN, COUT:COUT + C4].set(W63)                       # block for v63
    Wa = Wa.at[CIN, COUT:COUT + C4].set(b63)
    Wc = jnp.zeros((DC, COUT), jnp.float32)
    Wc = Wc.at[:KKC, :C4].set(W13).at[KKC, :C4].set(b13)            # block for v13
    return Wa, Wc


def model_forward(x1, params):
    """x1: (n, CIN, H, W) float32 NCHW.  Returns v68: (n, C4, H, W) NCHW."""
    n = x1.shape[0]
    assert x1.shape == (n, CIN, H, W)
    assert n % 8 == 0
    rows = HW * n

    X, Xc = _pack_inputs(x1)             # (rows, D1), (n, DC)
    Wa, Wc = _pack_weights(params)       # (D1, 2*COUT), (DC, COUT) — params only

    flops = 2 * rows * D1 * (2 * COUT) + 2 * n * DC * COUT + 2 * rows * COUT
    bytes_accessed = 4 * (rows * D1 + n * DC + D1 * 2 * COUT + DC * COUT + rows * COUT)

    out_pad = pl.pallas_call(
        _fused_v68_kernel,
        out_shape=jax.ShapeDtypeStruct((rows, COUT), jnp.float32),
        grid=(1,),                                                   # whole problem = one tile
        in_specs=[
            pl.BlockSpec((rows, D1), lambda i: (0, 0)),
            pl.BlockSpec((n, DC), lambda i: (0, 0)),
            pl.BlockSpec((D1, 2 * COUT), lambda i: (0, 0)),
            pl.BlockSpec((DC, COUT), lambda i: (0, 0)),
        ],
        out_specs=pl.BlockSpec((rows, COUT), lambda i: (0, 0)),
        compiler_params=pltpu.CompilerParams(
            dimension_semantics=("arbitrary",)),                     # 1 step: no megacore split
        cost_estimate=pl.CostEstimate(
            flops=flops, transcendentals=2 * rows * COUT,
            bytes_accessed=bytes_accessed),
    )(X, Xc, Wa, Wc)

    out = out_pad[:, :C4]                 # drop padded lanes (they hold pow(0,0)=1)
    # spatial-major rows -> NCHW, matching the PyTorch output shape of v68
    return jnp.transpose(out.reshape(H, W, n, C4), (2, 3, 0, 1))


# -------------------------- pure-JAX reference --------------------------------
def _conv_nchw(x, w, b, stride=1, padding=0):
    out = jax.lax.conv_general_dilated(
        x, w, (stride, stride), ((padding, padding), (padding, padding)),
        dimension_numbers=("NCHW", "OIHW", "NCHW"))
    return out + b[None, :, None, None]


def reference_forward(x1, params):
    w4_t, b4, wt_t, bt, w6_t, b6 = params
    v58 = _conv_nchw(x1, w4_t, b4)
    v61 = _conv_nchw(v58, jnp.transpose(wt_t, (1, 0, 2, 3)), bt)    # 1x1 conv-transpose
    v63 = _conv_nchw(v61, w4_t, b4)
    v11 = _conv_nchw(x1, w6_t, b6, stride=STRIDE, padding=PAD)
    v13 = _conv_nchw(v11, w4_t, b4)
    v66 = v63 * v13
    return jnp.power(v66, v58)


# ------------------------------ main -------------------------------------------
if __name__ == "__main__":
    key = jax.random.PRNGKey(0)
    ks = jax.random.split(key, 7)

    x1 = jax.random.normal(ks[0], (N, CIN, H, W), jnp.float32)

    # deterministic synthetic parameters (shapes follow the nn.Module layout)
    w4_t = jax.random.normal(ks[1], (C4, CIN, 1, 1), jnp.float32) * 0.1   # Conv2d(CIN, C4, 1)
    b4   = jax.random.normal(ks[2], (C4,), jnp.float32) * 0.02
    wt_t = jax.random.normal(ks[3], (C4, CIN, 1, 1), jnp.float32) * 0.2   # ConvTranspose2d(C4, CIN, 1)
    bt   = jax.random.normal(ks[4], (CIN,), jnp.float32) * 0.05
    w6_t = jax.random.normal(ks[5], (CIN, CIN, K, K), jnp.float32) * 0.05 # Conv2d(CIN, CIN, 7, s=2, p=3)
    b6   = jax.random.normal(ks[6], (CIN,), jnp.float32) * 0.05
    params = (w4_t, b4, wt_t, bt, w6_t, b6)

    fwd = jax.jit(model_forward)
    out = jax.block_until_ready(fwd(x1, params))

    ref = reference_forward(x1, params)
    assert out.shape == ref.shape == (N, C4, H, W), (out.shape, ref.shape)

    # torch.pow gives NaN for negative bases with float exponents on both paths.
    # The algebraic weight fusion reorders fp rounding before the pow, so a
    # near-zero base could in principle flip sign between the two paths; allow a
    # tiny fraction of such mismatches instead of hard-failing the whole run.
    both_nan = jnp.isnan(out) & jnp.isnan(ref)
    close = jnp.isclose(out, ref, rtol=5e-2, atol=1e-3)
    frac_ok = float(jnp.mean((both_nan | close).astype(jnp.float32)))
    if frac_ok < 0.99:
        raise AssertionError(
            f"Pallas output does not match JAX reference (ok fraction={frac_ok:.4f})")

    print("KERNEL_OK")
</pallas_src>

<mosaic_0001>
module attributes {stable_mosaic.version = 11 : i64} {
  func.func @_fused_v68_kernel(%arg0: i32, %arg1: memref<128x128xf32, #tpu.memory_space<vmem>>, %arg2: memref<32x256xf32, #tpu.memory_space<vmem>>, %arg3: memref<128x256xf32, #tpu.memory_space<vmem>>, %arg4: memref<256x128xf32, #tpu.memory_space<vmem>>, %arg5: memref<128x128xf32, #tpu.memory_space<vmem>>) attributes {dimension_semantics = [#tpu.dimension_semantics<arbitrary>], iteration_bounds = array<i64: 1>, scalar_prefetch = 0 : i64, scratch_operands = 0 : i64, tpu.core_type = #tpu.core_type<tc>, window_params = [{pipeline_mode = #tpu.pipeline_mode<synchronous>, transform_indices = @transform_0, window_bounds = array<i64: 128, 128>}, {pipeline_mode = #tpu.pipeline_mode<synchronous>, transform_indices = @transform_1, window_bounds = array<i64: 32, 256>}, {pipeline_mode = #tpu.pipeline_mode<synchronous>, transform_indices = @transform_2, window_bounds = array<i64: 128, 256>}, {pipeline_mode = #tpu.pipeline_mode<synchronous>, transform_indices = @transform_3, window_bounds = array<i64: 256, 128>}, {pipeline_mode = #tpu.pipeline_mode<synchronous>, transform_indices = @transform_4, window_bounds = array<i64: 128, 128>}]} {
    %c0 = arith.constant 0 : index
    %c0_0 = arith.constant 0 : index
    %0 = vector.load %arg1[%c0, %c0_0] : memref<128x128xf32, #tpu.memory_space<vmem>>, vector<128x128xf32>
    %c0_1 = arith.constant 0 : index
    %c0_2 = arith.constant 0 : index
    %1 = vector.load %arg3[%c0_1, %c0_2] : memref<128x256xf32, #tpu.memory_space<vmem>>, vector<128x256xf32>
    %cst = arith.constant dense<0.000000e+00> : vector<128x256xf32>
    %2 = tpu.matmul %0, %1, %cst {dimension_numbers = #tpu.dot_dimension_numbers<[1], [0], [0], [1], [0, 0, 1, 1], [], []>} : vector<128x128xf32>, vector<128x256xf32>, vector<128x256xf32> -> vector<128x256xf32>
    %3 = vector.extract_strided_slice %2 {offsets = [0, 0], sizes = [128, 128], strides = [1, 1]} : vector<128x256xf32> to vector<128x128xf32>
    %4 = vector.extract_strided_slice %2 {offsets = [0, 128], sizes = [128, 128], strides = [1, 1]} : vector<128x256xf32> to vector<128x128xf32>
    %c0_3 = arith.constant 0 : index
    %c0_4 = arith.constant 0 : index
    %5 = vector.load %arg2[%c0_3, %c0_4] : memref<32x256xf32, #tpu.memory_space<vmem>>, vector<32x256xf32>
    %c0_5 = arith.constant 0 : index
    %c0_6 = arith.constant 0 : index
    %6 = vector.load %arg4[%c0_5, %c0_6] : memref<256x128xf32, #tpu.memory_space<vmem>>, vector<256x128xf32>
    %cst_7 = arith.constant dense<0.000000e+00> : vector<32x128xf32>
    %7 = tpu.matmul %5, %6, %cst_7 {dimension_numbers = #tpu.dot_dimension_numbers<[1], [0], [0], [1], [0, 0, 1, 1], [], []>} : vector<32x256xf32>, vector<256x128xf32>, vector<32x128xf32> -> vector<32x128xf32>
    %8 = tpu.concatenate %7, %7, %7, %7 in 0 : vector<32x128xf32>, vector<32x128xf32>, vector<32x128xf32>, vector<32x128xf32> -> vector<128x128xf32>
    %9 = arith.mulf %4, %8 : vector<128x128xf32>
    %10 = math.powf %9, %3 : vector<128x128xf32>
    %c0_8 = arith.constant 0 : index
    %c0_9 = arith.constant 0 : index
    %11 = vector.load %arg5[%c0_8, %c0_9] : memref<128x128xf32, #tpu.memory_space<vmem>>, vector<128x128xf32>
    tpu.vector_store %arg5[%c0_8, %c0_9], %10 {strides = array<i32>} : memref<128x128xf32, #tpu.memory_space<vmem>>, vector<128x128xf32>,
    return
  }
  func.func @transform_0(%arg0: i32) -> (i32, i32) {
    %c0_i32 = arith.constant 0 : i32
    %c0_i32_0 = arith.constant 0 : i32
    %c0_i32_1 = arith.constant 0 : i32
    return %c0_i32, %c0_i32_0 : i32, i32
  }
  func.func @transform_1(%arg0: i32) -> (i32, i32) {
    %c0_i32 = arith.constant 0 : i32
    %c0_i32_0 = arith.constant 0 : i32
    %c0_i32_1 = arith.constant 0 : i32
    return %c0_i32, %c0_i32_0 : i32, i32
  }
  func.func @transform_2(%arg0: i32) -> (i32, i32) {
    %c0_i32 = arith.constant 0 : i32
    %c0_i32_0 = arith.constant 0 : i32
    %c0_i32_1 = arith.constant 0 : i32
    return %c0_i32, %c0_i32_0 : i32, i32
  }
  func.func @transform_3(%arg0: i32) -> (i32, i32) {
    %c0_i32 = arith.constant 0 : i32
    %c0_i32_0 = arith.constant 0 : i32
    %c0_i32_1 = arith.constant 0 : i32
    return %c0_i32, %c0_i32_0 : i32, i32
  }
  func.func @transform_4(%arg0: i32) -> (i32, i32) {
    %c0_i32 = arith.constant 0 : i32
    %c0_i32_0 = arith.constant 0 : i32
    %c0_i32_1 = arith.constant 0 : i32
    return %c0_i32, %c0_i32_0 : i32, i32
  }
}

</mosaic_0001>

<bundles_post_ra>
// kernel: model_forward.1
= control target key start
LH: loop header
LB: loop body
LE: loop exit
PB: predicated region body
PF: predicated region fallthrough
CT: control target
= control target key end

     0   :  { %s4959_s2 = inlined_call_operand.vmem [shape: f32[128,256], index: 2, kind: input, shape index: {}]   ;;  %s4960_s0 = inlined_call_operand.vmem [shape: f32[128,128], index: 0, kind: input, shape index: {}]   ;;  %s4961_s3 = inlined_call_operand.vmem [shape: f32[256,128], index: 3, kind: input, shape index: {}]   ;;  %s4962_s1 = inlined_call_operand.vmem [shape: f32[32,256], index: 1, kind: input, shape index: {}]   ;;  %s4963_s4 = inlined_call_operand.vmem [shape: f32[128,128], index: 4, kind: output, shape index: {}]  }
   0x1   :  { %v63_v0 = vld [vmem:[%s4959_s2 + $0xf0] sm:$0xff]  ;;  %v64_v1 = vld [vmem:[%s4959_s2 + $0xf8] sm:$0xff]  ;;  %v61_v2 = vld [vmem:[%s4959_s2 + $0xe0] sm:$0xff] }
   0x2   :  { %65 = vmatpush.msra.mxu0 %v63_v0  ;;  %345 = vmatpush.msra.mxu2 %v63_v0  ;;  %v62_v3 = vld [vmem:[%s4959_s2 + $0xe8] sm:$0xff]  ;;  %v59_v4 = vld [vmem:[%s4959_s2 + $0xd0] sm:$0xff]  ;;  %v60_v5 = vld [vmem:[%s4959_s2 + $0xd8] sm:$0xff] }
   0x3   :  { %130 = vmatpush.msra.mxu1 %v64_v1  ;;  %361 = vmatpush.msra.mxu3 %v64_v1  ;;  %v57_v6 = vld [vmem:[%s4959_s2 + $0xc0] sm:$0xff]  ;;  %v58_v7 = vld [vmem:[%s4959_s2 + $0xc8] sm:$0xff]  ;;  %v55_v8 = vld [vmem:[%s4959_s2 + $0xb0] sm:$0xff] }
   0x4   :  { %66 = vmatpush.msra.mxu0 %v61_v2  ;;  %346 = vmatpush.msra.mxu2 %v61_v2  ;;  %v56_v9 = vld [vmem:[%s4959_s2 + $0xb8] sm:$0xff]  ;;  %v53_v10 = vld [vmem:[%s4959_s2 + $0xa0] sm:$0xff]  ;;  %v54_v11 = vld [vmem:[%s4959_s2 + $0xa8] sm:$0xff] }
   0x5   :  { %131 = vmatpush.msra.mxu1 %v62_v3  ;;  %362 = vmatpush.msra.mxu3 %v62_v3  ;;  %v51_v12 = vld [vmem:[%s4959_s2 + $0x90] sm:$0xff]  ;;  %v52_v13 = vld [vmem:[%s4959_s2 + $0x98] sm:$0xff]  ;;  %v49_v14 = vld [vmem:[%s4959_s2 + $0x80] sm:$0xff] }
   0x6   :  { %67 = vmatpush.msra.mxu0 %v59_v4  ;;  %347 = vmatpush.msra.mxu2 %v59_v4  ;;  %v50_v15 = vld [vmem:[%s4959_s2 + $0x88] sm:$0xff]  ;;  %v47_v16 = vld [vmem:[%s4959_s2 + $0x70] sm:$0xff]  ;;  %v48_v17 = vld [vmem:[%s4959_s2 + $0x78] sm:$0xff] }
   0x7   :  { %132 = vmatpush.msra.mxu1 %v60_v5  ;;  %363 = vmatpush.msra.mxu3 %v60_v5  ;;  %v45_v18 = vld [vmem:[%s4959_s2 + $0x60] sm:$0xff]  ;;  %v46_v19 = vld [vmem:[%s4959_s2 + $0x68] sm:$0xff]  ;;  %v43_v20 = vld [vmem:[%s4959_s2 + $0x50] sm:$0xff] }
   0x8   :  { %68 = vmatpush.msra.mxu0 %v57_v6  ;;  %348 = vmatpush.msra.mxu2 %v57_v6  ;;  %v44_v21 = vld [vmem:[%s4959_s2 + $0x58] sm:$0xff]  ;;  %v41_v22 = vld [vmem:[%s4959_s2 + $0x40] sm:$0xff]  ;;  %v42_v23 = vld [vmem:[%s4959_s2 + $0x48] sm:$0xff] }
   0x9   :  { %133 = vmatpush.msra.mxu1 %v58_v7  ;;  %364 = vmatpush.msra.mxu3 %v58_v7  ;;  %v39_v24 = vld [vmem:[%s4959_s2 + $0x30] sm:$0xff]  ;;  %v40_v25 = vld [vmem:[%s4959_s2 + $0x38] sm:$0xff]  ;;  %v37_v26 = vld [vmem:[%s4959_s2 + $0x20] sm:$0xff] }
   0xa   :  { %69 = vmatpush.msra.mxu0 %v55_v8  ;;  %349 = vmatpush.msra.mxu2 %v55_v8  ;;  %v38_v27 = vld [vmem:[%s4959_s2 + $0x28] sm:$0xff]  ;;  %v35_v28 = vld [vmem:[%s4959_s2 + $0x10] sm:$0xff]  ;;  %v36_v29 = vld [vmem:[%s4959_s2 + $0x18] sm:$0xff] }
   0xb   :  { %134 = vmatpush.msra.mxu1 %v56_v9  ;;  %365 = vmatpush.msra.mxu3 %v56_v9  ;;  %v33_v30 = vld [vmem:[%s4959_s2] sm:$0xff]  ;;  %v34_v31 = vld [vmem:[%s4959_s2 + $0x8] sm:$0xff]  ;;  %v27_v33 = vld [vmem:[%s4960_s0 + $0x50] sm:$0xff] }
   0xc   :  { %70 = vmatpush.msra.mxu0 %v53_v10  ;;  %350 = vmatpush.msra.mxu2 %v53_v10  ;;  %v17_v32 = vld [vmem:[%s4960_s0] sm:$0xff]  ;;  %v218_v34 = vld [vmem:[%s4961_s3 + $0x78] sm:$0xff]  ;;  %v217_v36 = vld [vmem:[%s4961_s3 + $0x70] sm:$0xff] }
   0xd   :  { %135 = vmatpush.msra.mxu1 %v54_v11  ;;  %366 = vmatpush.msra.mxu3 %v54_v11  ;;  %v234_v35 = vld [vmem:[%s4961_s3 + $0xf8] sm:$0xff]  ;;  %v233_v37 = vld [vmem:[%s4961_s3 + $0xf0] sm:$0xff]  ;;  %v216_v38 = vld [vmem:[%s4961_s3 + $0x68] sm:$0xff] }
   0xe   :  { %71 = vmatpush.msra.mxu0 %v51_v12  ;;  %351 = vmatpush.msra.mxu2 %v51_v12  ;;  %v232_v39 = vld [vmem:[%s4961_s3 + $0xe8] sm:$0xff]  ;;  %v28_v41 = vld [vmem:[%s4960_s0 + $0x58] sm:$0xff]  ;;  %v215_v42 = vld [vmem:[%s4961_s3 + $0x60] sm:$0xff] }
   0xf   :  { %136 = vmatpush.msra.mxu1 %v52_v13  ;;  %367 = vmatpush.msra.mxu3 %v52_v13  ;;  %v18_v40 = vld [vmem:[%s4960_s0 + $0x8] sm:$0xff]  ;;  %v231_v43 = vld [vmem:[%s4961_s3 + $0xe0] sm:$0xff]  ;;  %v214_v44 = vld [vmem:[%s4961_s3 + $0x58] sm:$0xff] }
  0x10   :  { %72 = vmatpush.msra.mxu0 %v49_v14  ;;  %352 = vmatpush.msra.mxu2 %v49_v14  ;;  %v230_v45 = vld [vmem:[%s4961_s3 + $0xd8] sm:$0xff]  ;;  %v213_v46 = vld [vmem:[%s4961_s3 + $0x50] sm:$0xff]  ;;  %v29_v49 = vld [vmem:[%s4960_s0 + $0x60] sm:$0xff] }
  0x11   :  { %137 = vmatpush.msra.mxu1 %v50_v15  ;;  %368 = vmatpush.msra.mxu3 %v50_v15  ;;  %v229_v47 = vld [vmem:[%s4961_s3 + $0xd0] sm:$0xff]  ;;  %v212_v50 = vld [vmem:[%s4961_s3 + $0x48] sm:$0xff]  ;;  %v211_v52 = vld [vmem:[%s4961_s3 + $0x40] sm:$0xff] }
  0x12   :  { %73 = vmatpush.msra.mxu0 %v47_v16  ;;  %353 = vmatpush.msra.mxu2 %v47_v16  ;;  %v19_v48 = vld [vmem:[%s4960_s0 + $0x10] sm:$0xff]  ;;  %v228_v51 = vld [vmem:[%s4961_s3 + $0xc8] sm:$0xff]  ;;  %v227_v53 = vld [vmem:[%s4961_s3 + $0xc0] sm:$0xff] }
  0x13   :  { %138 = vmatpush.msra.mxu1 %v48_v17  ;;  %369 = vmatpush.msra.mxu3 %v48_v17  ;;  %v210_v54 = vld [vmem:[%s4961_s3 + $0x38] sm:$0xff]  ;;  %v30_v57 = vld [vmem:[%s4960_s0 + $0x68] sm:$0xff]  ;;  %v209_v58 = vld [vmem:[%s4961_s3 + $0x30] sm:$0xff] }
  0x14   :  { %74 = vmatpush.msra.mxu0 %v45_v18  ;;  %354 = vmatpush.msra.mxu2 %v45_v18  ;;  %v226_v55 = vld [vmem:[%s4961_s3 + $0xb8] sm:$0xff]  ;;  %v225_v59 = vld [vmem:[%s4961_s3 + $0xb0] sm:$0xff]  ;;  %v208_v60 = vld [vmem:[%s4961_s3 + $0x28] sm:$0xff] }
  0x15   :  { %139 = vmatpush.msra.mxu1 %v46_v19  ;;  %370 = vmatpush.msra.mxu3 %v46_v19  ;;  %v20_v56 = vld [vmem:[%s4960_s0 + $0x18] sm:$0xff]  ;;  %v224_v61 = vld [vmem:[%s4961_s3 + $0xa8] sm:$0xff]  ;;  %v207_v62 = vld [vmem:[%s4961_s3 + $0x20] sm:$0xff] }
  0x16   :  { %75 = vmatpush.msra.mxu0 %v43_v20  ;;  %355 = vmatpush.msra.mxu2 %v43_v20  ;;  %v223_v63 = vld [vmem:[%s4961_s3 + $0xa0] sm:$0xff]  ;;  %v31_v1 = vld [vmem:[%s4960_s0 + $0x70] sm:$0xff]  ;;  %v206_v2 = vld [vmem:[%s4961_s3 + $0x18] sm:$0xff] }
  0x17   :  { %140 = vmatpush.msra.mxu1 %v44_v21  ;;  %371 = vmatpush.msra.mxu3 %v44_v21  ;;  %v21_v0 = vld [vmem:[%s4960_s0 + $0x20] sm:$0xff]  ;;  %v222_v3 = vld [vmem:[%s4961_s3 + $0x98] sm:$0xff]  ;;  %v205_v4 = vld [vmem:[%s4961_s3 + $0x10] sm:$0xff] }
  0x18   :  { %76 = vmatpush.msra.mxu0 %v41_v22  ;;  %356 = vmatpush.msra.mxu2 %v41_v22  ;;  %v221_v5 = vld [vmem:[%s4961_s3 + $0x90] sm:$0xff]  ;;  %v204_v6 = vld [vmem:[%s4961_s3 + $0x8] sm:$0xff]  ;;  %v32_v9 = vld [vmem:[%s4960_s0 + $0x78] sm:$0xff] }
  0x19   :  { %141 = vmatpush.msra.mxu1 %v42_v23  ;;  %372 = vmatpush.msra.mxu3 %v42_v23  ;;  %v220_v7 = vld [vmem:[%s4961_s3 + $0x88] sm:$0xff]  ;;  %v203_v10 = vld [vmem:[%s4961_s3] sm:$0xff]  ;;  %v23_v12 = vld [vmem:[%s4960_s0 + $0x30] sm:$0xff] }
  0x1a   :  { %77 = vmatpush.msra.mxu0 %v39_v24  ;;  %357 = vmatpush.msra.mxu2 %v39_v24  ;;  %v22_v8 = vld [vmem:[%s4960_s0 + $0x28] sm:$0xff]  ;;  %v219_v11 = vld [vmem:[%s4961_s3 + $0x80] sm:$0xff]  ;;  %v24_v15 = vld [vmem:[%s4960_s0 + $0x38] sm:$0xff] }
  0x1b   :  { %142 = vmatpush.msra.mxu1 %v40_v25  ;;  %373 = vmatpush.msra.mxu3 %v40_v25  ;;  %v195_v13 = vld [vmem:[%s4962_s1] sm:$0xff]  ;;  %v196_v14 = vld [vmem:[%s4962_s1 + $0x8] sm:$0xff]  ;;  %v197_v16 = vld [vmem:[%s4962_s1 + $0x10] sm:$0xff] }
  0x1c   :  { %78 = vmatpush.msra.mxu0 %v37_v26  ;;  %358 = vmatpush.msra.mxu2 %v37_v26  ;;  %v198_v17 = vld [vmem:[%s4962_s1 + $0x18] sm:$0xff]  ;;  %v25_v18 = vld [vmem:[%s4960_s0 + $0x40] sm:$0xff]  ;;  %v200_v20 = vld [vmem:[%s4962_s1 + $0x28] sm:$0xff] }
  0x1d   :  { %143 = vmatpush.msra.mxu1 %v38_v27  ;;  %374 = vmatpush.msra.mxu3 %v38_v27  ;;  %v199_v19 = vld [vmem:[%s4962_s1 + $0x20] sm:$0xff]  ;;  %v26_v21 = vld [vmem:[%s4960_s0 + $0x48] sm:$0xff]  ;;  %v201_v22 = vld [vmem:[%s4962_s1 + $0x30] sm:$0xff] }
  0x1e   :  { %79 = vmatpush.msra.mxu0 %v35_v28  ;;  %359 = vmatpush.msra.mxu2 %v35_v28  ;;  %v202_v23 = vld [vmem:[%s4962_s1 + $0x38] sm:$0xff] }
  0x1f   :  { %144 = vmatpush.msra.mxu1 %v36_v29  ;;  %375 = vmatpush.msra.mxu3 %v36_v29 }
  0x20   :  { %80 = vmatpush.msra.mxu0 %v33_v30  ;;  %360 = vmatpush.msra.mxu2 %v33_v30 }
  0x21   :  { %145 = vmatpush.msra.mxu1 %v34_v31  ;;  %376 = vmatpush.msra.mxu3 %v34_v31 }
  0x22   :  { %81 = vmatmul.f32.vlgmr.msra.gmra.mxu0 %v17_v32  ;;  %111 = vmatmul.f32.vlgmr.msra.gmra.mxu2 %v27_v33 }
  0x23   :  { %146 = vmatmul.f32.vlgmr.msra.gmra.mxu1 %v17_v32  ;;  %176 = vmatmul.f32.vlgmr.msra.gmra.mxu3 %v27_v33 }
  0x24   :  { %235 = vmatpush.msrb.mxu2 %v218_v34  ;;  %264 = vmatpush.msrb.mxu3 %v234_v35 }
  0x26   :  { %236 = vmatpush.msrb.mxu2 %v217_v36  ;;  %265 = vmatpush.msrb.mxu3 %v233_v37 }
  0x28   :  { %237 = vmatpush.msrb.mxu2 %v216_v38  ;;  %266 = vmatpush.msrb.mxu3 %v232_v39 }
  0x2a   :  { %84 = vmatmul.f32.gmra.mxu0 %v18_v40  ;;  %114 = vmatmul.f32.gmra.mxu2 %v28_v41 }
  0x2b   :  { %149 = vmatmul.f32.gmra.mxu1 %v18_v40  ;;  %179 = vmatmul.f32.gmra.mxu3 %v28_v41 }
  0x2c   :  { %238 = vmatpush.msrb.mxu2 %v215_v42  ;;  %267 = vmatpush.msrb.mxu3 %v231_v43 }
  0x2e   :  { %239 = vmatpush.msrb.mxu2 %v214_v44  ;;  %268 = vmatpush.msrb.mxu3 %v230_v45 }
  0x30   :  { %240 = vmatpush.msrb.mxu2 %v213_v46  ;;  %269 = vmatpush.msrb.mxu3 %v229_v47 }
  0x32   :  { %87 = vmatmul.f32.gmra.mxu0 %v19_v48  ;;  %117 = vmatmul.f32.gmra.mxu2 %v29_v49 }
  0x33   :  { %152 = vmatmul.f32.gmra.mxu1 %v19_v48  ;;  %182 = vmatmul.f32.gmra.mxu3 %v29_v49 }
  0x34   :  { %241 = vmatpush.msrb.mxu2 %v212_v50  ;;  %270 = vmatpush.msrb.mxu3 %v228_v51 }
  0x36   :  { %242 = vmatpush.msrb.mxu2 %v211_v52  ;;  %271 = vmatpush.msrb.mxu3 %v227_v53 }
  0x38   :  { %243 = vmatpush.msrb.mxu2 %v210_v54  ;;  %272 = vmatpush.msrb.mxu3 %v226_v55 }
  0x3a   :  { %90 = vmatmul.f32.gmra.mxu0 %v20_v56  ;;  %120 = vmatmul.f32.gmra.mxu2 %v30_v57 }
  0x3b   :  { %155 = vmatmul.f32.gmra.mxu1 %v20_v56  ;;  %185 = vmatmul.f32.gmra.mxu3 %v30_v57 }
  0x3c   :  { %244 = vmatpush.msrb.mxu2 %v209_v58  ;;  %273 = vmatpush.msrb.mxu3 %v225_v59 }
  0x3e   :  { %245 = vmatpush.msrb.mxu2 %v208_v60  ;;  %274 = vmatpush.msrb.mxu3 %v224_v61 }
  0x40   :  { %246 = vmatpush.msrb.mxu2 %v207_v62  ;;  %275 = vmatpush.msrb.mxu3 %v223_v63  ;;  %v5069_v62 = vmov 0 }
  0x42   :  { %93 = vmatmul.f32.gmra.mxu0 %v21_v0  ;;  %123 = vmatmul.f32.gmra.mxu2 %v31_v1 }
  0x43   :  { %158 = vmatmul.f32.gmra.mxu1 %v21_v0  ;;  %188 = vmatmul.f32.gmra.mxu3 %v31_v1  ;;  %v4974_v1 = vmov 2139095040  }
  0x44   :  { %247 = vmatpush.msrb.mxu2 %v206_v2  ;;  %276 = vmatpush.msrb.mxu3 %v222_v3 }
  0x46   :  { %248 = vmatpush.msrb.mxu2 %v205_v4  ;;  %277 = vmatpush.msrb.mxu3 %v221_v5 }
  0x48   :  { %249 = vmatpush.msrb.mxu2 %v204_v6  ;;  %278 = vmatpush.msrb.mxu3 %v220_v7 }
  0x4a   :  { %96 = vmatmul.f32.gmra.mxu0 %v22_v8  ;;  %126 = vmatmul.f32.gmra.mxu2 %v32_v9 }
  0x4b   :  { %161 = vmatmul.f32.gmra.mxu1 %v22_v8  ;;  %191 = vmatmul.f32.gmra.mxu3 %v32_v9 }
  0x4c   :  { %250 = vmatpush.msrb.mxu2 %v203_v10  ;;  %279 = vmatpush.msrb.mxu3 %v219_v11 }
  0x52   :  { %99 = vmatmul.f32.gmra.mxu0 %v23_v12  ;;  %251 = vmatmul.f32.vlgmr.msrb.gmra.mxu2 %v195_v13 }
  0x53   :  { %164 = vmatmul.f32.gmra.mxu1 %v23_v12  ;;  %280 = vmatmul.f32.vlgmr.msrb.gmra.mxu3 %v196_v14  ;;  %v4976_v12 = vmov 0  }
  0x5a   :  { %102 = vmatmul.f32.gmra.mxu0 %v24_v15  ;;  %254 = vmatmul.f32.gmra.mxu2 %v197_v16 }
  0x5b   :  { %167 = vmatmul.f32.gmra.mxu1 %v24_v15  ;;  %283 = vmatmul.f32.gmra.mxu3 %v198_v17 }
  0x62   :  { %105 = vmatmul.f32.gmra.mxu0 %v25_v18  ;;  %257 = vmatmul.f32.gmra.mxu2 %v199_v19  ;;  %v5083_v19 = vmov 0 }
  0x63   :  { %170 = vmatmul.f32.gmra.mxu1 %v25_v18  ;;  %286 = vmatmul.f32.gmra.mxu3 %v200_v20 }
  0x6a   :  { %108 = vmatmul.f32.gmra.mxu0 %v26_v21  ;;  %260 = vmatmul.f32.gmra.mxu2 %v201_v22 }
  0x6b   :  { %173 = vmatmul.f32.gmra.mxu1 %v26_v21  ;;  %289 = vmatmul.f32.gmra.mxu3 %v202_v23 }
  0x9f   :  { %v2328_v29 = vpop.f32.mrf.mxu0 }
  0xa0   :  { %v2332_v31 = vpop.f32.mrf.mxu1  ;;  %v2339_v34 = vand.u32 2147483647, %v2328_v29  ;;  %v430_v37 = vceil.f32 %v2328_v29  ;;  %v431_v38 = vfloor.f32 %v2328_v29  ;;  %vm429_vm0 = vcmp.lt.s32.totalorder %v2328_v29, 0 }
  0xa1   :  { %vm4970_vm8 = vcmp.lt.f32.partialorder %v2328_v29, 0 }
  0xa2   :  { %v437_v39 = vfloor.f32 %v2339_v34  ;;  %v432_v42 = vsel %vm429_vm0, %v430_v37, %v431_v38  ;;  %vm4967_vm2 = vcmp.eq.f32.partialorder %v2339_v34, 2139095040  ;;  %v2399_v2 = vsel %vm4970_vm8, 0, %v4974_v1 }
  0xa3   :  { %vm433_vm3 = vcmp.ne.f32.partialorder %v2328_v29, %v432_v42  ;;  %v2434_v13 = vsel %vm4970_vm8, 2139095040, %v4976_v12  ;;  %v465_v14 = vxor.u32 2147483648, %v2399_v2  ;;  %v5092_v38 = vmov 0 }
  0xa4   :  { %v438_v46 = vcvt.f32.s32 %v437_v39  ;;  %vm2372_vm4 = vmor %vm433_vm3, %vm4967_vm2  ;;  %vm435_vm3 = vcmp.lt.f32.partialorder %v2339_v34, 1266679808 }
  0xa5   :  { %v2318_v24 = vpop.f32.mrf.mxu2  ;;  %vm441_vm10 = vmneg %vm2372_vm4 }
  0xa6   :  { %5054 = vst [vmem:[#allocation2_spill] sm:$0xff] %v2318_v24  ;;  %v2320_v25 = vpop.f32.mrf.mxu3  ;;  %v2344_v36 = vand.u32 2147483647, %v2318_v24  ;;  %v1440_v43 = vceil.f32 %v2318_v24  ;;  %v1441_v44 = vfloor.f32 %v2318_v24  ;;  %vm1439_vm1 = vcmp.lt.s32.totalorder %v2318_v24, 0 }
  0xa7   :  { %5055 = vst [vmem:[#allocation3_spill] sm:$0xff] %v2320_v25  ;;  %v2341_v35 = vpop.f32.mrf.mxu0  ;;  %v439_v53 = vand.u32 1, %v438_v46  ;;  %vm4965_vm11 = vcmp.lt.f32.partialorder %v2318_v24, 0 }
  0xa8   :  { %5060 = vst [vmem:[#allocation8_spill] sm:$0xff] %v2341_v35  ;;  %v1447_v40 = vfloor.f32 %v2344_v36  ;;  %v2351_v41 = vpop.f32.mrf.mxu1  ;;  %v2356_v45 = vand.u32 2147483647, %v2341_v35  ;;  %v1442_v51 = vsel %vm1439_vm1, %v1440_v43, %v1441_v44  ;;  %v531_v54 = vceil.f32 %v2341_v35 }
  0xa9   :  { %5061 = vst [vmem:[#allocation9_spill] sm:$0xff] %v2344_v36  ;;  %v532_v55 = vfloor.f32 %v2341_v35  ;;  %vm530_vm5 = vcmp.lt.s32.totalorder %v2341_v35, 0  ;;  %vm4964_vm6 = vcmp.eq.f32.partialorder %v2344_v36, 2139095040  ;;  %vm1443_vm7 = vcmp.ne.f32.partialorder %v2318_v24, %v1442_v51 }
  0xaa   :  { %5062 = vst [vmem:[#allocation10_spill] sm:$0xff] %v2356_v45  ;;  %v1448_v49 = vcvt.f32.s32 %v1447_v40  ;;  %v538_v52 = vfloor.f32 %v2356_v45  ;;  %vm440_vm9 = vcmp.eq.s32.totalorder %v439_v53, 1  ;;  %vm2390_vm12 = vmor %vm1443_vm7, %vm4964_vm6  ;;  %v2414_v6 = vsel %vm4965_vm11, 0, %v4974_v1 }
  0xab   :  { %v533_v60 = vsel %vm530_vm5, %v531_v54, %v532_v55  ;;  %v5070_v62 = vsel %vm2390_vm12, 4294967295, %v5069_v62  ;;  %vm2407_vm15 = vmand %vm440_vm9, %vm441_vm10  ;;  %5076 = vst [vmem:[#allocation16_spill] sm:$0xff] %v2414_v6  ;;  %vm4966_vm0 = vcmp.eq.f32.partialorder %v2356_v45, 2139095040  ;;  %vm4968_vm7 = vcmp.lt.f32.partialorder %v2341_v35, 0 }
  0xac   :  { %v1449_v57 = vand.u32 1, %v1448_v49  ;;  %v539_v59 = vcvt.f32.s32 %v538_v52  ;;  %5071 = vst [vmem:[#allocation15_spill] sm:$0xff] %v5070_v62  ;;  %vm534_vm1 = vcmp.ne.f32.partialorder %v2341_v35, %v533_v60  ;;  %vm1451_vm5 = vmneg %vm2390_vm12  ;;  %vm1445_vm10 = vcmp.lt.f32.partialorder %v2344_v36, 1266679808 }
  0xad   :  { %v2322_v26 = vpop.f32.mrf.mxu2  ;;  %v2448_v17 = vsel %vm4965_vm11, 2139095040, %v4976_v12  ;;  %v1475_v18 = vxor.u32 2147483648, %v2414_v6  ;;  %v2474_v23 = vsel %vm4968_vm7, 0, %v4974_v1  ;;  %vm536_vm11 = vcmp.lt.f32.partialorder %v2356_v45, 1266679808 }
  0xae   :  { %5056 = vst [vmem:[#allocation4_spill] sm:$0xff] %v2322_v26  ;;  %v2324_v27 = vpop.f32.mrf.mxu3  ;;  %vm2401_vm13 = vcmp.eq.s32.totalorder %v1449_v57, 1  ;;  %v540_v7 = vand.u32 1, %v539_v59  ;;  %v2477_v37 = vand.u32 2147483647, %v2322_v26  ;;  %v2514_v55 = vsel %vm4968_vm7, 2139095040, %v4976_v12 }
  0xaf   :  { %5057 = vst [vmem:[#allocation5_spill] sm:$0xff] %v2324_v27  ;;  %v2365_v50 = vpop.f32.mrf.mxu0  ;;  %vm1452_vm9 = vmand %vm2401_vm13, %vm1451_vm5  ;;  %v566_v57 = vxor.u32 2147483648, %v2474_v23  ;;  %v5099_v59 = vmov 0  ;;  %vm1540_vm7 = vcmp.lt.s32.totalorder %v2322_v26, 0  ;;  %v5143_v36 = vmov 0 }
  0xb0   :  { %5064 = vst [vmem:[#allocation12_spill] sm:$0xff] %v2365_v50  ;;  %v2380_v58 = vand.u32 2147483647, %v2365_v50  ;;  %v2386_v61 = vpop.f32.mrf.mxu1  ;;  %v632_v63 = vceil.f32 %v2365_v50  ;;  %v633_v0 = vfloor.f32 %v2365_v50  ;;  %vm631_vm14 = vcmp.lt.s32.totalorder %v2365_v50, 0  ;;  %vm2455_vm13 = vmor %vm534_vm1, %vm4966_vm0 }
  0xb1   :  { %5068 = vst [vmem:[#allocation14_spill] sm:$0xff] %v2386_v61  ;;  %v5084_v19 = vsel %vm2455_vm13, 4294967295, %v5083_v19  ;;  %vm2467_vm5 = vcmp.eq.s32.totalorder %v540_v7, 1  ;;  %vm2480_vm6 = vmand %vm1445_vm10, %vm1452_vm9  ;;  %v1548_v5 = vfloor.f32 %v2477_v37 }
  0xb2   :  { %5067 = vst [vmem:[#allocation13_spill] sm:$0xff] %v2380_v58  ;;  %v639_v4 = vfloor.f32 %v2380_v58  ;;  %v634_v15 = vsel %vm631_vm14, %v632_v63, %v633_v0  ;;  %vm2463_vm14 = vmand %vm435_vm3, %vm2407_vm15  ;;  %vm4969_vm1 = vcmp.eq.f32.partialorder %v2380_v58, 2139095040  ;;  %v5093_v38 = vsel %vm2480_vm6, 4294967295, %v5092_v38 }
  0xb3   :  { %5082 = vst [vmem:[#allocation22_spill] sm:$0xff] %v2448_v17  ;;  %vm635_vm15 = vcmp.ne.f32.partialorder %v2365_v50, %v634_v15  ;;  %vm542_vm3 = vmneg %vm2455_vm13  ;;  %v2497_v49 = vsel %vm2463_vm14, %v465_v14, %v2399_v2  ;;  %v2508_v54 = vsel %vm2480_vm6, %v1475_v18, %v2414_v6  ;;  %v1541_v63 = vceil.f32 %v2322_v26 }
  0xb4   :  { %5085 = vst [vmem:[#allocation23_spill] sm:$0xff] %v5084_v19  ;;  %v640_v20 = vcvt.f32.s32 %v639_v4  ;;  %vm2521_vm0 = vmor %vm635_vm15, %vm4969_vm1  ;;  %v1542_v4 = vfloor.f32 %v2322_v26  ;;  %v5162_v6 = vmov 0 }
  0xb5   :  { %v2326_v28 = vpop.f32.mrf.mxu2  ;;  %5090 = vst [vmem:[#allocation24_spill] sm:$0xff] %v2474_v23  ;;  %v5100_v59 = vsel %vm2521_vm0, 4294967295, %v5099_v59  ;;  %vm2530_vm2 = vmand %vm2467_vm5, %vm542_vm3 }
  0xb6   :  { %v2330_v30 = vpop.f32.mrf.mxu3  ;;  %v2427_v10 = vand.u32 2147483647, %v2326_v28  ;;  %5091 = vst [vmem:[#allocation25_spill] sm:$0xff] %v2477_v37  ;;  %v1642_v43 = vceil.f32 %v2326_v28  ;;  %v1643_v44 = vfloor.f32 %v2326_v28  ;;  %v641_v51 = vand.u32 1, %v640_v20  ;;  %vm643_vm3 = vmneg %vm2521_vm0 }
  0xb7   :  { %v2429_v11 = vpop.f32.mrf.mxu0  ;;  %5094 = vst [vmem:[#allocation26_spill] sm:$0xff] %v5093_v38  ;;  %vm1641_vm10 = vcmp.lt.s32.totalorder %v2326_v28, 0 }
  0xb8   :  { %5079 = vst [vmem:[#allocation19_spill] sm:$0xff] %v2427_v10  ;;  %v2442_v16 = vand.u32 2147483647, %v2429_v11  ;;  %v1649_v39 = vfloor.f32 %v2427_v10  ;;  %v733_v40 = vceil.f32 %v2429_v11  ;;  %v734_v42 = vfloor.f32 %v2429_v11  ;;  %v2500_v52 = vpop.f32.mrf.mxu1 }
  0xb9   :  { %5080 = vst [vmem:[#allocation20_spill] sm:$0xff] %v2429_v11  ;;  %vm732_vm9 = vcmp.lt.s32.totalorder %v2429_v11, 0  ;;  %v1644_v7 = vsel %vm1641_vm10, %v1642_v43, %v1643_v44  ;;  %vm2541_vm15 = vcmp.eq.s32.totalorder %v641_v51, 1  ;;  %v2569_v51 = vsel %vm1540_vm7, %v1541_v63, %v1542_v4 }
  0xba   :  { %5081 = vst [vmem:[#allocation21_spill] sm:$0xff] %v2442_v16  ;;  %v740_v46 = vfloor.f32 %v2442_v16  ;;  %v1650_v0 = vcvt.f32.s32 %v1649_v39  ;;  %v735_v3 = vsel %vm732_vm9, %v733_v40, %v734_v42  ;;  %vm2553_vm9 = vmand %vm536_vm11, %vm2530_vm2  ;;  %v5106_v39 = vmov 0 }
  0xbb   :  { %5095 = vst [vmem:[#allocation27_spill] sm:$0xff] %v2500_v52  ;;  %v5107_v39 = vsel %vm2553_vm9, 4294967295, %v5106_v39  ;;  %vm4971_vm10 = vcmp.eq.f32.partialorder %v2442_v16, 2139095040  ;;  %vm736_vm8 = vcmp.ne.f32.partialorder %v2429_v11, %v735_v3  ;;  %vm1645_vm1 = vcmp.ne.f32.partialorder %v2326_v28, %v1644_v7  ;;  %vm644_vm11 = vmand %vm2541_vm15, %vm643_vm3 }
  0xbc   :  { %5097 = vst [vmem:[#allocation29_spill] sm:$0xff] %v2508_v54  ;;  %v741_v14 = vcvt.f32.s32 %v740_v46  ;;  %v1651_v43 = vand.u32 1, %v1650_v0  ;;  %vm637_vm2 = vcmp.lt.f32.partialorder %v2380_v58, 1266679808  ;;  %vm2591_vm7 = vmor %vm736_vm8, %vm4971_vm10  ;;  %v5113_v63 = vmov 0 }
  0xbd   :  { %v2334_v32 = vpop.f32.mrf.mxu2  ;;  %5098 = vst [vmem:[#allocation30_spill] sm:$0xff] %v2514_v55  ;;  %v5114_v63 = vsel %vm2591_vm7, 4294967295, %v5113_v63  ;;  %vm5116_vm15 = vcmp.lt.f32.partialorder %v2365_v50, 0  ;;  %vm4985_vm3 = vcmp.lt.f32.partialorder %v2326_v28, 0  ;;  %vm5118_vm5 = vcmp.eq.f32.partialorder %v2427_v10, 2139095040  ;;  %vm2616_vm12 = vmand %vm637_vm2, %vm644_vm11 }
  0xbe   :  { %5058 = vst [vmem:[#allocation6_spill] sm:$0xff] %v2334_v32  ;;  %v2336_v33 = vpop.f32.mrf.mxu3  ;;  %v2503_v53 = vand.u32 2147483647, %v2334_v32  ;;  %v1743_v40 = vceil.f32 %v2334_v32  ;;  %v1744_v42 = vfloor.f32 %v2334_v32  ;;  %v742_v60 = vand.u32 1, %v741_v14  ;;  %vm2609_vm8 = vmor %vm1645_vm1, %vm5118_vm5 }
  0xbf   :  { %5059 = vst [vmem:[#allocation7_spill] sm:$0xff] %v2336_v33  ;;  %v2563_v44 = vpop.f32.mrf.mxu0  ;;  %vm5121_vm6 = vcmp.lt.s32.totalorder %v2334_v32, 0  ;;  %vm1653_vm2 = vmneg %vm2609_vm8  ;;  %vm5130_vm5 = vcmp.lt.f32.partialorder %v2365_v50, 0 }
  0xc0   :  { %5096 = vst [vmem:[#allocation28_spill] sm:$0xff] %v2503_v53  ;;  %v1750_v22 = vfloor.f32 %v2503_v53  ;;  %v2578_v0 = vand.u32 2147483647, %v2563_v44  ;;  %v835_v7 = vfloor.f32 %v2563_v44  ;;  %vm2629_vm1 = vcmp.eq.s32.totalorder %v742_v60, 1  ;;  %vm5134_vm11 = vmneg %vm2591_vm7 }
  0xc1   :  { %5101 = vst [vmem:[#allocation31_spill] sm:$0xff] %v5100_v59  ;;  %vm745_vm0 = vmand %vm2629_vm1, %vm5134_vm11  ;;  %vm5138_vm10 = vcmp.eq.f32.partialorder %v2503_v53, 2139095040  ;;  %vm5146_vm11 = vcmp.lt.f32.partialorder %v2326_v28, 0  ;;  %vm5201_vm13 = vcmp.lt.f32.partialorder %v2563_v44, 0 }
  0xc2   :  { %5108 = vst [vmem:[#allocation32_spill] sm:$0xff] %v5107_v39  ;;  %v1751_v4 = vcvt.f32.s32 %v1750_v22  ;;  %v834_v22 = vceil.f32 %v2563_v44 }
  0xc3   :  { %5110 = vst [vmem:[#allocation34_spill] sm:$0xff] %v2569_v51  ;;  %v5129_v51 = vmov 0  }
  0xc4   :  { %5115 = vst [vmem:[#allocation37_spill] sm:$0xff] %v5114_v63  ;;  %v2649_v37 = vsel %vm5130_vm5, 2139095040, %v5129_v51  ;;  %vm5135_vm5 = vcmp.lt.f32.partialorder %v2429_v11, 0 }
  0xc5   :  { %v2359_v47 = vpop.f32.mrf.mxu2  ;;  %5131 = vst [vmem:[#allocation40_spill] sm:$0xff] %v2649_v37 }
  0xc6   :  { %v2361_v48 = vpop.f32.mrf.mxu3 }
  0xc7   :  { %5063 = vst [vmem:[#allocation11_spill] sm:$0xff] %v2361_v48 }
  0xcd   :  { %v2418_v8 = vpop.f32.mrf.mxu2 }
  0xce   :  { %5077 = vst [vmem:[#allocation17_spill] sm:$0xff] %v2418_v8  ;;  %v2420_v9 = vpop.f32.mrf.mxu3  ;;  %v5140_v8 = vmov 0 }
  0xcf   :  { %5078 = vst [vmem:[#allocation18_spill] sm:$0xff] %v2420_v9  ;;  %v5132_v9 = vmov 2139095040  }
  0xd0   :  { %v2657_v27 = vsel %vm4985_vm3, 0, %v5132_v9  ;;  %vm4993_vm3 = vcmp.lt.f32.partialorder %v2334_v32, 0 }
  0xd1   :  { %5133 = vst [vmem:[#allocation41_spill] sm:$0xff] %v2657_v27 }
  0xd5   :  { %v252_v15 = vpop.f32.mrf.mxu2 }
  0xd6   :  { %v281_v18 = vpop.f32.mrf.mxu3 }
  0xd7   :  { %v2565_v46 = vadd.f32 %v281_v18, %v252_v15  ;;  %v2583_v15 = vsel %vm2553_vm9, %v566_v57, %v2474_v23  ;;  %v2585_v18 = vcvt.f32.s32 %v1548_v5  ;;  %v2602_v57 = vsel %vm5116_vm15, 0, %v4974_v1  ;;  %v159_v1 = vpop.f32.mrf.mxu1 }
  0xd8   :  { %5111 = vst [vmem:[#allocation35_spill] sm:$0xff] %v2583_v15  ;;  %v5122_v5 = vmov 0  ;;  %vm2620_vm15 = vcmp.eq.s32.totalorder %v1651_v43, 1  ;;  %v1752_v43 = vand.u32 1, %v1751_v4  ;;  %v2668_v4 = vsel %vm5135_vm5, 0, %v5132_v9 }
  0xd9   :  { %5109 = vst [vmem:[#allocation33_spill] sm:$0xff] %v2565_v46  ;;  %v2597_v14 = vmul.f32 %v2565_v46, %v2332_v31  ;;  %v1745_v31 = vsel %vm5121_vm6, %v1743_v40, %v1744_v42  ;;  %v5123_v5 = vsel %vm2616_vm12, 4294967295, %v5122_v5  ;;  %v841_v40 = vfloor.f32 %v2578_v0  ;;  %vm1654_vm6 = vmand %vm2620_vm15, %vm1653_vm2 }
  0xda   :  { %5112 = vst [vmem:[#allocation36_spill] sm:$0xff] %v2585_v18  ;;  %v2638_v42 = vmul.f32 %v2565_v46, %v159_v1  ;;  %v667_v1 = vxor.u32 2147483648, %v2602_v57  ;;  %vm5137_vm15 = vcmp.lt.s32.totalorder %v2563_v44, 0  ;;  %vm1647_vm2 = vcmp.lt.f32.partialorder %v2427_v10, 1266679808 }
  0xdb   :  { %5117 = vst [vmem:[#allocation38_spill] sm:$0xff] %v2602_v57  ;;  %v2627_v12 = vand.u32 2147483647, %v2597_v14  ;;  %v836_v20 = vsel %vm5137_vm15, %v834_v22, %v835_v7  ;;  %vm5139_vm7 = vcmp.ne.f32.partialorder %v2334_v32, %v1745_v31  ;;  %v842_v18 = vcvt.f32.s32 %v841_v40  ;;  %vm2685_vm1 = vmand %vm1647_vm2, %vm1654_vm6 }
  0xdc   :  { %5124 = vst [vmem:[#allocation39_spill] sm:$0xff] %v5123_v5  ;;  %vm2678_vm9 = vmor %vm5139_vm7, %vm5138_vm10  ;;  %v2683_v63 = vand.u32 2147483647, %v2638_v42  ;;  %v5144_v36 = vsel %vm2685_vm1, 4294967295, %v5143_v36  ;;  %v2692_v22 = vsel %vm5146_vm11, 2139095040, %v5129_v51  ;;  %v1677_v7 = vxor.u32 2147483648, %v2657_v27 }
  0xdd   :  { %v383_v60 = vand.u32 8388607, %v2627_v12  ;;  %5136 = vst [vmem:[#allocation42_spill] sm:$0xff] %v2668_v4  ;;  %v5141_v8 = vsel %vm2678_vm9, 4294967295, %v5140_v8  ;;  %vm1753_vm5 = vcmp.eq.s32.totalorder %v1752_v43, 1  ;;  %vm5147_vm10 = vcmp.lt.f32.partialorder %v2442_v16, 1266679808  ;;  %vm1754_vm2 = vmneg %vm2678_vm9 }
  0xde   :  { %5142 = vst [vmem:[#allocation43_spill] sm:$0xff] %v5141_v8  ;;  %vm2697_vm7 = vmand %vm5147_vm10, %vm745_vm0  ;;  %v5148_v40 = vmov 0  ;;  %vm5003_vm6 = vcmp.eq.f32.partialorder %v2578_v0, 2139095040  ;;  %vm837_vm15 = vcmp.ne.f32.partialorder %v2563_v44, %v836_v20  ;;  %v787_v38 = vand.u32 8388607, %v2683_v63 }
  0xdf   :  { %v384_v26 = vor.u32 8388608, %v383_v60  ;;  %5145 = vst [vmem:[#allocation44_spill] sm:$0xff] %v5144_v36  ;;  %v5149_v40 = vsel %vm2697_vm7, 4294967295, %v5148_v40  ;;  %v768_v60 = vxor.u32 2147483648, %v2668_v4  ;;  %v2715_v43 = vmul.f32 %v2565_v46, %v2330_v30  ;;  %vm1755_vm10 = vmand %vm1753_vm5, %vm1754_vm2 }
  0xe0   :  { %5150 = vst [vmem:[#allocation45_spill] sm:$0xff] %v5149_v40  ;;  %v2722_v20 = vsel %vm2616_vm12, %v667_v1, %v2602_v57  ;;  %vm5153_vm11 = vcmp.lt.f32.partialorder %v2429_v11, 0  ;;  %v843_v17 = vand.u32 1, %v842_v18  ;;  %v788_v54 = vor.u32 8388608, %v787_v38 }
  0xe1   :  { %v386_v31 = vand.u32 8388607, %v384_v26  ;;  %v2710_v26 = vsel %vm4993_vm3, 0, %v5132_v9  ;;  %5152 = vst [vmem:[#allocation47_spill] sm:$0xff] %v2722_v20  ;;  %v2727_v52 = vsel %vm5153_vm11, 2139095040, %v5129_v51  ;;  %v2732_v30 = vsel %vm2685_vm1, %v1677_v7, %v2657_v27  ;;  %vm2737_vm3 = vmor %vm837_vm15, %vm5003_vm6 }
  0xe2   :  { %5151 = vst [vmem:[#allocation46_spill] sm:$0xff] %v2710_v26  ;;  %vm1748_vm0 = vcmp.lt.f32.partialorder %v2503_v53, 1266679808  ;;  %vm5158_vm5 = vcmp.lt.f32.partialorder %v2334_v32, 0  ;;  %v1778_v18 = vxor.u32 2147483648, %v2710_v26  ;;  %vm5160_vm2 = vcmp.lt.f32.partialorder %v2563_v44, 0 }
  0xe3   :  { %v2717_v16 = vor.u32 1065353216, %v386_v31  ;;  %5154 = vst [vmem:[#allocation48_spill] sm:$0xff] %v2727_v52  ;;  %v2746_v38 = vsel %vm5158_vm5, 2139095040, %v5129_v51  ;;  %v2752_v7 = vsel %vm5160_vm2, 0, %v5132_v9  ;;  %v790_v52 = vand.u32 8388607, %v788_v54  ;;  %vm2759_vm15 = vmand %vm1748_vm0, %vm1755_vm10 }
  0xe4   :  { %5155 = vst [vmem:[#allocation49_spill] sm:$0xff] %v2732_v30  ;;  %v2757_v11 = vsel %vm2697_vm7, %v768_v60, %v2668_v4  ;;  %v5163_v6 = vsel %vm2759_vm15, 4294967295, %v5162_v6  ;;  %vm839_vm11 = vcmp.lt.f32.partialorder %v2578_v0, 1266679808  ;;  %v2768_v24 = vand.u32 2147483647, %v2715_v43  ;;  %vm845_vm2 = vmneg %vm2737_vm3 }
  0xe5   :  { %vm5010_vm12 = vcmp.ge.f32.partialorder %v2717_v16, 1.4142135  ;;  %v389_v31 = vmul.f32 0.5, %v2717_v16  ;;  %5159 = vst [vmem:[#allocation50_spill] sm:$0xff] %v2746_v38  ;;  %vm844_vm5 = vcmp.eq.s32.totalorder %v843_v17, 1  ;;  %vm5165_vm0 = vcmp.lt.f32.partialorder %v2563_v44, 0 }
  0xe6   :  { %5161 = vst [vmem:[#allocation51_spill] sm:$0xff] %v2757_v11  ;;  %v2773_v54 = vand.u32 2147483647, %v2359_v47  ;;  %v2777_v11 = vor.u32 1065353216, %v790_v52  ;;  %v2782_v4 = vsel %vm5165_vm0, 2139095040, %v5129_v51  ;;  %vm5030_vm10 = vcmp.lt.f32.partialorder %v2359_v47, 0  ;;  %vm846_vm0 = vmand %vm844_vm5, %vm845_vm2 }
  0xe7   :  { %5164 = vst [vmem:[#allocation52_spill] sm:$0xff] %v5163_v6  ;;  %v390_v62 = vsel %vm5010_vm12, %v389_v31, %v2717_v16  ;;  %v869_v31 = vxor.u32 2147483648, %v2752_v7  ;;  %v1595_v17 = vand.u32 8388607, %v2768_v24  ;;  %v2790_v40 = vsel %vm2759_vm15, %v1778_v18, %v2710_v26  ;;  %vm2813_vm5 = vmand %vm839_vm11, %vm846_vm0  ;;  %v2822_v6 = vpop.f32.mrf.mxu0 }
  0xe8   :  { %v2775_v60 = vadd.f32 -1.0, %v390_v62  ;;  %5166 = vst [vmem:[#allocation53_spill] sm:$0xff] %v2790_v40  ;;  %vm792_vm6 = vcmp.ge.f32.partialorder %v2777_v11, 1.4142135  ;;  %v793_v52 = vmul.f32 0.5, %v2777_v11  ;;  %v1844_v20 = vceil.f32 %v2359_v47 }
  0xe9   :  { %v1845_v57 = vfloor.f32 %v2359_v47  ;;  %v379_v58 = vand.u32 2139095040, %v2627_v12  ;;  %v1596_v5 = vor.u32 8388608, %v1595_v17  ;;  %v1851_v37 = vfloor.f32 %v2773_v54 }
  0xea   :  { %v394_v62 = vmul.f32 %v2775_v60, %v2775_v60  ;;  %v794_v50 = vsel %vm792_vm6, %v793_v52, %v2777_v11  ;;  %vm1843_vm12 = vcmp.lt.s32.totalorder %v2359_v47, 0  ;;  %v2807_v48 = vsel %vm5030_vm10, 2139095040, %v5129_v51 }
  0xeb   :  { %5167 = vst [vmem:[#allocation54_spill] sm:$0xff] %v2807_v48  ;;  %v2809_v25 = vadd.f32 -1.0, %v794_v50  ;;  %v1598_v53 = vand.u32 8388607, %v1596_v5  ;;  %v2820_v52 = vsel %vm5030_vm10, 0, %v5132_v9  ;;  %v783_v48 = vand.u32 2139095040, %v2683_v63 }
  0xec   :  { %v395_v59 = vmul.f32 0.12621109, %v394_v62  ;;  %v397_v18 = vmul.f32 -0.20706727, %v394_v62  ;;  %5170 = vst [vmem:[#allocation55_spill] sm:$0xff] %v2820_v52  ;;  %v380_v5 = vshrl.u32 %v379_v58, 23  ;;  %v2832_v61 = vsel %vm1843_vm12, %v1844_v20, %v1845_v57 }
  0xed   :  { %v2826_v50 = vand.u32 2147483647, %v2822_v6  ;;  %v798_v40 = vmul.f32 %v2809_v25, %v2809_v25  ;;  %v2830_v26 = vor.u32 1065353216, %v1598_v53  ;;  %v2834_v32 = vcvt.f32.s32 %v1851_v37 }
  0xee   :  { %v396_v38 = vadd.f32 0.21545328, %v395_v59  ;;  %v398_v8 = vadd.f32 -0.23896284, %v397_v18  ;;  %v2839_v59 = vsel %vm2813_vm5, %v869_v31, %v2752_v7  ;;  %v784_v15 = vshrl.u32 %v783_v48, 23 }
  0xef   :  { %5171 = vst [vmem:[#allocation56_spill] sm:$0xff] %v2834_v32  ;;  %v799_v18 = vmul.f32 0.12621109, %v798_v40  ;;  %v801_v55 = vmul.f32 -0.20706727, %v798_v40  ;;  %v1601_v53 = vmul.f32 0.5, %v2830_v26  ;;  %v935_v57 = vceil.f32 %v2822_v6 }
  0xf0   :  { %v399_v45 = vmul.f32 %v396_v38, %v394_v62  ;;  %v401_v39 = vmul.f32 %v398_v8, %v394_v62  ;;  %vm5031_vm11 = vcmp.ge.f32.partialorder %v2830_v26, 1.4142135  ;;  %v476_v37 = vadd.s32 4294967169, %v380_v5 }
  0xf1   :  { %v800_v20 = vadd.f32 0.21545328, %v799_v18  ;;  %v802_v38 = vadd.f32 -0.23896284, %v801_v55  ;;  %v936_v8 = vfloor.f32 %v2822_v6  ;;  %v1602_v31 = vsel %vm5031_vm11, %v1601_v53, %v2830_v26 }
  0xf2   :  { %v400_v58 = vadd.f32 0.28795174, %v399_v45  ;;  %v402_v19 = vadd.f32 -0.3607037, %v401_v39  ;;  %vm934_vm12 = vcmp.lt.s32.totalorder %v2822_v6, 0  ;;  %v2849_v48 = vadd.f32 -1.0, %v1602_v31 }
  0xf3   :  { %v803_v45 = vmul.f32 %v800_v20, %v798_v40  ;;  %v805_v39 = vmul.f32 %v802_v38, %v798_v40  ;;  %v942_v35 = vfloor.f32 %v2826_v50  ;;  %v880_v18 = vadd.s32 4294967169, %v784_v15 }
  0xf4   :  { %v403_v23 = vmul.f32 %v400_v58, %v394_v62  ;;  %v405_v46 = vmul.f32 %v402_v19, %v394_v62  ;;  %v391_v55 = vadd.s32 1, %v476_v37  ;;  %v1606_v19 = vmul.f32 %v2849_v48, %v2849_v48 }
  0xf5   :  { %v804_v52 = vadd.f32 0.28795174, %v803_v45  ;;  %v806_v33 = vadd.f32 -0.3607037, %v805_v39  ;;  %v2855_v53 = vsel %vm934_vm12, %v935_v57, %v936_v8  ;;  %v1591_v20 = vand.u32 2139095040, %v2768_v24 }
  0xf6   :  { %v404_v9 = vadd.f32 0.48090908, %v403_v23  ;;  %v406_v5 = vadd.f32 -0.72134733, %v405_v46  ;;  %v1607_v30 = vmul.f32 0.12621109, %v1606_v19  ;;  %v255_v23 = vpop.f32.mrf.mxu2  ;;  %v284_v46 = vpop.f32.mrf.mxu3  ;;  %v2858_v15 = vcvt.f32.s32 %v942_v35 }
  0xf7   :  { %v807_v38 = vmul.f32 %v804_v52, %v798_v40  ;;  %v809_v31 = vmul.f32 %v806_v33, %v798_v40  ;;  %v1609_v27 = vmul.f32 -0.20706727, %v1606_v19  ;;  %v795_v36 = vadd.s32 1, %v880_v18 }
  0xf8   :  { %v407_v10 = vmul.f32 %v404_v9, %v394_v62  ;;  %5172 = vst [vmem:[#allocation57_spill] sm:$0xff] %v2858_v15  ;;  %v409_v39 = vmul.f32 %v2775_v60, %v406_v5  ;;  %vm5173_vm2 = vcmp.ge.f32.partialorder %v2717_v16, 1.4142135  ;;  %v1608_v9 = vadd.f32 0.21545328, %v1607_v30 }
  0xf9   :  { %v392_v58 = vsel %vm5173_vm2, %v391_v55, %v476_v37  ;;  %v808_v57 = vadd.f32 0.48090908, %v807_v38  ;;  %v810_v8 = vadd.f32 -0.72134733, %v809_v31  ;;  %v1592_v32 = vshrl.u32 %v1591_v20, 23 }
  0xfa   :  { %v408_v45 = vadd.f32 1.442695, %v407_v10  ;;  %v1610_v52 = vadd.f32 -0.23896284, %v1609_v27  ;;  %v2863_v33 = vadd.f32 %v284_v46, %v255_v23  ;;  %v1611_v10 = vmul.f32 %v1608_v9, %v1606_v19 }
  0xfb   :  { %v811_v35 = vmul.f32 %v808_v57, %v798_v40  ;;  %v412_v15 = vcvt.s32.f32 %v392_v58  ;;  %v796_v30 = vsel %vm792_vm6, %v795_v36, %v880_v18  ;;  %v813_v27 = vmul.f32 %v2809_v25, %v810_v8 }
  0xfc   :  { %v410_v62 = vadd.f32 %v409_v39, %v408_v45  ;;  %v1613_v16 = vmul.f32 %v1610_v52, %v1606_v19  ;;  %v1612_v55 = vadd.f32 0.28795174, %v1611_v10  ;;  %vm448_vm2 = vcmp.gt.f32.partialorder %v2627_v12, 1065353216 }
  0xfd   :  { %v812_v37 = vadd.f32 1.442695, %v811_v35  ;;  %v1688_v38 = vadd.s32 4294967169, %v1592_v32  ;;  %vm417_vm11 = vweird.f32 %v2627_v12  ;;  %v2876_v58 = vmul.f32 %v2863_v33, %v2351_v41 }
  0xfe   :  { %v411_v5 = vmul.f32 %v2775_v60, %v410_v62  ;;  %v1614_v31 = vadd.f32 -0.3607037, %v1613_v16  ;;  %v1615_v60 = vmul.f32 %v1612_v55, %v1606_v19  ;;  %vm416_vm0 = vcmp.lt.f32.partialorder %v2627_v12, 0.0 }
  0xff   :  { %v814_v40 = vadd.f32 %v813_v27, %v812_v37  ;;  %v816_v11 = vcvt.s32.f32 %v796_v30  ;;  %vm5174_vm12 = vcmp.lt.f32.partialorder %v2328_v29, 0  ;;  %vm5177_vm6 = vcmp.eq.f32.partialorder %v2627_v12, 0.0  ;;  %v162_v30 = vpop.f32.mrf.mxu1 }
 0x100   :  { %v413_v20 = vadd.f32 %v412_v15, %v411_v5  ;;  %v1617_v18 = vmul.f32 %v1614_v31, %v1606_v19  ;;  %vm2883_vm10 = vmxor %vm5174_vm12, %vm448_vm2  ;;  %v1616_v46 = vadd.f32 0.48090908, %v1615_v60  ;;  %v2890_v15 = vand.u32 2147483647, %v2876_v58 }
 0x101   :  { %v815_v41 = vmul.f32 %v2809_v25, %v814_v40  ;;  %v1603_v39 = vadd.s32 1, %v1688_v38  ;;  %vm5181_vm7 = vcmp.lt.f32.partialorder %v2597_v14, 0  ;;  %vm821_vm15 = vweird.f32 %v2683_v63 }
 0x102   :  { %v418_v36 = vsel %vm417_vm11, %v2627_v12, %v413_v20  ;;  %vm414_vm11 = vcmp.eq.f32.partialorder %v2627_v12, 1.0  ;;  %v1618_v57 = vadd.f32 -0.72134733, %v1617_v18  ;;  %v2907_v25 = vsel %vm5181_vm7, %v2497_v49, %v2399_v2 }
 0x103   :  { %v419_v23 = vsel %vm416_vm0, nan, %v418_v36  ;;  %vm5178_vm0 = vcmp.eq.f32.partialorder %v2597_v14, 0  ;;  %v817_v62 = vadd.f32 %v816_v11, %v815_v41  ;;  %v1619_v52 = vmul.f32 %v1616_v46, %v1606_v19 }
 0x104   :  { %v420_v45 = vsel %vm5177_vm6, -inf, %v419_v23  ;;  %vm2899_vm2 = vmand %vm5174_vm12, %vm5178_vm0  ;;  %vm818_vm0 = vcmp.eq.f32.partialorder %v2683_v63, 1.0  ;;  %vm820_vm12 = vcmp.lt.f32.partialorder %v2683_v63, 0.0  ;;  %v1621_v19 = vmul.f32 %v2849_v48, %v1618_v57 }
 0x105   :  { %v421_v8 = vsel %vm414_vm11, 0.0, %v420_v45  ;;  %vm459_vm11 = vmor %vm2899_vm2, %vm2883_vm10  ;;  %v822_v2 = vsel %vm821_vm15, %v2683_v63, %v817_v62  ;;  %v1620_v49 = vadd.f32 1.442695, %v1619_v52  ;;  %v484_v10 = vand.u32 8388607, %v2890_v15 }
 0x106   :  { %v422_v35 = vmul.f32 %v421_v8, %v2328_v29  ;;  %vm819_vm6 = vcmp.eq.f32.partialorder %v2683_v63, 0.0  ;;  %v823_v5 = vsel %vm820_vm12, nan, %v822_v2  ;;  %vm5182_vm10 = vcmp.ge.f32.partialorder %v2830_v26, 1.4142135 }
 0x107   :  { %v1604_v16 = vsel %vm5182_vm10, %v1603_v39, %v1688_v38  ;;  %v460_v37 = vsel %vm459_vm11, 2139095040, %v5129_v51  ;;  %v824_v27 = vsel %vm819_vm6, -inf, %v823_v5  ;;  %v1622_v55 = vadd.f32 %v1621_v19, %v1620_v49  ;;  %vm5183_vm11 = vmmov %vm5181_vm7 }
 0x108   :  { %1995 = vpow2.f32 %v422_v35  ;;  %v485_v20 = vor.u32 8388608, %v484_v10  ;;  %v825_v31 = vsel %vm818_vm0, 0.0, %v824_v27  ;;  %v2933_v40 = vmul.f32 %v2863_v33, %v162_v30  ;;  %vm2942_vm0 = vmand %vm5183_vm11, %vm2372_vm4 }
 0x109   :  { %v826_v26 = vmul.f32 %v825_v31, %v2563_v44  ;;  %v1623_v38 = vmul.f32 %v2849_v48, %v1622_v55  ;;  %v1624_v60 = vcvt.s32.f32 %v1604_v16  ;;  %vm5186_vm12 = vcmp.eq.f32.partialorder %v2597_v14, 3212836864 }
 0x10a   :  { %v487_v36 = vand.u32 8388607, %v485_v20  ;;  %v462_v18 = vsel %vm5186_vm12, 1065353216, %v460_v37  ;;  %vm5187_vm6 = vcmp.lt.s32.totalorder %v2597_v14, 0  ;;  %vm5190_vm4 = vcmp.lt.f32.partialorder %v2638_v42, 0 }
 0x10b   :  { %vm2956_vm15 = vmand %vm5187_vm6, %vm2463_vm14  ;;  %1997 = vpow2.f32 %v826_v26  ;;  %v2964_v48 = vsel %vm5190_vm4, %v2839_v59, %v2752_v7  ;;  %v1625_v23 = vadd.f32 %v1624_v60, %v1623_v38  ;;  %vm5191_vm12 = vcmp.gt.f32.partialorder %v2683_v63, 1065353216 }
 0x10c   :  { %v2966_v32 = vor.u32 1065353216, %v487_v36  ;;  %vm5192_vm14 = vcmp.lt.f32.partialorder %v2563_v44, 0  ;;  %vm1628_vm2 = vcmp.lt.f32.partialorder %v2768_v24, 0.0  ;;  %vm1629_vm10 = vweird.f32 %v2768_v24 }
 0x10d   :  { %vm2974_vm6 = vmxor %vm5192_vm14, %vm5191_vm12  ;;  %v2984_v7 = vand.u32 2147483647, %v2933_v40  ;;  %vm5195_vm12 = vcmp.ne.f32.partialorder %v2328_v29, %v2328_v29  ;;  %vm5196_vm14 = vcmp.ne.f32.partialorder %v2597_v14, %v2597_v14  ;;  %v1630_v45 = vsel %vm1629_vm10, %v2768_v24, %v1625_v23 }
 0x10e   :  { %v1996_v41 = vpop.eup %1995  ;;  %vm2996_vm4 = vmor %vm5196_vm14, %vm5195_vm12  ;;  %v490_v39 = vmul.f32 0.5, %v2966_v32  ;;  %vm5200_vm9 = vcmp.eq.f32.partialorder %v2638_v42, 0  ;;  %vm1626_vm14 = vcmp.eq.f32.partialorder %v2768_v24, 1.0  ;;  %vm1627_vm10 = vcmp.eq.f32.partialorder %v2768_v24, 0.0 }
 0x10f   :  { %v451_v59 = vsel %vm2942_vm0, 2143289344, %v1996_v41  ;;  %vm5199_vm0 = vcmp.eq.f32.partialorder %v2597_v14, 0  ;;  %vm3011_vm12 = vmand %vm5201_vm13, %vm5200_vm9  ;;  %v1631_v9 = vsel %vm1628_vm2, nan, %v1630_v45  ;;  %vm1660_vm11 = vcmp.gt.f32.partialorder %v2768_v24, 1065353216 }
 0x110   :  { %v453_v57 = vsel %vm5199_vm0, %v2434_v13, %v451_v59  ;;  %v1632_v13 = vsel %vm1627_vm10, -inf, %v1631_v9  ;;  %vm5204_vm13 = vcmp.ge.f32.partialorder %v2966_v32, 1.4142135  ;;  %vm5205_vm9 = vcmp.eq.f32.partialorder %v2328_v29, 0 }
 0x111   :  { %v455_v62 = vxor.u32 2147483648, %v453_v57  ;;  %v491_v52 = vsel %vm5204_vm13, %v490_v39, %v2966_v32  ;;  %vm5206_vm1 = vcmp.eq.f32.partialorder %v2597_v14, 1065353216  ;;  %v1633_v2 = vsel %vm1626_vm14, 0.0, %v1632_v13  ;;  %v1998_v19 = vpop.eup %1997 }
 0x112   :  { %vm3030_vm2 = vmor %vm5206_vm1, %vm5205_vm9  ;;  %vm1656_vm7 = vcmp.lt.f32.partialorder %v2715_v43, 0  ;;  %vm1657_vm0 = vcmp.eq.f32.partialorder %v2715_v43, 0  ;;  %v3036_v49 = vadd.f32 -1.0, %v491_v52  ;;  %vm5209_vm10 = vcmp.lt.f32.partialorder %v2638_v42, 0 }
 0x113   :  { %v456_v10 = vsel %vm2956_vm15, %v455_v62, %v453_v57  ;;  %vm854_vm13 = vmand %vm5209_vm10, %vm2737_vm3  ;;  %v1634_v5 = vmul.f32 %v1633_v2, %v2326_v28  ;;  %v480_v16 = vand.u32 2139095040, %v2890_v15  ;;  %v888_v30 = vand.u32 8388607, %v2984_v7 }
 0x114   :  { %vm831_vm1 = vcmp.eq.f32.partialorder %v2563_v44, 1065353216  ;;  %vm5210_vm14 = vcmp.eq.f32.partialorder %v2339_v34, 2139095040  ;;  %v855_v27 = vsel %vm854_vm13, 2143289344, %v1998_v19  ;;  %vm5211_vm15 = vmor %vm3011_vm12, %vm2974_vm6  ;;  %vm5212_vm3 = vcmp.lt.f32.partialorder %v2326_v28, 0  ;;  %v3162_v19 = vpop.f32.mrf.mxu1 }
 0x115   :  { %v463_v37 = vsel %vm5210_vm14, %v462_v18, %v456_v10  ;;  %v864_v1 = vsel %vm5211_vm15, 2139095040, %v5129_v51  ;;  %vm3060_vm9 = vmxor %vm5212_vm3, %vm1660_vm11  ;;  %v3066_v34 = vmul.f32 %v3036_v49, %v3036_v49  ;;  %vm5215_vm10 = vcmp.eq.f32.partialorder %v2627_v12, 2139095040  ;;  %v5237_v12 = vld [vmem:[#allocation7_spill] sm:$0xff] }
 0x116   :  { %v468_v20 = vsel %vm5215_vm10, %v2907_v25, %v463_v37  ;;  %vm5216_vm6 = vcmp.eq.f32.partialorder %v2638_v42, 0  ;;  %vm5217_vm12 = vcmp.lt.s32.totalorder %v2638_v42, 0  ;;  %1999 = vpow2.f32 %v1634_v5  ;;  %vm5218_vm13 = vmmov %vm5212_vm3  ;;  %v5234_v37 = vld [vmem:[#allocation49_spill] sm:$0xff] }
 0x117   :  { %v857_v31 = vsel %vm5216_vm6, %v2782_v4, %v855_v27  ;;  %vm858_vm11 = vmand %vm5217_vm12, %vm2813_vm5  ;;  %v889_v26 = vor.u32 8388608, %v888_v30  ;;  %v472_v38 = vsel %vm2996_vm4, 2143289344, %v468_v20  ;;  %v496_v4 = vmul.f32 0.12621109, %v3066_v34  ;;  %v5233_v30 = vld [vmem:[#allocation41_spill] sm:$0xff] }
 0x118   :  { %v859_v60 = vxor.u32 2147483648, %v857_v31  ;;  %vm3084_vm14 = vmand %vm5218_vm13, %vm1657_vm0  ;;  %v498_v17 = vmul.f32 -0.20706727, %v3066_v34  ;;  %v474_v25 = vsel %vm3030_vm2, 1065353216, %v472_v38  ;;  %vm5221_vm5 = vcmp.eq.f32.partialorder %v2638_v42, 3212836864  ;;  %v5235_v38 = vld [vmem:[#allocation19_spill] sm:$0xff] }
 0x119   :  { %v866_v36 = vsel %vm5221_vm5, 1065353216, %v864_v1  ;;  %vm1671_vm4 = vmor %vm3084_vm14, %vm3060_vm9  ;;  %v481_v11 = vshrl.u32 %v480_v16, 23  ;;  %v891_v18 = vand.u32 8388607, %v889_v26  ;;  %vm5222_vm15 = vcmp.eq.f32.partialorder %v2328_v29, 1065353216 }
 0x11a   :  { %v475_v56 = vsel %vm5222_vm15, %v2597_v14, %v474_v25  ;;  %v860_v23 = vsel %vm858_vm11, %v859_v60, %v857_v31  ;;  %v497_v41 = vadd.f32 0.21545328, %v496_v4  ;;  %v499_v21 = vadd.f32 -0.23896284, %v498_v17 }
 0x11b   :  { %vm1682_vm2 = vcmp.ne.f32.partialorder %v2326_v28, %v2326_v28  ;;  %vm5223_vm3 = vcmp.eq.f32.partialorder %v2578_v0, 2139095040  ;;  %vm5224_vm10 = vcmp.ne.f32.partialorder %v2563_v44, %v2563_v44  ;;  %vm5225_vm6 = vcmp.ne.f32.partialorder %v2638_v42, %v2638_v42  ;;  %325 = vst [vmem:[%s4963_s4] sm:$0xff] %v475_v56 }
 0x11c   :  { %v867_v59 = vsel %vm5223_vm3, %v866_v36, %v860_v23  ;;  %vm3111_vm12 = vmor %vm5225_vm6, %vm5224_vm10  ;;  %vm1659_vm13 = vcmp.lt.s32.totalorder %v2715_v43, 0  ;;  %v3120_v29 = vor.u32 1065353216, %v891_v18  ;;  %vm1638_vm5 = vcmp.eq.f32.partialorder %v2326_v28, 0  ;;  %v2000_v57 = vpop.eup %1999 }
 0x11d   :  { %vm5228_vm3 = vcmp.eq.f32.partialorder %v2683_v63, 2139095040  ;;  %vm5229_vm10 = vcmp.eq.f32.partialorder %v2563_v44, 0  ;;  %vm5230_vm6 = vcmp.eq.f32.partialorder %v2638_v42, 1065353216  ;;  %v1672_v14 = vsel %vm1671_vm4, 2139095040, %v5129_v51 }
 0x11e   :  { %v872_v0 = vsel %vm5228_vm3, %v2964_v48, %v867_v59  ;;  %vm877_vm11 = vmor %vm5230_vm6, %vm5229_vm10  ;;  %v500_v45 = vmul.f32 %v497_v41, %v3066_v34  ;;  %v502_v39 = vmul.f32 %v499_v21, %v3066_v34  ;;  %vm5037_vm15 = vcmp.eq.f32.partialorder %v2773_v54, 2139095040 }
 0x11f   :  { %vm1847_vm3 = vcmp.ne.f32.partialorder %v2359_v47, %v2832_v61  ;;  %v876_v63 = vsel %vm3111_vm12, 2143289344, %v872_v0  ;;  %vm1662_vm10 = vmand %vm1656_vm7, %vm2609_vm8  ;;  %v577_v48 = vadd.s32 4294967169, %v481_v11  ;;  %vm893_vm9 = vcmp.ge.f32.partialorder %v3120_v29, 1.4142135  ;;  %v5238_v11 = vld [vmem:[#allocation57_spill] sm:$0xff] }
 0x120   :  { %v894_v8 = vmul.f32 0.5, %v3120_v29  ;;  %vm1639_vm14 = vcmp.eq.f32.partialorder %v2326_v28, 1065353216  ;;  %vm5040_vm4 = vcmp.lt.f32.partialorder %v2822_v6, 0  ;;  %v878_v9 = vsel %vm877_vm11, 1065353216, %v876_v63 }
 0x121   :  { %v1663_v62 = vsel %vm1662_vm10, 2143289344, %v2000_v57  ;;  %v501_v13 = vadd.f32 0.28795174, %v500_v45  ;;  %v503_v52 = vadd.f32 -0.3607037, %v502_v39  ;;  %v879_v3 = vsel %vm831_vm1, %v2638_v42, %v878_v9  ;;  %v5246_v57 = vld [vmem:[#allocation55_spill] sm:$0xff] }
 0x122   :  { %v1665_v35 = vsel %vm1657_vm0, %v2692_v22, %v1663_v62  ;;  %vm1673_vm8 = vcmp.eq.f32.partialorder %v2715_v43, 3212836864  ;;  %v895_v2 = vsel %vm893_vm9, %v894_v8, %v3120_v29  ;;  %329 = vst [vmem:[%s4963_s4 + $0x20] sm:$0xff] %v879_v3  ;;  %v5231_v22 = vld [vmem:[#allocation44_spill] sm:$0xff]  ;;  %v1679_v27 = vsel %vm1656_vm7, %v5234_v37, %v5233_v30 }
 0x123   :  { %v1667_v10 = vxor.u32 2147483648, %v1665_v35  ;;  %v504_v44 = vmul.f32 %v501_v13, %v3066_v34  ;;  %v506_v42 = vmul.f32 %v503_v52, %v3066_v34  ;;  %v3169_v5 = vadd.f32 -1.0, %v895_v2 }
 0x124   :  { %vm5232_vm0 = vnez %v5231_v22  ;;  %v1674_v16 = vsel %vm1673_vm8, 1065353216, %v1672_v14  ;;  %vm1681_vm12 = vcmp.ne.f32.partialorder %v2715_v43, %v2715_v43  ;;  %v492_v1 = vadd.s32 1, %v577_v48  ;;  %v3269_v22 = vpop.f32.mrf.mxu0 }
 0x125   :  { %vm1666_vm1 = vmand %vm1659_vm13, %vm5232_vm0  ;;  %v505_v20 = vadd.f32 0.48090908, %v504_v44  ;;  %v507_v31 = vadd.f32 -0.72134733, %v506_v42  ;;  %v3183_v26 = vmul.f32 %v3169_v5, %v3169_v5  ;;  %vm1661_vm11 = vcmp.eq.f32.partialorder %v2768_v24, 2139095040 }
 0x126   :  { %v1668_v55 = vsel %vm1666_vm1, %v1667_v10, %v1665_v35  ;;  %vm5236_vm13 = vcmp.eq.f32.partialorder %v5235_v38, 2139095040  ;;  %v3190_v4 = vmul.f32 %v2863_v33, %v5237_v12  ;;  %v884_v17 = vand.u32 2139095040, %v2984_v7  ;;  %vm1683_vm6 = vmor %vm1681_vm12, %vm1682_vm2  ;;  %v3259_v35 = vpop.f32.mrf.mxu1 }
 0x127   :  { %v1675_v60 = vsel %vm5236_vm13, %v1674_v16, %v1668_v55  ;;  %vm938_vm7 = vcmp.ne.f32.partialorder %v2822_v6, %v2855_v53  ;;  %v508_v36 = vmul.f32 %v505_v20, %v3066_v34  ;;  %v900_v24 = vmul.f32 0.12621109, %v3183_v26 }
 0x128   :  { %v1680_v25 = vsel %vm1661_vm11, %v1679_v27, %v1675_v60  ;;  %v944_v18 = vand.u32 1, %v5238_v11  ;;  %vm5239_vm10 = vcmp.eq.f32.partialorder %v2715_v43, 1065353216  ;;  %vm5240_vm0 = vcmp.ge.f32.partialorder %v2966_v32, 1.4142135 }
 0x129   :  { %v1684_v56 = vsel %vm1683_vm6, 2143289344, %v1680_v25  ;;  %vm1685_vm8 = vmor %vm5239_vm10, %vm1638_vm5  ;;  %v493_v23 = vsel %vm5240_vm0, %v492_v1, %v577_v48  ;;  %v902_v41 = vmul.f32 -0.20706727, %v3183_v26  ;;  %vm1849_vm1 = vcmp.lt.f32.partialorder %v2773_v54, 1266679808  ;;  %v5247_v48 = vld [vmem:[#allocation56_spill] sm:$0xff] }
 0x12a   :  { %v1686_v21 = vsel %vm1685_vm8, 1065353216, %v1684_v56  ;;  %v509_v59 = vadd.f32 1.442695, %v508_v36  ;;  %v510_v34 = vmul.f32 %v3036_v49, %v507_v31  ;;  %v901_v46 = vadd.f32 0.21545328, %v900_v24  ;;  %vm3230_vm5 = vmor %vm1847_vm3, %vm5037_vm15 }
 0x12b   :  { %vm5241_vm2 = vcmp.eq.f32.partialorder %v2826_v50, 2139095040  ;;  %v1687_v32 = vsel %vm1639_vm14, %v2715_v43, %v1686_v21  ;;  %v885_v14 = vshrl.u32 %v884_v17, 23  ;;  %v903_v45 = vadd.f32 -0.23896284, %v902_v41 }
 0x12c   :  { %vm3215_vm12 = vmor %vm938_vm7, %vm5241_vm2  ;;  %v3223_v39 = vand.u32 2147483647, %v3190_v4  ;;  %v1879_v63 = vxor.u32 2147483648, %v5246_v57  ;;  %vm940_vm11 = vcmp.lt.f32.partialorder %v2826_v50, 1266679808  ;;  %337 = vst [vmem:[%s4963_s4 + $0x60] sm:$0xff] %v1687_v32  ;;  %v511_v28 = vadd.f32 %v510_v34, %v509_v59  ;;  %v5258_v59 = vld [vmem:[#allocation8_spill] sm:$0xff] }
 0x12d   :  { %v904_v43 = vmul.f32 %v901_v46, %v3183_v26  ;;  %v5248_v8 = vand.u32 1, %v5247_v48  ;;  %v5251_v61 = vmov 2139095040   ;;  %v906_v13 = vmul.f32 %v903_v45, %v3183_v26  ;;  %vm946_vm13 = vmneg %vm3215_vm12 }
 0x12e   :  { %v3249_v62 = vsel %vm5040_vm4, 0, %v5251_v61  ;;  %v1696_v52 = vand.u32 8388607, %v3223_v39  ;;  %vm3253_vm3 = vcmp.eq.s32.totalorder %v944_v18, 1  ;;  %v512_v2 = vmul.f32 %v3036_v49, %v511_v28  ;;  %vm1855_vm7 = vmneg %vm3230_vm5  ;;  %v171_v9 = vpop.f32.mrf.mxu1 }
 0x12f   :  { %vm3242_vm14 = vcmp.eq.s32.totalorder %v5248_v8, 1  ;;  %v513_v10 = vcvt.s32.f32 %v493_v23  ;;  %v905_v44 = vadd.f32 0.28795174, %v904_v43  ;;  %v3267_v42 = vsel %vm5040_vm4, 2139095040, %v5129_v51  ;;  %vm947_vm10 = vmand %vm3253_vm3, %vm946_vm13 }
 0x130   :  { %v981_v16 = vadd.s32 4294967169, %v885_v14  ;;  %v907_v30 = vadd.f32 -0.3607037, %v906_v13  ;;  %v1697_v37 = vor.u32 8388608, %v1696_v52  ;;  %vm1856_vm6 = vmand %vm3242_vm14, %vm1855_vm7  ;;  %v970_v49 = vxor.u32 2147483648, %v3249_v62 }
 0x131   :  { %v3275_v27 = vand.u32 2147483647, %v3269_v22  ;;  %v514_v1 = vadd.f32 %v513_v10, %v512_v2  ;;  %v908_v55 = vmul.f32 %v905_v44, %v3183_v26  ;;  %vm5039_vm8 = vcmp.lt.f32.partialorder %v3269_v22, 0  ;;  %vm3291_vm7 = vmand %vm1849_vm1, %vm1856_vm6 }
 0x132   :  { %vm518_vm0 = vweird.f32 %v2890_v15  ;;  %v910_v20 = vmul.f32 %v907_v30, %v3183_v26  ;;  %v1699_v31 = vand.u32 8388607, %v1697_v37  ;;  %vm516_vm2 = vcmp.eq.f32.partialorder %v2890_v15, 0.0  ;;  %vm3299_vm3 = vmand %vm940_vm11, %vm947_vm10  ;;  %v5265_v30 = vld [vmem:[#allocation33_spill] sm:$0xff] }
 0x133   :  { %vm517_vm14 = vcmp.lt.f32.partialorder %v2890_v15, 0.0  ;;  %v519_v38 = vsel %vm518_vm0, %v2890_v15, %v514_v1  ;;  %v909_v60 = vadd.f32 0.48090908, %v908_v55  ;;  %v896_v25 = vadd.s32 1, %v981_v16 }
 0x134   :  { %v520_v17 = vsel %vm517_vm14, nan, %v519_v38  ;;  %v911_v36 = vadd.f32 -0.72134733, %v910_v20  ;;  %v3295_v24 = vor.u32 1065353216, %v1699_v31  ;;  %vm515_vm13 = vcmp.eq.f32.partialorder %v2890_v15, 1.0 }
 0x135   :  { %v521_v18 = vsel %vm516_vm2, -inf, %v520_v17  ;;  %vm549_vm0 = vcmp.gt.f32.partialorder %v2890_v15, 1065353216  ;;  %v912_v56 = vmul.f32 %v909_v60, %v3183_v26  ;;  %v1043_v23 = vfloor.f32 %v3275_v27  ;;  %v5268_v17 = vld [vmem:[#allocation23_spill] sm:$0xff] }
 0x136   :  { %v522_v41 = vsel %vm515_vm13, 0.0, %v521_v18  ;;  %vm5038_vm1 = vcmp.ge.f32.partialorder %v3295_v24, 1.4142135  ;;  %v1702_v21 = vmul.f32 0.5, %v3295_v24  ;;  %vm546_vm11 = vcmp.eq.f32.partialorder %v2876_v58, 0 }
 0x137   :  { %v523_v34 = vmul.f32 %v522_v41, %v5258_v59  ;;  %v913_v46 = vadd.f32 1.442695, %v912_v56  ;;  %v914_v32 = vmul.f32 %v3169_v5, %v911_v36  ;;  %v3315_v14 = vsel %vm3291_vm7, %v1879_v63, %v5246_v57 }
 0x138   :  { %v3320_v26 = vsel %vm3299_vm3, %v970_v49, %v3249_v62  ;;  %vm5259_vm6 = vcmp.lt.f32.partialorder %v5258_v59, 0  ;;  %v897_v28 = vsel %vm893_vm9, %v896_v25, %v981_v16  ;;  %v1703_v43 = vsel %vm5038_vm1, %v1702_v21, %v3295_v24  ;;  %v5267_v49 = vld [vmem:[#allocation35_spill] sm:$0xff] }
 0x139   :  { %vm3324_vm10 = vmxor %vm5259_vm6, %vm549_vm0  ;;  %v1036_v63 = vceil.f32 %v3269_v22  ;;  %2001 = vpow2.f32 %v523_v34  ;;  %v915_v48 = vadd.f32 %v914_v32, %v913_v46  ;;  %v3334_v8 = vadd.f32 -1.0, %v1703_v43  ;;  %v5270_v34 = vld [vmem:[#allocation30_spill] sm:$0xff] }
 0x13a   :  { %v1037_v13 = vfloor.f32 %v3269_v22  ;;  %v3337_v52 = vcvt.f32.s32 %v1043_v23  ;;  %v3342_v29 = vsel %vm5039_vm8, 0, %v5251_v61  ;;  %vm545_vm9 = vcmp.lt.f32.partialorder %v2876_v58, 0  ;;  %vm5262_vm2 = vmmov %vm5259_vm6 }
 0x13b   :  { %vm3349_vm14 = vmand %vm5262_vm2, %vm546_vm11  ;;  %vm527_vm13 = vcmp.eq.f32.partialorder %v5258_v59, 0  ;;  %v916_v2 = vmul.f32 %v3169_v5, %v915_v48  ;;  %v917_v10 = vcvt.s32.f32 %v897_v28  ;;  %v3363_v44 = vmul.f32 %v3334_v8, %v3334_v8  ;;  %v5266_v5 = vld [vmem:[#allocation24_spill] sm:$0xff] }
 0x13c   :  { %vm560_vm15 = vmor %vm3349_vm14, %vm3324_vm10  ;;  %vm548_vm2 = vcmp.lt.s32.totalorder %v2876_v58, 0  ;;  %vm562_vm1 = vcmp.eq.f32.partialorder %v2876_v58, 3212836864  ;;  %v1692_v16 = vand.u32 2139095040, %v3223_v39  ;;  %v3369_v37 = vmul.f32 %v5265_v30, %v171_v9  ;;  %v5271_v9 = vld [vmem:[#allocation32_spill] sm:$0xff] }
 0x13d   :  { %v568_v1 = vsel %vm545_vm9, %v5267_v49, %v5266_v5  ;;  %v918_v55 = vadd.f32 %v917_v10, %v916_v2  ;;  %v1708_v20 = vmul.f32 0.12621109, %v3363_v44  ;;  %v1710_v31 = vmul.f32 -0.20706727, %v3363_v44 }
 0x13e   :  { %v561_v38 = vsel %vm560_vm15, 2139095040, %v5129_v51  ;;  %vm919_vm14 = vcmp.eq.f32.partialorder %v2984_v7, 1.0  ;;  %vm921_vm0 = vcmp.lt.f32.partialorder %v2984_v7, 0.0  ;;  %vm922_vm8 = vweird.f32 %v2984_v7 }
 0x13f   :  { %v2002_v60 = vpop.eup %2001  ;;  %vm5269_vm10 = vnez %v5268_v17  ;;  %v923_v25 = vsel %vm922_vm8, %v2984_v7, %v918_v55  ;;  %v1709_v36 = vadd.f32 0.21545328, %v1708_v20  ;;  %v1711_v18 = vadd.f32 -0.23896284, %v1710_v31  ;;  %v3422_v20 = vpop.f32.mrf.mxu0  ;;  %v5276_v31 = vld [vmem:[#allocation10_spill] sm:$0xff] }
 0x140   :  { %vm551_vm4 = vmand %vm545_vm9, %vm5269_vm10  ;;  %v3390_v56 = vand.u32 2147483647, %v3369_v37  ;;  %vm528_vm15 = vcmp.eq.f32.partialorder %v5258_v59, 1065353216  ;;  %vm920_vm6 = vcmp.eq.f32.partialorder %v2984_v7, 0.0  ;;  %v924_v41 = vsel %vm921_vm0, nan, %v923_v25 }
 0x141   :  { %v552_v23 = vsel %vm551_vm4, 2143289344, %v2002_v60  ;;  %v1693_v21 = vshrl.u32 %v1692_v16, 23  ;;  %v925_v32 = vsel %vm920_vm6, -inf, %v924_v41  ;;  %v1712_v45 = vmul.f32 %v1709_v36, %v3363_v44 }
 0x142   :  { %v554_v46 = vsel %vm546_vm11, %v5270_v34, %v552_v23  ;;  %v1714_v28 = vmul.f32 %v1711_v18, %v3363_v44  ;;  %vm570_vm8 = vcmp.ne.f32.partialorder %v2876_v58, %v2876_v58  ;;  %v926_v48 = vsel %vm919_vm14, 0.0, %v925_v32 }
 0x143   :  { %v556_v43 = vxor.u32 2147483648, %v554_v46  ;;  %vm953_vm4 = vcmp.gt.f32.partialorder %v2984_v7, 1065353216  ;;  %vm5272_vm9 = vnez %v5271_v9  ;;  %v927_v3 = vmul.f32 %v926_v48, %v2822_v6 }
 0x144   :  { %vm555_vm0 = vmand %vm548_vm2, %vm5272_vm9  ;;  %v1713_v2 = vadd.f32 0.28795174, %v1712_v45  ;;  %v1715_v10 = vadd.f32 -0.3607037, %v1714_v28  ;;  %v1191_v16 = vand.u32 8388607, %v3390_v56 }
 0x145   :  { %vm931_vm11 = vcmp.eq.f32.partialorder %v2822_v6, 0  ;;  %v557_v30 = vsel %vm555_vm0, %v556_v43, %v554_v46  ;;  %v563_v5 = vsel %vm562_vm1, 1065353216, %v561_v38  ;;  %vm5273_vm6 = vcmp.eq.f32.partialorder %v2876_v58, 1065353216 }
 0x146   :  { %vm3417_vm10 = vmor %vm5273_vm6, %vm527_vm13  ;;  %vm950_vm2 = vcmp.eq.f32.partialorder %v2933_v40, 0  ;;  %v1789_v55 = vadd.s32 4294967169, %v1693_v21  ;;  %vm5277_vm14 = vcmp.eq.f32.partialorder %v5276_v31, 2139095040  ;;  %2003 = vpow2.f32 %v927_v3 }
 0x147   :  { %v564_v60 = vsel %vm5277_vm14, %v563_v5, %v557_v30  ;;  %vm5278_vm1 = vcmp.lt.f32.partialorder %v2822_v6, 0  ;;  %v1716_v17 = vmul.f32 %v1713_v2, %v3363_v44  ;;  %v1718_v25 = vmul.f32 %v1715_v10, %v3363_v44  ;;  %v287_v30 = vpop.f32.mrf.mxu3  ;;  %v3529_v31 = vpop.f32.mrf.mxu0 }
 0x148   :  { %vm3430_vm9 = vmxor %vm5278_vm1, %vm953_vm4  ;;  %vm975_vm13 = vcmp.ne.f32.partialorder %v2822_v6, %v2822_v6  ;;  %vm5281_vm0 = vcmp.lt.s32.totalorder %v3269_v22, 0  ;;  %vm5282_vm4 = vcmp.lt.f32.partialorder %v3269_v22, 0  ;;  %vm5283_vm6 = vcmp.eq.f32.partialorder %v2890_v15, 2139095040 }
 0x149   :  { %v3444_v36 = vsel %vm5281_vm0, %v1036_v63, %v1037_v13  ;;  %v3449_v18 = vsel %vm5282_vm4, 2139095040, %v5129_v51  ;;  %v569_v23 = vsel %vm5283_vm6, %v568_v1, %v564_v60  ;;  %vm5284_vm14 = vcmp.ne.f32.partialorder %v5258_v59, %v5258_v59 }
 0x14a   :  { %vm572_vm1 = vmor %vm570_vm8, %vm5284_vm14  ;;  %v1192_v41 = vor.u32 8388608, %v1191_v16  ;;  %v1071_v21 = vxor.u32 2147483648, %v3342_v29  ;;  %vm5285_vm0 = vcmp.lt.f32.partialorder %v2822_v6, 0  ;;  %v1717_v15 = vadd.f32 0.48090908, %v1716_v17  ;;  %v258_v16 = vpop.f32.mrf.mxu2 }
 0x14b   :  { %v573_v63 = vsel %vm572_vm1, 2143289344, %v569_v23  ;;  %vm3464_vm4 = vmand %vm5285_vm0, %vm950_vm2  ;;  %v1719_v1 = vadd.f32 -0.72134733, %v1718_v25  ;;  %vm949_vm6 = vcmp.lt.f32.partialorder %v2933_v40, 0  ;;  %v1704_v46 = vadd.s32 1, %v1789_v55  ;;  %v5291_v25 = vld [vmem:[#allocation6_spill] sm:$0xff] }
 0x14c   :  { %v575_v34 = vsel %vm3417_vm10, 1065353216, %v573_v63  ;;  %vm964_vm8 = vmor %vm3464_vm4, %vm3430_vm9  ;;  %v1194_v32 = vand.u32 8388607, %v1192_v41  ;;  %v1045_v45 = vand.u32 1, %v3337_v52  ;;  %vm951_vm14 = vcmp.eq.f32.partialorder %v2933_v40, 1065353216  ;;  %v2004_v9 = vpop.eup %2003 }
 0x14d   :  { %v576_v28 = vsel %vm528_vm15, %v2876_v58, %v575_v34  ;;  %v1720_v43 = vmul.f32 %v1717_v15, %v3363_v44  ;;  %vm952_vm10 = vcmp.lt.s32.totalorder %v2933_v40, 0  ;;  %vm966_vm0 = vcmp.eq.f32.partialorder %v2933_v40, 3212836864  ;;  %vm955_vm15 = vmand %vm949_vm6, %vm3215_vm12  ;;  %v5296_v15 = vld [vmem:[#allocation14_spill] sm:$0xff] }
 0x14e   :  { %326 = vst [vmem:[%s4963_s4 + $0x8] sm:$0xff] %v576_v28  ;;  %v3487_v48 = vor.u32 1065353216, %v1194_v32  ;;  %v965_v58 = vsel %vm964_vm8, 2139095040, %v5129_v51  ;;  %v972_v59 = vsel %vm949_vm6, %v3320_v26, %v3249_v62  ;;  %v1722_v3 = vmul.f32 %v3334_v8, %v1719_v1  ;;  %vm959_vm8 = vmand %vm952_vm10, %vm3299_vm3 }
 0x14f   :  { %v1721_v44 = vadd.f32 1.442695, %v1720_v43  ;;  %vm932_vm9 = vcmp.eq.f32.partialorder %v2822_v6, 1065353216  ;;  %v956_v2 = vsel %vm955_vm15, 2143289344, %v2004_v9  ;;  %vm5288_vm4 = vcmp.ge.f32.partialorder %v3295_v24, 1.4142135 }
 0x150   :  { %v1705_v10 = vsel %vm5288_vm4, %v1704_v46, %v1789_v55  ;;  %vm1196_vm1 = vcmp.ge.f32.partialorder %v3487_v48, 1.4142135  ;;  %v1197_v0 = vmul.f32 0.5, %v3487_v48  ;;  %v958_v5 = vsel %vm950_vm2, %v3267_v42, %v956_v2  ;;  %vm3524_vm2 = vmor %vm951_vm14, %vm931_vm11 }
 0x151   :  { %vm974_vm12 = vcmp.ne.f32.partialorder %v2933_v40, %v2933_v40  ;;  %v1723_v62 = vadd.f32 %v1722_v3, %v1721_v44  ;;  %vm1761_vm6 = vcmp.gt.f32.partialorder %v3223_v39, 1065353216  ;;  %v960_v24 = vxor.u32 2147483648, %v958_v5 }
 0x152   :  { %v967_v26 = vsel %vm966_vm0, 1065353216, %v965_v58  ;;  %vm1758_vm15 = vcmp.eq.f32.partialorder %v3190_v4, 0  ;;  %v1198_v42 = vsel %vm1196_vm1, %v1197_v0, %v3487_v48  ;;  %v1725_v55 = vcvt.s32.f32 %v1705_v10 }
 0x153   :  { %v1724_v11 = vmul.f32 %v3334_v8, %v1723_v62  ;;  %v3531_v60 = vadd.f32 -1.0, %v1198_v42  ;;  %v3533_v38 = vadd.f32 %v287_v30, %v258_v16  ;;  %v961_v17 = vsel %vm959_vm8, %v960_v24, %v958_v5  ;;  %vm976_vm8 = vmor %vm974_vm12, %vm975_vm13 }
 0x154   :  { %vm1727_vm3 = vcmp.eq.f32.partialorder %v3223_v39, 1.0  ;;  %vm1728_vm10 = vcmp.eq.f32.partialorder %v3223_v39, 0.0  ;;  %vm1757_vm0 = vcmp.lt.f32.partialorder %v3190_v4, 0  ;;  %vm5292_vm11 = vcmp.lt.f32.partialorder %v5291_v25, 0 }
 0x155   :  { %vm3542_vm14 = vmxor %vm5292_vm11, %vm1761_vm6  ;;  %v1187_v23 = vand.u32 2139095040, %v3390_v56  ;;  %vm5295_vm4 = vcmp.eq.f32.partialorder %v2826_v50, 2139095040  ;;  %v1726_v63 = vadd.f32 %v1725_v55, %v1724_v11  ;;  %v3557_v13 = vmul.f32 %v3531_v60, %v3531_v60 }
 0x156   :  { %v968_v41 = vsel %vm5295_vm4, %v967_v26, %v961_v17  ;;  %v3561_v1 = vmul.f32 %v3533_v38, %v5296_v15  ;;  %vm5297_vm6 = vcmp.eq.f32.partialorder %v2984_v7, 2139095040  ;;  %vm1729_vm11 = vcmp.lt.f32.partialorder %v3223_v39, 0.0 }
 0x157   :  { %v973_v50 = vsel %vm5297_vm6, %v972_v59, %v968_v41  ;;  %vm1730_vm4 = vweird.f32 %v3223_v39  ;;  %vm5298_vm13 = vcmp.lt.f32.partialorder %v5291_v25, 0  ;;  %v3576_v46 = vand.u32 2147483647, %v3529_v31  ;;  %v5301_v41 = vld [vmem:[#allocation46_spill] sm:$0xff] }
 0x158   :  { %vm3571_vm12 = vmand %vm5298_vm13, %vm1758_vm15  ;;  %v977_v32 = vsel %vm976_vm8, 2143289344, %v973_v50  ;;  %v1731_v28 = vsel %vm1730_vm4, %v3223_v39, %v1726_v63  ;;  %v1203_v7 = vmul.f32 0.12621109, %v3557_v13  ;;  %v1205_v43 = vmul.f32 -0.20706727, %v3557_v13  ;;  %v5302_v63 = vld [vmem:[#allocation53_spill] sm:$0xff] }
 0x159   :  { %vm1772_vm6 = vmor %vm3571_vm12, %vm3542_vm14  ;;  %v979_v9 = vsel %vm3524_vm2, 1065353216, %v977_v32  ;;  %v1732_v58 = vsel %vm1729_vm11, nan, %v1731_v28  ;;  %v1188_v59 = vshrl.u32 %v1187_v23, 23  ;;  %v3588_v44 = vand.u32 2147483647, %v3561_v1 }
 0x15a   :  { %v980_v3 = vsel %vm932_vm9, %v2933_v40, %v979_v9  ;;  %v1733_v2 = vsel %vm1728_vm10, -inf, %v1732_v58  ;;  %v1204_v10 = vadd.f32 0.21545328, %v1203_v7  ;;  %v1206_v0 = vadd.f32 -0.23896284, %v1205_v43 }
 0x15b   :  { %v1734_v16 = vsel %vm1727_vm3, 0.0, %v1733_v2  ;;  %v1773_v30 = vsel %vm1772_vm6, 2139095040, %v5129_v51  ;;  %330 = vst [vmem:[%s4963_s4 + $0x28] sm:$0xff] %v980_v3  ;;  %vm1237_vm2 = vcmp.lt.s32.totalorder %v3529_v31, 0  ;;  %v585_v5 = vand.u32 8388607, %v3588_v44 }
 0x15c   :  { %v1735_v6 = vmul.f32 %v1734_v16, %v5291_v25  ;;  %v1245_v40 = vfloor.f32 %v3576_v46  ;;  %v1207_v62 = vmul.f32 %v1204_v10, %v3557_v13  ;;  %v1209_v24 = vmul.f32 %v1206_v0, %v3557_v13  ;;  %v5303_v10 = vld [vmem:[#allocation43_spill] sm:$0xff] }
 0x15d   :  { %v1238_v26 = vceil.f32 %v3529_v31  ;;  %v1239_v42 = vfloor.f32 %v3529_v31  ;;  %v1284_v49 = vadd.s32 4294967169, %v1188_v59  ;;  %v586_v11 = vor.u32 8388608, %v585_v5 }
 0x15e   :  { %2005 = vpow2.f32 %v1735_v6  ;;  %v1208_v55 = vadd.f32 0.28795174, %v1207_v62  ;;  %v1210_v17 = vadd.f32 -0.3607037, %v1209_v24  ;;  %v3611_v8 = vmul.f32 %v3533_v38, %v3162_v19  ;;  %v5305_v24 = vld [vmem:[#allocation50_spill] sm:$0xff] }
 0x15f   :  { %vm1759_vm9 = vcmp.eq.f32.partialorder %v3190_v4, 1065353216  ;;  %vm1760_vm3 = vcmp.lt.s32.totalorder %v3190_v4, 0  ;;  %vm1774_vm10 = vcmp.eq.f32.partialorder %v3190_v4, 3212836864  ;;  %v588_v23 = vand.u32 8388607, %v586_v11 }
 0x160   :  { %v1780_v15 = vsel %vm1757_vm0, %v5302_v63, %v5301_v41  ;;  %v1246_v50 = vcvt.f32.s32 %v1245_v40  ;;  %v1211_v34 = vmul.f32 %v1208_v55, %v3557_v13  ;;  %v1213_v32 = vmul.f32 %v1210_v17, %v3557_v13  ;;  %v5306_v55 = vld [vmem:[#allocation52_spill] sm:$0xff] }
 0x161   :  { %vm1739_vm14 = vcmp.eq.f32.partialorder %v5291_v25, 0  ;;  %v1775_v19 = vsel %vm1774_vm10, 1065353216, %v1773_v30  ;;  %v1240_v28 = vsel %vm1237_vm2, %v1238_v26, %v1239_v42  ;;  %v1199_v7 = vadd.s32 1, %v1284_v49 }
 0x162   :  { %v3625_v43 = vor.u32 1065353216, %v588_v23  ;;  %v1212_v9 = vadd.f32 0.48090908, %v1211_v34  ;;  %v1214_v58 = vadd.f32 -0.72134733, %v1213_v32  ;;  %vm5041_vm13 = vcmp.eq.f32.partialorder %v3576_v46, 2139095040 }
 0x163   :  { %v3633_v59 = vand.u32 2147483647, %v3611_v8  ;;  %vm5043_vm12 = vcmp.lt.f32.partialorder %v3529_v31, 0  ;;  %vm5304_vm2 = vnez %v5303_v10  ;;  %vm1241_vm4 = vcmp.ne.f32.partialorder %v3529_v31, %v1240_v28  ;;  %v5312_v28 = vld [vmem:[#allocation28_spill] sm:$0xff] }
 0x164   :  { %vm5042_vm6 = vcmp.ge.f32.partialorder %v3625_v43, 1.4142135  ;;  %v591_v3 = vmul.f32 0.5, %v3625_v43  ;;  %v2006_v2 = vpop.eup %2005  ;;  %vm1763_vm10 = vmand %vm1757_vm0, %vm5304_vm2  ;;  %vm1243_vm8 = vcmp.lt.f32.partialorder %v3576_v46, 1266679808  ;;  %v1247_v0 = vand.u32 1, %v1246_v50 }
 0x165   :  { %v3648_v16 = vsel %vm5043_vm12, 0, %v5251_v61  ;;  %v1215_v30 = vmul.f32 %v1212_v9, %v3557_v13  ;;  %vm1740_vm11 = vcmp.eq.f32.partialorder %v5291_v25, 1065353216  ;;  %v1764_v5 = vsel %vm1763_vm10, 2143289344, %v2006_v2 }
 0x166   :  { %v1200_v6 = vsel %vm1196_vm1, %v1199_v7, %v1284_v49  ;;  %v1217_v40 = vmul.f32 %v3531_v60, %v1214_v58  ;;  %v592_v62 = vsel %vm5042_vm6, %v591_v3, %v3625_v43  ;;  %v1766_v26 = vsel %vm1758_vm15, %v5305_v24, %v1764_v5  ;;  %vm3675_vm15 = vmor %vm1241_vm4, %vm5041_vm13 }
 0x167   :  { %v1216_v42 = vadd.f32 1.442695, %v1215_v30  ;;  %v3661_v11 = vadd.f32 -1.0, %v592_v62  ;;  %v989_v13 = vand.u32 8388607, %v3633_v59  ;;  %vm5307_vm0 = vnez %v5306_v55  ;;  %vm1786_vm6 = vmor %vm1759_vm9, %vm1739_vm14 }
 0x168   :  { %vm1767_vm1 = vmand %vm1760_vm3, %vm5307_vm0  ;;  %v1768_v48 = vxor.u32 2147483648, %v1766_v26  ;;  %v1273_v49 = vxor.u32 2147483648, %v3648_v16  ;;  %v581_v17 = vand.u32 2139095040, %v3588_v44  ;;  %vm3679_vm10 = vcmp.eq.s32.totalorder %v1247_v0, 1 }
 0x169   :  { %v1218_v63 = vadd.f32 %v1217_v40, %v1216_v42  ;;  %v3685_v50 = vmul.f32 %v3661_v11, %v3661_v11  ;;  %v990_v34 = vor.u32 8388608, %v989_v13  ;;  %vm1249_vm3 = vmneg %vm3675_vm15  ;;  %v1220_v7 = vcvt.s32.f32 %v1200_v6  ;;  %v5317_v6 = vld [vmem:[#allocation3_spill] sm:$0xff] }
 0x16a   :  { %v1769_v32 = vsel %vm1767_vm1, %v1768_v48, %v1766_v26  ;;  %vm1224_vm0 = vcmp.lt.f32.partialorder %v3390_v56, 0.0  ;;  %vm5313_vm13 = vcmp.eq.f32.partialorder %v5312_v28, 2139095040  ;;  %vm5045_vm1 = vcmp.eq.f32.partialorder %v3275_v27, 2139095040  ;;  %vm1250_vm14 = vmand %vm3679_vm10, %vm1249_vm3 }
 0x16b   :  { %v1776_v9 = vsel %vm5313_vm13, %v1775_v19, %v1769_v32  ;;  %v1219_v58 = vmul.f32 %v3531_v60, %v1218_v63  ;;  %v597_v3 = vmul.f32 0.12621109, %v3685_v50  ;;  %v599_v2 = vmul.f32 -0.20706727, %v3685_v50 }
 0x16c   :  { %vm5314_vm2 = vcmp.eq.f32.partialorder %v3223_v39, 2139095040  ;;  %vm5315_vm12 = vcmp.ne.f32.partialorder %v5291_v25, %v5291_v25  ;;  %vm5316_vm13 = vcmp.ne.f32.partialorder %v3190_v4, %v3190_v4  ;;  %vm1225_vm9 = vweird.f32 %v3390_v56 }
 0x16d   :  { %v1781_v10 = vsel %vm5314_vm2, %v1780_v15, %v1776_v9  ;;  %vm1784_vm4 = vmor %vm5316_vm13, %vm5315_vm12  ;;  %v582_v19 = vshrl.u32 %v581_v17, 23  ;;  %v992_v60 = vand.u32 8388607, %v990_v34  ;;  %v1221_v39 = vadd.f32 %v1220_v7, %v1219_v58 }
 0x16e   :  { %v1785_v0 = vsel %vm1784_vm4, 2143289344, %v1781_v10  ;;  %v598_v15 = vadd.f32 0.21545328, %v597_v3  ;;  %v600_v30 = vadd.f32 -0.23896284, %v599_v2  ;;  %vm1256_vm2 = vcmp.gt.f32.partialorder %v3390_v56, 1065353216  ;;  %vm3733_vm12 = vmand %vm1243_vm8, %vm1250_vm14 }
 0x16f   :  { %v1787_v5 = vsel %vm1786_vm6, 1065353216, %v1785_v0  ;;  %v3718_v40 = vmul.f32 %v3533_v38, %v5317_v6  ;;  %v3720_v62 = vor.u32 1065353216, %v992_v60  ;;  %v1226_v26 = vsel %vm1225_vm9, %v3390_v56, %v1221_v39 }
 0x170   :  { %v1788_v24 = vsel %vm1740_vm11, %v3190_v4, %v1787_v5  ;;  %v601_v42 = vmul.f32 %v598_v15, %v3685_v50  ;;  %v603_v13 = vmul.f32 %v600_v30, %v3685_v50  ;;  %v1227_v25 = vsel %vm1224_vm0, nan, %v1226_v26 }
 0x171   :  { %338 = vst [vmem:[%s4963_s4 + $0x68] sm:$0xff] %v1788_v24  ;;  %v678_v4 = vadd.s32 4294967169, %v582_v19  ;;  %vm5044_vm11 = vcmp.ge.f32.partialorder %v3720_v62, 1.4142135  ;;  %v995_v48 = vmul.f32 0.5, %v3720_v62  ;;  %vm1222_vm6 = vcmp.eq.f32.partialorder %v3390_v56, 1.0 }
 0x172   :  { %vm5320_vm10 = vcmp.eq.f32.partialorder %v3390_v56, 0.0  ;;  %vm5321_vm8 = vcmp.lt.f32.partialorder %v3529_v31, 0  ;;  %v602_v63 = vadd.f32 0.28795174, %v601_v42  ;;  %v604_v34 = vadd.f32 -0.3607037, %v603_v13 }
 0x173   :  { %v1228_v17 = vsel %vm5320_vm10, -inf, %v1227_v25  ;;  %vm3748_vm3 = vmxor %vm5321_vm8, %vm1256_vm2  ;;  %vm1039_vm4 = vcmp.ne.f32.partialorder %v3269_v22, %v3444_v36  ;;  %v3755_v32 = vand.u32 2147483647, %v3422_v20  ;;  %v996_v28 = vsel %vm5044_vm11, %v995_v48, %v3720_v62 }
 0x174   :  { %v1229_v7 = vsel %vm1222_vm6, 0.0, %v1228_v17  ;;  %vm3762_vm0 = vcmp.eq.s32.totalorder %v1045_v45, 1  ;;  %vm5326_vm13 = vcmp.eq.f32.partialorder %v3369_v37, 0  ;;  %vm5327_vm9 = vmmov %vm5321_vm8  ;;  %v605_v2 = vmul.f32 %v602_v63, %v3685_v50 }
 0x175   :  { %v1230_v58 = vmul.f32 %v1229_v7, %v3529_v31  ;;  %vm3771_vm14 = vmand %vm5327_vm9, %vm5326_vm13  ;;  %v607_v10 = vmul.f32 %v604_v34, %v3685_v50  ;;  %v3777_v19 = vadd.f32 -1.0, %v996_v28  ;;  %v1274_v52 = vsel %vm3733_vm12, %v1273_v49, %v3648_v16  ;;  %v5333_v34 = vld [vmem:[#allocation11_spill] sm:$0xff] }
 0x176   :  { %vm1252_vm2 = vcmp.lt.f32.partialorder %v3369_v37, 0  ;;  %vm1267_vm6 = vmor %vm3771_vm14, %vm3748_vm3  ;;  %v593_v45 = vadd.s32 1, %v678_v4  ;;  %v3788_v60 = vand.u32 2147483647, %v3718_v40  ;;  %v606_v0 = vadd.f32 0.48090908, %v605_v2 }
 0x177   :  { %2007 = vpow2.f32 %v1230_v58  ;;  %v608_v39 = vadd.f32 -0.72134733, %v607_v10  ;;  %v3792_v15 = vmul.f32 %v3777_v19, %v3777_v19  ;;  %vm1041_vm10 = vcmp.lt.f32.partialorder %v3275_v27, 1266679808  ;;  %vm3807_vm9 = vmor %vm1039_vm4, %vm5045_vm1 }
 0x178   :  { %v1260_v49 = vsel %vm5321_vm8, 2139095040, %v5129_v51  ;;  %vm1255_vm13 = vcmp.lt.s32.totalorder %v3369_v37, 0  ;;  %vm1269_vm3 = vcmp.eq.f32.partialorder %v3369_v37, 3212836864  ;;  %v985_v30 = vand.u32 2139095040, %v3633_v59  ;;  %vm1047_vm11 = vmneg %vm3807_vm9 }
 0x179   :  { %v1393_v5 = vand.u32 8388607, %v3788_v60  ;;  %v1268_v24 = vsel %vm1267_vm6, 2139095040, %v5129_v51  ;;  %v609_v26 = vmul.f32 %v606_v0, %v3685_v50  ;;  %v1001_v42 = vmul.f32 0.12621109, %v3792_v15 }
 0x17a   :  { %v1003_v13 = vmul.f32 -0.20706727, %v3792_v15  ;;  %v1275_v36 = vsel %vm1252_vm2, %v1274_v52, %v3648_v16  ;;  %vm5332_vm1 = vcmp.ge.f32.partialorder %v3625_v43, 1.4142135  ;;  %vm1257_vm6 = vcmp.eq.f32.partialorder %v3390_v56, 2139095040 }
 0x17b   :  { %v594_v25 = vsel %vm5332_vm1, %v593_v45, %v678_v4  ;;  %v1394_v48 = vor.u32 8388608, %v1393_v5  ;;  %v610_v50 = vadd.f32 1.442695, %v609_v26  ;;  %v611_v17 = vmul.f32 %v3661_v11, %v608_v39  ;;  %vm1258_vm1 = vmand %vm1252_vm2, %vm3675_vm15 }
 0x17c   :  { %v1002_v41 = vadd.f32 0.21545328, %v1001_v42  ;;  %v1004_v63 = vadd.f32 -0.23896284, %v1003_v13  ;;  %v1270_v16 = vsel %vm1269_vm3, 1065353216, %v1268_v24  ;;  %v3834_v7 = vmul.f32 %v3533_v38, %v5333_v34  ;;  %vm1048_vm15 = vmand %vm3762_vm0, %vm1047_vm11 }
 0x17d   :  { %v986_v43 = vshrl.u32 %v985_v30, 23  ;;  %v1396_v4 = vand.u32 8388607, %v1394_v48  ;;  %v2008_v28 = vpop.eup %2007  ;;  %v612_v58 = vadd.f32 %v611_v17, %v610_v50  ;;  %vm616_vm8 = vcmp.eq.f32.partialorder %v3588_v44, 1.0  ;;  %vm3871_vm3 = vmand %vm1041_vm10, %vm1048_vm15 }
 0x17e   :  { %v1005_v3 = vmul.f32 %v1002_v41, %v3792_v15  ;;  %v1007_v2 = vmul.f32 %v1004_v63, %v3792_v15  ;;  %v1259_v10 = vsel %vm1258_vm1, 2143289344, %v2008_v28  ;;  %v614_v38 = vcvt.s32.f32 %v594_v25 }
 0x17f   :  { %vm617_vm4 = vcmp.eq.f32.partialorder %v3588_v44, 0.0  ;;  %v3845_v52 = vor.u32 1065353216, %v1396_v4  ;;  %vm5334_vm14 = vcmp.eq.f32.partialorder %v3369_v37, 0  ;;  %v613_v45 = vmul.f32 %v3661_v11, %v612_v58  ;;  %v5342_v4 = vld [vmem:[#allocation12_spill] sm:$0xff] }
 0x180   :  { %v1261_v23 = vsel %vm5334_vm14, %v1260_v49, %v1259_v10  ;;  %v1006_v0 = vadd.f32 0.28795174, %v1005_v3  ;;  %v1008_v39 = vadd.f32 -0.3607037, %v1007_v2  ;;  %v1082_v5 = vadd.s32 4294967169, %v986_v43  ;;  %vm1262_vm14 = vmand %vm1255_vm13, %vm3733_vm12 }
 0x181   :  { %v1263_v30 = vxor.u32 2147483648, %v1261_v23  ;;  %vm5046_vm2 = vcmp.ge.f32.partialorder %v3845_v52, 1.4142135  ;;  %v1399_v24 = vmul.f32 0.5, %v3845_v52  ;;  %v615_v11 = vadd.f32 %v614_v38, %v613_v45 }
 0x182   :  { %vm618_vm1 = vcmp.lt.f32.partialorder %v3588_v44, 0.0  ;;  %v1009_v49 = vmul.f32 %v1006_v0, %v3792_v15  ;;  %v1011_v26 = vmul.f32 %v1008_v39, %v3792_v15  ;;  %vm619_vm11 = vweird.f32 %v3588_v44 }
 0x183   :  { %v1264_v9 = vsel %vm1262_vm14, %v1263_v30, %v1261_v23  ;;  %vm650_vm0 = vcmp.gt.f32.partialorder %v3588_v44, 1065353216  ;;  %v1400_v42 = vsel %vm5046_vm2, %v1399_v24, %v3845_v52  ;;  %vm5337_vm12 = vcmp.eq.f32.partialorder %v3576_v46, 2139095040 }
 0x184   :  { %v1271_v13 = vsel %vm5337_vm12, %v1270_v16, %v1264_v9  ;;  %v620_v25 = vsel %vm619_vm11, %v3588_v44, %v615_v11  ;;  %v1010_v48 = vadd.f32 0.48090908, %v1009_v49  ;;  %v1012_v50 = vadd.f32 -0.72134733, %v1011_v26 }
 0x185   :  { %v1276_v17 = vsel %vm1257_vm6, %v1275_v36, %v1271_v13  ;;  %vm5338_vm13 = vcmp.ne.f32.partialorder %v3529_v31, %v3529_v31  ;;  %vm5339_vm14 = vcmp.ne.f32.partialorder %v3369_v37, %v3369_v37  ;;  %v621_v41 = vsel %vm618_vm1, nan, %v620_v25 }
 0x186   :  { %vm1279_vm10 = vmor %vm5339_vm14, %vm5338_vm13  ;;  %v997_v63 = vadd.s32 1, %v1082_v5  ;;  %v3886_v34 = vadd.f32 -1.0, %v1400_v42  ;;  %vm5340_vm15 = vcmp.eq.f32.partialorder %v3529_v31, 0  ;;  %vm5341_vm11 = vcmp.eq.f32.partialorder %v3369_v37, 1065353216 }
 0x187   :  { %v1280_v46 = vsel %vm1279_vm10, 2143289344, %v1276_v17  ;;  %vm1281_vm12 = vmor %vm5341_vm11, %vm5340_vm15  ;;  %v622_v56 = vsel %vm617_vm4, -inf, %v621_v41  ;;  %vm647_vm6 = vcmp.eq.f32.partialorder %v3561_v1, 0  ;;  %v1013_v36 = vmul.f32 %v1010_v48, %v3792_v15  ;;  %v5351_v41 = vld [vmem:[#allocation31_spill] sm:$0xff] }
 0x188   :  { %v1282_v16 = vsel %vm1281_vm12, 1065353216, %v1280_v46  ;;  %v623_v43 = vsel %vm616_vm8, 0.0, %v622_v56  ;;  %vm5343_vm1 = vcmp.lt.f32.partialorder %v5342_v4, 0  ;;  %v1389_v58 = vand.u32 2139095040, %v3788_v60 }
 0x189   :  { %vm3902_vm13 = vmxor %vm5343_vm1, %vm650_vm0  ;;  %v3909_v3 = vmul.f32 %v3886_v34, %v3886_v34  ;;  %vm5346_vm4 = vcmp.eq.f32.partialorder %v3529_v31, 1065353216  ;;  %v624_v2 = vmul.f32 %v623_v43, %v5342_v4  ;;  %v1014_v10 = vadd.f32 1.442695, %v1013_v36 }
 0x18a   :  { %v1283_v15 = vsel %vm5346_vm4, %v3369_v37, %v1282_v16  ;;  %v1015_v38 = vmul.f32 %v3777_v19, %v1012_v50  ;;  %v3921_v23 = vsel %vm3871_vm3, %v1071_v21, %v3342_v29  ;;  %vm5347_vm8 = vmmov %vm5343_vm1  ;;  %vm5350_vm14 = vcmp.ge.f32.partialorder %v3720_v62, 1.4142135 }
 0x18b   :  { %333 = vst [vmem:[%s4963_s4 + $0x40] sm:$0xff] %v1283_v15  ;;  %vm3930_vm0 = vmand %vm5347_vm8, %vm647_vm6  ;;  %v998_v31 = vsel %vm5350_vm14, %v997_v63, %v1082_v5  ;;  %v1405_v45 = vmul.f32 0.12621109, %v3909_v3  ;;  %v1407_v21 = vmul.f32 -0.20706727, %v3909_v3  ;;  %v1144_v0 = vfloor.f32 %v3755_v32 }
 0x18c   :  { %2009 = vpow2.f32 %v624_v2  ;;  %vm661_vm10 = vmor %vm3930_vm0, %vm3902_vm13  ;;  %v1016_v39 = vadd.f32 %v1015_v38, %v1014_v10  ;;  %v3944_v30 = vand.u32 2147483647, %v3834_v7  ;;  %vm646_vm15 = vcmp.lt.f32.partialorder %v3561_v1, 0 }
 0x18d   :  { %vm649_vm11 = vcmp.lt.s32.totalorder %v3561_v1, 0  ;;  %v1406_v62 = vadd.f32 0.21545328, %v1405_v45  ;;  %v1408_v5 = vadd.f32 -0.23896284, %v1407_v21  ;;  %vm663_vm12 = vcmp.eq.f32.partialorder %v3561_v1, 3212836864 }
 0x18e   :  { %v1017_v24 = vmul.f32 %v3777_v19, %v1016_v39  ;;  %v1018_v11 = vcvt.s32.f32 %v998_v31  ;;  %v1390_v49 = vshrl.u32 %v1389_v58, 23  ;;  %v1797_v26 = vand.u32 8388607, %v3944_v30  ;;  %v5353_v58 = vld [vmem:[#allocation40_spill] sm:$0xff]  ;;  %v5357_v39 = vld [vmem:[#allocation39_spill] sm:$0xff] }
 0x18f   :  { %v662_v9 = vsel %vm661_vm10, 2139095040, %v5129_v51  ;;  %v1409_v42 = vmul.f32 %v1406_v62, %v3909_v3  ;;  %v1411_v13 = vmul.f32 %v1408_v5, %v3909_v3  ;;  %vm1020_vm8 = vcmp.eq.f32.partialorder %v3633_v59, 1.0 }
 0x190   :  { %v1019_v25 = vadd.f32 %v1018_v11, %v1017_v24  ;;  %vm1021_vm0 = vcmp.eq.f32.partialorder %v3633_v59, 0.0  ;;  %v1798_v19 = vor.u32 8388608, %v1797_v26  ;;  %vm1022_vm10 = vcmp.lt.f32.partialorder %v3633_v59, 0.0 }
 0x191   :  { %vm1023_vm2 = vweird.f32 %v3633_v59  ;;  %v1410_v48 = vadd.f32 0.28795174, %v1409_v42  ;;  %v1412_v50 = vadd.f32 -0.3607037, %v1411_v13  ;;  %vm5352_vm1 = vnez %v5351_v41  ;;  %v5362_v13 = vld [vmem:[#allocation13_spill] sm:$0xff] }
 0x192   :  { %v2010_v17 = vpop.eup %2009  ;;  %vm652_vm13 = vmand %vm646_vm15, %vm5352_vm1  ;;  %v1024_v63 = vsel %vm1023_vm2, %v3633_v59, %v1019_v25  ;;  %vm1054_vm4 = vcmp.gt.f32.partialorder %v3633_v59, 1065353216  ;;  %v1486_v46 = vadd.s32 4294967169, %v1390_v49  ;;  %v1800_v56 = vand.u32 8388607, %v1798_v19  ;;  %v5365_v19 = vld [vmem:[#allocation47_spill] sm:$0xff] }
 0x193   :  { %vm629_vm14 = vcmp.eq.f32.partialorder %v5342_v4, 1065353216  ;;  %v653_v36 = vsel %vm652_vm13, 2143289344, %v2010_v17  ;;  %v1025_v16 = vsel %vm1022_vm10, nan, %v1024_v63  ;;  %v1413_v43 = vmul.f32 %v1410_v48, %v3909_v3 }
 0x194   :  { %v1415_v28 = vmul.f32 %v1412_v50, %v3909_v3  ;;  %v655_v15 = vsel %vm647_vm6, %v5353_v58, %v653_v36  ;;  %v1026_v2 = vsel %vm1021_vm0, -inf, %v1025_v16  ;;  %vm1051_vm2 = vcmp.eq.f32.partialorder %v3611_v8, 0 }
 0x195   :  { %v3979_v10 = vor.u32 1065353216, %v1800_v56  ;;  %v657_v38 = vxor.u32 2147483648, %v655_v15  ;;  %v1027_v37 = vsel %vm1020_vm8, 0.0, %v1026_v2  ;;  %vm5354_vm1 = vcmp.lt.f32.partialorder %v3269_v22, 0 }
 0x196   :  { %vm3985_vm13 = vmxor %vm5354_vm1, %vm1054_vm4  ;;  %v1414_v45 = vadd.f32 0.48090908, %v1413_v43  ;;  %v1416_v21 = vadd.f32 -0.72134733, %v1415_v28  ;;  %vm5358_vm6 = vnez %v5357_v39  ;;  %v1028_v62 = vmul.f32 %v1027_v37, %v3269_v22 }
 0x197   :  { %vm656_vm0 = vmand %vm649_vm11, %vm5358_vm6  ;;  %v1401_v5 = vadd.s32 1, %v1486_v46  ;;  %vm5047_vm10 = vcmp.ge.f32.partialorder %v3979_v10, 1.4142135  ;;  %v1803_v24 = vmul.f32 0.5, %v3979_v10  ;;  %vm651_vm8 = vcmp.eq.f32.partialorder %v3588_v44, 2139095040  ;;  %v5364_v44 = vld [vmem:[#allocation38_spill] sm:$0xff] }
 0x198   :  { %v658_v11 = vsel %vm656_vm0, %v657_v38, %v655_v15  ;;  %v664_v49 = vsel %vm663_vm12, 1065353216, %v662_v9  ;;  %vm5359_vm4 = vmmov %vm5354_vm1  ;;  %v1417_v42 = vmul.f32 %v1414_v45, %v3909_v3  ;;  %vm5363_vm6 = vcmp.eq.f32.partialorder %v5362_v13, 2139095040  ;;  %v174_v13 = vpop.f32.mrf.mxu1 }
 0x199   :  { %vm4003_vm1 = vmand %vm5359_vm4, %vm1051_vm2  ;;  %v665_v25 = vsel %vm5363_vm6, %v664_v49, %v658_v11  ;;  %v669_v9 = vsel %vm646_vm15, %v5365_v19, %v5364_v44  ;;  %2011 = vpow2.f32 %v1028_v62  ;;  %v1804_v3 = vsel %vm5047_vm10, %v1803_v24, %v3979_v10  ;;  %v5388_v49 = vld [vmem:[#allocation22_spill] sm:$0xff] }
 0x19a   :  { %vm1065_vm12 = vmor %vm4003_vm1, %vm3985_vm13  ;;  %v670_v48 = vsel %vm651_vm8, %v669_v9, %v665_v25  ;;  %vm5366_vm0 = vcmp.ne.f32.partialorder %v5342_v4, %v5342_v4  ;;  %vm5367_vm4 = vcmp.ne.f32.partialorder %v3561_v1, %v3561_v1  ;;  %v1418_v50 = vadd.f32 1.442695, %v1417_v42  ;;  %v5375_v9 = vld [vmem:[#allocation2_spill] sm:$0xff] }
 0x19b   :  { %vm673_vm6 = vmor %vm5367_vm4, %vm5366_vm0  ;;  %v1419_v17 = vmul.f32 %v3886_v34, %v1416_v21  ;;  %v4029_v41 = vadd.f32 -1.0, %v1804_v3  ;;  %vm1076_vm15 = vcmp.ne.f32.partialorder %v3269_v22, %v3269_v22  ;;  %vm5368_vm13 = vcmp.eq.f32.partialorder %v5342_v4, 0 }
 0x19c   :  { %v674_v63 = vsel %vm673_vm6, 2143289344, %v670_v48  ;;  %vm5369_vm8 = vcmp.eq.f32.partialorder %v3561_v1, 1065353216  ;;  %vm1050_vm10 = vcmp.lt.f32.partialorder %v3611_v8, 0  ;;  %vm1052_vm11 = vcmp.eq.f32.partialorder %v3611_v8, 1065353216 }
 0x19d   :  { %vm675_vm1 = vmor %vm5369_vm8, %vm5368_vm13  ;;  %vm5370_vm0 = vcmp.ge.f32.partialorder %v3845_v52, 1.4142135  ;;  %v1066_v16 = vsel %vm1065_vm12, 2139095040, %v5129_v51  ;;  %v1420_v43 = vadd.f32 %v1419_v17, %v1418_v50  ;;  %v4044_v28 = vmul.f32 %v4029_v41, %v4029_v41 }
 0x19e   :  { %v1402_v56 = vsel %vm5370_vm0, %v1401_v5, %v1486_v46  ;;  %v676_v36 = vsel %vm675_vm1, 1065353216, %v674_v63  ;;  %vm1053_vm4 = vcmp.lt.s32.totalorder %v3611_v8, 0  ;;  %vm1067_vm6 = vcmp.eq.f32.partialorder %v3611_v8, 3212836864  ;;  %vm1056_vm12 = vmand %vm1050_vm10, %vm3807_vm9 }
 0x19f   :  { %v677_v58 = vsel %vm629_vm14, %v3561_v1, %v676_v36  ;;  %v1793_v15 = vand.u32 2139095040, %v3944_v30  ;;  %v1421_v52 = vmul.f32 %v3886_v34, %v1420_v43  ;;  %v1422_v46 = vcvt.s32.f32 %v1402_v56  ;;  %v2012_v37 = vpop.eup %2011  ;;  %vm1060_vm9 = vmand %vm1053_vm4, %vm3871_vm3 }
 0x1a0   :  { %v1809_v2 = vmul.f32 0.12621109, %v4044_v28  ;;  %v1811_v38 = vmul.f32 -0.20706727, %v4044_v28  ;;  %327 = vst [vmem:[%s4963_s4 + $0x10] sm:$0xff] %v677_v58  ;;  %vm1055_vm14 = vcmp.eq.f32.partialorder %v3633_v59, 2139095040  ;;  %vm1427_vm1 = vweird.f32 %v3788_v60 }
 0x1a1   :  { %v1068_v1 = vsel %vm1067_vm6, 1065353216, %v1066_v16  ;;  %vm1426_vm8 = vcmp.lt.f32.partialorder %v3788_v60, 0.0  ;;  %v1057_v34 = vsel %vm1056_vm12, 2143289344, %v2012_v37  ;;  %v1423_v4 = vadd.f32 %v1422_v46, %v1421_v52  ;;  %v290_v52 = vpop.f32.mrf.mxu3 }
 0x1a2   :  { %v1810_v31 = vadd.f32 0.21545328, %v1809_v2  ;;  %v1812_v45 = vadd.f32 -0.23896284, %v1811_v38  ;;  %v1059_v21 = vsel %vm1051_vm2, %v3449_v18, %v1057_v34  ;;  %vm1458_vm0 = vcmp.gt.f32.partialorder %v3788_v60, 1065353216 }
 0x1a3   :  { %v1794_v6 = vshrl.u32 %v1793_v15, 23  ;;  %v1061_v39 = vxor.u32 2147483648, %v1059_v21  ;;  %v1428_v62 = vsel %vm1427_vm1, %v3788_v60, %v1423_v4  ;;  %vm1424_vm6 = vcmp.eq.f32.partialorder %v3788_v60, 1.0 }
 0x1a4   :  { %v1813_v5 = vmul.f32 %v1810_v31, %v4044_v28  ;;  %v1815_v24 = vmul.f32 %v1812_v45, %v4044_v28  ;;  %vm1425_vm2 = vcmp.eq.f32.partialorder %v3788_v60, 0.0  ;;  %v1429_v18 = vsel %vm1426_vm8, nan, %v1428_v62  ;;  %v5387_v62 = vld [vmem:[#allocation29_spill] sm:$0xff] }
 0x1a5   :  { %vm1455_vm12 = vcmp.eq.f32.partialorder %v3718_v40, 0  ;;  %v1062_v11 = vsel %vm1060_vm9, %v1061_v39, %v1059_v21  ;;  %vm5371_vm1 = vcmp.eq.f32.partialorder %v3269_v22, 0  ;;  %v1430_v55 = vsel %vm1425_vm2, -inf, %v1429_v18  ;;  %v5384_v21 = vld [vmem:[#allocation15_spill] sm:$0xff]  ;;  %v5386_v39 = vld [vmem:[#allocation16_spill] sm:$0xff]  ;;  %v4185_v18 = vpop.f32.mrf.mxu0 }
 0x1a6   :  { %vm4087_vm13 = vmor %vm1052_vm11, %vm5371_vm1  ;;  %v1814_v26 = vadd.f32 0.28795174, %v1813_v5  ;;  %v1816_v42 = vadd.f32 -0.3607037, %v1815_v24  ;;  %vm5374_vm3 = vcmp.eq.f32.partialorder %v3275_v27, 2139095040  ;;  %v1073_v44 = vsel %vm1050_vm10, %v3921_v23, %v3342_v29 }
 0x1a7   :  { %v1069_v25 = vsel %vm5374_vm3, %v1068_v1, %v1062_v11  ;;  %v1431_v19 = vsel %vm1424_vm6, 0.0, %v1430_v55  ;;  %vm5376_vm11 = vcmp.lt.f32.partialorder %v5375_v9, 0  ;;  %v1890_v48 = vadd.s32 4294967169, %v1794_v6 }
 0x1a8   :  { %vm4101_vm4 = vmxor %vm5376_vm11, %vm1458_vm0  ;;  %v1074_v50 = vsel %vm1055_vm14, %v1073_v44, %v1069_v25  ;;  %vm5379_vm8 = vcmp.ne.f32.partialorder %v3611_v8, %v3611_v8  ;;  %v1432_v27 = vmul.f32 %v1431_v19, %v5375_v9  ;;  %v1817_v29 = vmul.f32 %v1814_v26, %v4044_v28 }
 0x1a9   :  { %vm1077_vm10 = vmor %vm5379_vm8, %vm1076_vm15  ;;  %v1819_v23 = vmul.f32 %v1816_v42, %v4044_v28  ;;  %vm1033_vm0 = vcmp.eq.f32.partialorder %v3269_v22, 1065353216  ;;  %vm5048_vm9 = vcmp.lt.f32.partialorder %v3422_v20, 0  ;;  %v4127_v63 = vmul.f32 %v2863_v33, %v174_v13  ;;  %v261_v33 = vpop.f32.mrf.mxu2  ;;  %v5389_v13 = vld [vmem:[#allocation27_spill] sm:$0xff] }
 0x1aa   :  { %v1078_v17 = vsel %vm1077_vm10, 2143289344, %v1074_v50  ;;  %vm5380_vm14 = vmmov %vm5376_vm11  ;;  %2013 = vpow2.f32 %v1432_v27  ;;  %v1818_v22 = vadd.f32 0.48090908, %v1817_v29  ;;  %v1137_v16 = vceil.f32 %v3422_v20  ;;  %v5392_v29 = vld [vmem:[#allocation9_spill] sm:$0xff] }
 0x1ab   :  { %vm4122_vm6 = vmand %vm5380_vm14, %vm1455_vm12  ;;  %v1080_v56 = vsel %vm4087_vm13, 1065353216, %v1078_v17  ;;  %v1820_v36 = vadd.f32 -0.72134733, %v1819_v23  ;;  %v1805_v58 = vadd.s32 1, %v1890_v48  ;;  %v4138_v15 = vand.u32 2147483647, %v4127_v63 }
 0x1ac   :  { %vm1469_vm15 = vmor %vm4122_vm6, %vm4101_vm4  ;;  %v1081_v43 = vsel %vm1033_vm0, %v3611_v8, %v1080_v56  ;;  %v1138_v46 = vfloor.f32 %v3422_v20  ;;  %v4143_v2 = vcvt.f32.s32 %v1144_v0  ;;  %v4148_v38 = vsel %vm5048_vm9, 0, %v5251_v61 }
 0x1ad   :  { %v1821_v37 = vmul.f32 %v1818_v22, %v4044_v28  ;;  %331 = vst [vmem:[%s4963_s4 + $0x30] sm:$0xff] %v1081_v43  ;;  %vm1436_vm13 = vcmp.eq.f32.partialorder %v5375_v9, 0  ;;  %vm1454_vm2 = vcmp.lt.f32.partialorder %v3718_v40, 0  ;;  %vm1456_vm1 = vcmp.eq.f32.partialorder %v3718_v40, 1065353216 }
 0x1ae   :  { %v1470_v8 = vsel %vm1469_vm15, 2139095040, %v5129_v51  ;;  %v1292_v0 = vand.u32 8388607, %v4138_v15  ;;  %vm1480_vm3 = vcmp.ne.f32.partialorder %v5375_v9, %v5375_v9  ;;  %vm1457_vm11 = vcmp.lt.s32.totalorder %v3718_v40, 0 }
 0x1af   :  { %v1822_v28 = vadd.f32 1.442695, %v1821_v37  ;;  %v1823_v1 = vmul.f32 %v4029_v41, %v1820_v36  ;;  %v4168_v34 = vadd.f32 %v290_v52, %v261_v33  ;;  %vm1459_vm10 = vcmp.eq.f32.partialorder %v3788_v60, 2139095040 }
 0x1b0   :  { %vm1471_vm0 = vcmp.eq.f32.partialorder %v3718_v40, 3212836864  ;;  %vm5383_vm4 = vcmp.ge.f32.partialorder %v3979_v10, 1.4142135  ;;  %v1293_v31 = vor.u32 8388608, %v1292_v0  ;;  %v2014_v45 = vpop.eup %2013  ;;  %vm5385_vm14 = vnez %v5384_v21 }
 0x1b1   :  { %v1806_v4 = vsel %vm5383_vm4, %v1805_v58, %v1890_v48  ;;  %vm1460_vm6 = vmand %vm1454_vm2, %vm5385_vm14  ;;  %v1472_v6 = vsel %vm1471_vm0, 1065353216, %v1470_v8  ;;  %v1477_v5 = vsel %vm1454_vm2, %v5387_v62, %v5386_v39  ;;  %vm1479_vm15 = vcmp.ne.f32.partialorder %v3718_v40, %v3718_v40  ;;  %v5390_v48 = vld [vmem:[#allocation26_spill] sm:$0xff] }
 0x1b2   :  { %v1824_v24 = vadd.f32 %v1823_v1, %v1822_v28  ;;  %v1461_v10 = vsel %vm1460_vm6, 2143289344, %v2014_v45  ;;  %v1295_v11 = vand.u32 8388607, %v1293_v31  ;;  %v1826_v42 = vcvt.s32.f32 %v1806_v4 }
 0x1b3   :  { %v1463_v55 = vsel %vm1455_vm12, %v5388_v49, %v1461_v10  ;;  %v4196_v25 = vmul.f32 %v4168_v34, %v5389_v13  ;;  %v4200_v19 = vand.u32 2147483647, %v4185_v18  ;;  %vm5391_vm0 = vnez %v5390_v48 }
 0x1b4   :  { %v1825_v26 = vmul.f32 %v4029_v41, %v1824_v24  ;;  %v1465_v44 = vxor.u32 2147483648, %v1463_v55  ;;  %v4202_v3 = vor.u32 1065353216, %v1295_v11  ;;  %vm1464_vm12 = vmand %vm1457_vm11, %vm5391_vm0  ;;  %vm1830_vm14 = vcmp.lt.f32.partialorder %v3944_v30, 0.0 }
 0x1b5   :  { %vm1831_vm6 = vweird.f32 %v3944_v30  ;;  %vm1862_vm8 = vcmp.gt.f32.partialorder %v3944_v30, 1065353216  ;;  %vm1338_vm4 = vcmp.lt.s32.totalorder %v4185_v18, 0  ;;  %vm5393_vm2 = vcmp.eq.f32.partialorder %v5392_v29, 2139095040  ;;  %vm1483_vm11 = vmor %vm1456_vm1, %vm1436_vm13 }
 0x1b6   :  { %v1827_v50 = vadd.f32 %v1826_v42, %v1825_v26  ;;  %v1466_v41 = vsel %vm1464_vm12, %v1465_v44, %v1463_v55  ;;  %vm1297_vm9 = vcmp.ge.f32.partialorder %v4202_v3, 1.4142135  ;;  %v1298_v27 = vmul.f32 0.5, %v4202_v3 }
 0x1b7   :  { %v1473_v23 = vsel %vm5393_vm2, %v1472_v6, %v1466_v41  ;;  %v1339_v59 = vceil.f32 %v4185_v18  ;;  %v4223_v56 = vand.u32 2147483647, %v4196_v25  ;;  %vm1481_vm2 = vmor %vm1479_vm15, %vm1480_vm3  ;;  %v1346_v43 = vfloor.f32 %v4200_v19 }
 0x1b8   :  { %v1832_v17 = vsel %vm1831_vm6, %v3944_v30, %v1827_v50  ;;  %v1478_v22 = vsel %vm1459_vm10, %v1477_v5, %v1473_v23  ;;  %v1299_v58 = vsel %vm1297_vm9, %v1298_v27, %v4202_v3  ;;  %vm5394_vm13 = vcmp.eq.f32.partialorder %v3944_v30, 0.0 }
 0x1b9   :  { %v1833_v36 = vsel %vm1830_vm14, nan, %v1832_v17  ;;  %v1482_v33 = vsel %vm1481_vm2, 2143289344, %v1478_v22  ;;  %vm5395_vm1 = vcmp.lt.f32.partialorder %v2359_v47, 0  ;;  %v1340_v37 = vfloor.f32 %v4185_v18 }
 0x1ba   :  { %v1834_v52 = vsel %vm5394_vm13, -inf, %v1833_v36  ;;  %vm4243_vm10 = vmxor %vm5395_vm1, %vm1862_vm8  ;;  %v4248_v8 = vadd.f32 -1.0, %v1299_v58  ;;  %v1484_v0 = vsel %vm1483_vm11, 1065353216, %v1482_v33  ;;  %vm5398_vm3 = vcmp.eq.f32.partialorder %v3944_v30, 1.0  ;;  %v5409_v58 = vld [vmem:[#allocation54_spill] sm:$0xff] }
 0x1bb   :  { %v1835_v28 = vsel %vm5398_vm3, 0.0, %v1834_v52  ;;  %v1288_v1 = vand.u32 2139095040, %v4138_v15  ;;  %v686_v4 = vand.u32 8388607, %v4223_v56  ;;  %vm5399_vm8 = vcmp.lt.s32.totalorder %v3422_v20, 0  ;;  %vm5402_vm12 = vmmov %vm5395_vm1 }
 0x1bc   :  { %v4260_v31 = vsel %vm5399_vm8, %v1137_v16, %v1138_v46  ;;  %vm5400_vm15 = vcmp.eq.f32.partialorder %v5375_v9, 1065353216  ;;  %v1836_v21 = vmul.f32 %v1835_v28, %v2359_v47  ;;  %vm5401_vm0 = vcmp.eq.f32.partialorder %v3834_v7, 0 }
 0x1bd   :  { %v1485_v45 = vsel %vm5400_vm15, %v3718_v40, %v1484_v0  ;;  %vm4270_vm14 = vmand %vm5402_vm12, %vm5401_vm0  ;;  %v4276_v39 = vmul.f32 %v4248_v8, %v4248_v8  ;;  %v1146_v16 = vand.u32 1, %v4143_v2  ;;  %v1172_v46 = vxor.u32 2147483648, %v4148_v38 }
 0x1be   :  { %vm1873_vm6 = vmor %vm4270_vm14, %vm4243_vm10  ;;  %335 = vst [vmem:[%s4963_s4 + $0x50] sm:$0xff] %v1485_v45  ;;  %v1347_v40 = vcvt.f32.s32 %v1346_v43  ;;  %v687_v9 = vor.u32 8388608, %v686_v4  ;;  %2015 = vpow2.f32 %v1836_v21  ;;  %v1341_v62 = vsel %vm1338_vm4, %v1339_v59, %v1340_v37 }
 0x1bf   :  { %v1304_v5 = vmul.f32 0.12621109, %v4276_v39  ;;  %v1306_v24 = vmul.f32 -0.20706727, %v4276_v39  ;;  %vm1858_vm11 = vcmp.lt.f32.partialorder %v3834_v7, 0  ;;  %v1289_v10 = vshrl.u32 %v1288_v1, 23 }
 0x1c0   :  { %v4294_v11 = vmul.f32 %v4168_v34, %v3259_v35  ;;  %v689_v49 = vand.u32 8388607, %v687_v9  ;;  %vm1861_vm2 = vcmp.lt.s32.totalorder %v3834_v7, 0  ;;  %v1874_v55 = vsel %vm1873_vm6, 2139095040, %v5129_v51  ;;  %vm4314_vm0 = vmand %vm1858_vm11, %vm3230_vm5 }
 0x1c1   :  { %v1305_v26 = vadd.f32 0.21545328, %v1304_v5  ;;  %v1307_v42 = vadd.f32 -0.23896284, %v1306_v24  ;;  %vm1884_vm4 = vcmp.ne.f32.partialorder %v2359_v47, %v2359_v47  ;;  %vm5049_vm1 = vcmp.eq.f32.partialorder %v4200_v19, 2139095040 }
 0x1c2   :  { %vm1342_vm10 = vcmp.ne.f32.partialorder %v4185_v18, %v1341_v62  ;;  %v1348_v13 = vand.u32 1, %v1347_v40  ;;  %v4303_v44 = vor.u32 1065353216, %v689_v49  ;;  %vm1863_vm3 = vcmp.eq.f32.partialorder %v3944_v30, 2139095040 }
 0x1c3   :  { %vm1875_vm8 = vcmp.eq.f32.partialorder %v3834_v7, 3212836864  ;;  %v1308_v35 = vmul.f32 %v1305_v26, %v4276_v39  ;;  %v1310_v48 = vmul.f32 %v1307_v42, %v4276_v39  ;;  %v1385_v41 = vadd.s32 4294967169, %v1289_v10  ;;  %vm4329_vm5 = vmor %vm1342_vm10, %vm5049_vm1 }
 0x1c4   :  { %vm691_vm12 = vcmp.ge.f32.partialorder %v4303_v44, 1.4142135  ;;  %v692_v27 = vmul.f32 0.5, %v4303_v44  ;;  %v4321_v29 = vand.u32 2147483647, %v4294_v11  ;;  %v2016_v23 = vpop.eup %2015  ;;  %v1876_v17 = vsel %vm1875_vm8, 1065353216, %v1874_v55  ;;  %vm1350_vm15 = vmneg %vm4329_vm5 }
 0x1c5   :  { %vm1883_vm14 = vcmp.ne.f32.partialorder %v3834_v7, %v3834_v7  ;;  %v1309_v59 = vadd.f32 0.28795174, %v1308_v35  ;;  %v1311_v22 = vadd.f32 -0.3607037, %v1310_v48  ;;  %vm1841_vm6 = vcmp.eq.f32.partialorder %v2359_v47, 1065353216 }
 0x1c6   :  { %v1865_v36 = vsel %vm4314_vm0, 2143289344, %v2016_v23  ;;  %vm1337_vm8 = vcmp.lt.f32.partialorder %v4185_v18, 0  ;;  %vm1349_vm13 = vcmp.eq.s32.totalorder %v1348_v13, 1  ;;  %v693_v43 = vsel %vm691_vm12, %v692_v27, %v4303_v44  ;;  %vm1868_vm0 = vmand %vm1861_vm2, %vm3291_vm7 }
 0x1c7   :  { %vm5410_vm10 = vcmp.eq.f32.partialorder %v3834_v7, 0  ;;  %v1312_v52 = vmul.f32 %v1309_v59, %v4276_v39  ;;  %v1314_v60 = vmul.f32 %v1311_v22, %v4276_v39  ;;  %v4347_v37 = vadd.f32 -1.0, %v693_v43  ;;  %vm1351_vm1 = vmand %vm1349_vm13, %vm1350_vm15  ;;  %v5416_v43 = vld [vmem:[#allocation5_spill] sm:$0xff] }
 0x1c8   :  { %v1867_v33 = vsel %vm5410_vm10, %v5409_v58, %v1865_v36  ;;  %v4356_v28 = vsel %vm1337_vm8, 0, %v5251_v61  ;;  %v1300_v1 = vadd.s32 1, %v1385_v41  ;;  %v1090_v4 = vand.u32 8388607, %v4321_v29  ;;  %vm1885_vm2 = vmor %vm1883_vm14, %vm1884_vm4 }
 0x1c9   :  { %v1869_v0 = vxor.u32 2147483648, %v1867_v33  ;;  %vm1344_vm10 = vcmp.lt.f32.partialorder %v4200_v19, 1266679808  ;;  %v1313_v45 = vadd.f32 0.48090908, %v1312_v52  ;;  %v1315_v21 = vadd.f32 -0.72134733, %v1314_v60 }
 0x1ca   :  { %v4362_v12 = vmul.f32 %v4347_v37, %v4347_v37  ;;  %v1881_v40 = vsel %vm1858_vm11, %v3315_v14, %v5246_v57  ;;  %v682_v9 = vand.u32 2139095040, %v4223_v56  ;;  %v1091_v62 = vor.u32 8388608, %v1090_v4  ;;  %vm4384_vm11 = vmand %vm1344_vm10, %vm1351_vm1 }
 0x1cb   :  { %v1870_v6 = vsel %vm1868_vm0, %v1869_v0, %v1867_v33  ;;  %vm5411_vm7 = vcmp.eq.f32.partialorder %v2773_v54, 2139095040  ;;  %v1374_v24 = vxor.u32 2147483648, %v4356_v28  ;;  %v1316_v10 = vmul.f32 %v1313_v45, %v4276_v39 }
 0x1cc   :  { %v1877_v5 = vsel %vm5411_vm7, %v1876_v17, %v1870_v6  ;;  %v698_v49 = vmul.f32 0.12621109, %v4362_v12  ;;  %v1301_v14 = vsel %vm1297_vm9, %v1300_v1, %v1385_v41  ;;  %v700_v55 = vmul.f32 -0.20706727, %v4362_v12 }
 0x1cd   :  { %v1882_v57 = vsel %vm1863_vm3, %v1881_v40, %v1877_v5  ;;  %v1093_v26 = vand.u32 8388607, %v1091_v62  ;;  %vm5414_vm4 = vcmp.eq.f32.partialorder %v2359_v47, 0  ;;  %vm5415_vm13 = vcmp.eq.f32.partialorder %v3834_v7, 1065353216 }
 0x1ce   :  { %v1886_v42 = vsel %vm1885_vm2, 2143289344, %v1882_v57  ;;  %vm1887_vm15 = vmor %vm5415_vm13, %vm5414_vm4  ;;  %v1317_v30 = vadd.f32 1.442695, %v1316_v10  ;;  %v1318_v39 = vmul.f32 %v4248_v8, %v1315_v21  ;;  %v699_v13 = vadd.f32 0.21545328, %v698_v49 }
 0x1cf   :  { %v1888_v35 = vsel %vm1887_vm15, 1065353216, %v1886_v42  ;;  %v683_v48 = vshrl.u32 %v682_v9, 23  ;;  %v701_v50 = vadd.f32 -0.23896284, %v700_v55  ;;  %v4396_v27 = vor.u32 1065353216, %v1093_v26 }
 0x1d0   :  { %v1889_v3 = vsel %vm1841_vm6, %v3834_v7, %v1888_v35  ;;  %v1375_v41 = vsel %vm4384_vm11, %v1374_v24, %v4356_v28  ;;  %v1319_v23 = vadd.f32 %v1318_v39, %v1317_v30  ;;  %v702_v17 = vmul.f32 %v699_v13, %v4362_v12 }
 0x1d1   :  { %339 = vst [vmem:[%s4963_s4 + $0x70] sm:$0xff] %v1889_v3  ;;  %vm1354_vm9 = vcmp.eq.f32.partialorder %v4127_v63, 0  ;;  %v704_v59 = vmul.f32 %v701_v50, %v4362_v12  ;;  %vm1095_vm1 = vcmp.ge.f32.partialorder %v4396_v27, 1.4142135  ;;  %v1096_v47 = vmul.f32 0.5, %v4396_v27 }
 0x1d2   :  { %v1320_v7 = vmul.f32 %v4248_v8, %v1319_v23  ;;  %v1321_v22 = vcvt.s32.f32 %v1301_v14  ;;  %vm1357_vm3 = vcmp.gt.f32.partialorder %v4138_v15, 1065353216  ;;  %v703_v36 = vadd.f32 0.28795174, %v702_v17  ;;  %vm4449_vm15 = vmand %vm1337_vm8, %vm1354_vm9 }
 0x1d3   :  { %v4416_v58 = vmul.f32 %v4168_v34, %v5416_v43  ;;  %v779_v33 = vadd.s32 4294967169, %v683_v48  ;;  %v705_v52 = vadd.f32 -0.3607037, %v704_v59  ;;  %v1097_v60 = vsel %vm1095_vm1, %v1096_v47, %v4396_v27  ;;  %vm4430_vm7 = vmxor %vm1337_vm8, %vm1357_vm3 }
 0x1d4   :  { %v1322_v0 = vadd.f32 %v1321_v22, %v1320_v7  ;;  %vm1323_vm14 = vcmp.eq.f32.partialorder %v4138_v15, 1.0  ;;  %vm1353_vm6 = vcmp.lt.f32.partialorder %v4127_v63, 0  ;;  %v706_v8 = vmul.f32 %v703_v36, %v4362_v12  ;;  %vm1368_vm3 = vmor %vm4449_vm15, %vm4430_vm7 }
 0x1d5   :  { %v4424_v1 = vadd.f32 -1.0, %v1097_v60  ;;  %vm1324_vm0 = vcmp.eq.f32.partialorder %v4138_v15, 0.0  ;;  %vm1326_vm10 = vweird.f32 %v4138_v15  ;;  %v708_v45 = vmul.f32 %v705_v52, %v4362_v12 }
 0x1d6   :  { %v1086_v21 = vand.u32 2139095040, %v4321_v29  ;;  %vm5050_vm2 = vcmp.eq.f32.partialorder %v3755_v32, 2139095040  ;;  %vm1140_vm4 = vcmp.ne.f32.partialorder %v3422_v20, %v4260_v31  ;;  %vm1325_vm13 = vcmp.lt.f32.partialorder %v4138_v15, 0.0 }
 0x1d7   :  { %v1327_v6 = vsel %vm1326_vm10, %v4138_v15, %v1322_v0  ;;  %v707_v40 = vadd.f32 0.48090908, %v706_v8  ;;  %v4443_v9 = vmul.f32 %v4424_v1, %v4424_v1  ;;  %v694_v24 = vadd.s32 1, %v779_v33 }
 0x1d8   :  { %v1328_v62 = vsel %vm1325_vm13, nan, %v1327_v6  ;;  %v709_v10 = vadd.f32 -0.72134733, %v708_v45  ;;  %v4454_v49 = vand.u32 2147483647, %v4416_v58  ;;  %v1087_v39 = vshrl.u32 %v1086_v21, 23 }
 0x1d9   :  { %v1329_v57 = vsel %vm1324_vm0, -inf, %v1328_v62  ;;  %v710_v14 = vmul.f32 %v707_v40, %v4362_v12  ;;  %v1102_v55 = vmul.f32 0.12621109, %v4443_v9  ;;  %v1104_v26 = vmul.f32 -0.20706727, %v4443_v9 }
 0x1da   :  { %v1330_v42 = vsel %vm1323_vm14, 0.0, %v1329_v57  ;;  %v712_v30 = vmul.f32 %v4347_v37, %v709_v10  ;;  %v1494_v13 = vand.u32 8388607, %v4454_v49  ;;  %v1361_v12 = vsel %vm1337_vm8, 2139095040, %v5129_v51 }
 0x1db   :  { %v1331_v35 = vmul.f32 %v1330_v42, %v4185_v18  ;;  %v711_v48 = vadd.f32 1.442695, %v710_v14  ;;  %v1103_v50 = vadd.f32 0.21545328, %v1102_v55  ;;  %v1105_v3 = vadd.f32 -0.23896284, %v1104_v26 }
 0x1dc   :  { %v1369_v23 = vsel %vm1368_vm3, 2139095040, %v5129_v51  ;;  %v695_v17 = vsel %vm691_vm12, %v694_v24, %v779_v33  ;;  %v1495_v59 = vor.u32 8388608, %v1494_v13  ;;  %vm1356_vm14 = vcmp.lt.s32.totalorder %v4127_v63, 0 }
 0x1dd   :  { %2017 = vpow2.f32 %v1331_v35  ;;  %v713_v47 = vadd.f32 %v712_v30, %v711_v48  ;;  %v1106_v7 = vmul.f32 %v1103_v50, %v4443_v9  ;;  %v1108_v22 = vmul.f32 %v1105_v3, %v4443_v9  ;;  %v5426_v30 = vld [vmem:[#allocation20_spill] sm:$0xff] }
 0x1de   :  { %vm1370_vm0 = vcmp.eq.f32.partialorder %v4127_v63, 3212836864  ;;  %v4483_v36 = vsel %vm1353_vm6, %v1375_v41, %v4356_v28  ;;  %v1183_v43 = vadd.s32 4294967169, %v1087_v39  ;;  %v1497_v52 = vand.u32 8388607, %v1495_v59  ;;  %v5421_v28 = vld [vmem:[#allocation18_spill] sm:$0xff] }
 0x1df   :  { %v714_v44 = vmul.f32 %v4347_v37, %v713_v47  ;;  %v715_v33 = vcvt.s32.f32 %v695_v17  ;;  %v1107_v60 = vadd.f32 0.28795174, %v1106_v7  ;;  %v1109_v0 = vadd.f32 -0.3607037, %v1108_v22 }
 0x1e0   :  { %v1371_v8 = vsel %vm1370_vm0, 1065353216, %v1369_v23  ;;  %v4494_v41 = vmul.f32 %v4168_v34, %v5421_v28  ;;  %vm717_vm13 = vcmp.eq.f32.partialorder %v4223_v56, 1.0  ;;  %v4497_v4 = vor.u32 1065353216, %v1497_v52  ;;  %vm4508_vm0 = vmor %vm1140_vm4, %vm5050_vm2 }
 0x1e1   :  { %v716_v45 = vadd.f32 %v715_v33, %v714_v44  ;;  %vm719_vm3 = vcmp.lt.f32.partialorder %v4223_v56, 0.0  ;;  %v1110_v37 = vmul.f32 %v1107_v60, %v4443_v9  ;;  %v1112_v21 = vmul.f32 %v1109_v0, %v4443_v9  ;;  %vm1359_vm4 = vmand %vm1353_vm6, %vm4329_vm5 }
 0x1e2   :  { %vm720_vm7 = vweird.f32 %v4223_v56  ;;  %v1098_v6 = vadd.s32 1, %v1183_v43  ;;  %vm5051_vm10 = vcmp.ge.f32.partialorder %v4497_v4, 1.4142135  ;;  %v1500_v40 = vmul.f32 0.5, %v4497_v4  ;;  %vm1148_vm5 = vmneg %vm4508_vm0 }
 0x1e3   :  { %v2018_v62 = vpop.eup %2017  ;;  %vm4517_vm8 = vcmp.eq.s32.totalorder %v1146_v16, 1  ;;  %v721_v31 = vsel %vm720_vm7, %v4223_v56, %v716_v45  ;;  %vm751_vm2 = vcmp.gt.f32.partialorder %v4223_v56, 1065353216  ;;  %v1111_v24 = vadd.f32 0.48090908, %v1110_v37 }
 0x1e4   :  { %v1113_v10 = vadd.f32 -0.72134733, %v1112_v21  ;;  %vm1336_vm12 = vcmp.eq.f32.partialorder %v4185_v18, 1065353216  ;;  %v1360_v57 = vsel %vm1359_vm4, 2143289344, %v2018_v62  ;;  %vm718_vm15 = vcmp.eq.f32.partialorder %v4223_v56, 0.0  ;;  %v5441_v21 = vld [vmem:[#allocation37_spill] sm:$0xff] }
 0x1e5   :  { %v722_v2 = vsel %vm719_vm3, nan, %v721_v31  ;;  %v1501_v16 = vsel %vm5051_vm10, %v1500_v40, %v4497_v4  ;;  %v1362_v53 = vsel %vm1354_vm9, %v1361_v12, %v1360_v57  ;;  %vm5052_vm6 = vcmp.eq.f32.partialorder %v4196_v25, 0  ;;  %v5444_v57 = vld [vmem:[#allocation48_spill] sm:$0xff] }
 0x1e6   :  { %v723_v14 = vsel %vm718_vm15, -inf, %v722_v2  ;;  %v1114_v55 = vmul.f32 %v1111_v24, %v4443_v9  ;;  %v1364_v26 = vxor.u32 2147483648, %v1362_v53  ;;  %vm5427_vm7 = vcmp.lt.f32.partialorder %v5426_v30, 0 }
 0x1e7   :  { %v724_v42 = vsel %vm717_vm13, 0.0, %v723_v14  ;;  %vm4546_vm3 = vmxor %vm5427_vm7, %vm751_vm2  ;;  %v1099_v13 = vsel %vm1095_vm1, %v1098_v6, %v1183_v43  ;;  %v4552_v35 = vadd.f32 -1.0, %v1501_v16  ;;  %v1116_v50 = vmul.f32 %v4424_v1, %v1113_v10 }
 0x1e8   :  { %vm1363_vm13 = vmand %vm1356_vm14, %vm4384_vm11  ;;  %v725_v9 = vmul.f32 %v724_v42, %v5426_v30  ;;  %v1115_v48 = vadd.f32 1.442695, %v1114_v55  ;;  %v1490_v3 = vand.u32 2139095040, %v4454_v49  ;;  %vm5433_vm11 = vcmp.eq.f32.partialorder %v4200_v19, 2139095040 }
 0x1e9   :  { %v1365_v12 = vsel %vm1363_vm13, %v1364_v26, %v1362_v53  ;;  %vm5430_vm15 = vmmov %vm5427_vm7  ;;  %v4574_v27 = vmul.f32 %v4552_v35, %v4552_v35  ;;  %v4585_v59 = vand.u32 2147483647, %v4494_v41  ;;  %vm5434_vm13 = vcmp.eq.f32.partialorder %v4138_v15, 2139095040 }
 0x1ea   :  { %vm4568_vm4 = vmand %vm5430_vm15, %vm5052_vm6  ;;  %v1372_v23 = vsel %vm5433_vm11, %v1371_v8, %v1365_v12  ;;  %2019 = vpow2.f32 %v725_v9  ;;  %v1117_v17 = vadd.f32 %v1116_v50, %v1115_v48  ;;  %vm5435_vm15 = vcmp.ne.f32.partialorder %v4185_v18, %v4185_v18 }
 0x1eb   :  { %vm762_vm14 = vmor %vm4568_vm4, %vm4546_vm3  ;;  %v1377_v47 = vsel %vm5434_vm13, %v4483_v36, %v1372_v23  ;;  %vm5436_vm11 = vcmp.ne.f32.partialorder %v4127_v63, %v4127_v63  ;;  %v1119_v19 = vcvt.s32.f32 %v1099_v13  ;;  %v1506_v7 = vmul.f32 0.12621109, %v4574_v27  ;;  %v5449_v13 = vld [vmem:[#allocation45_spill] sm:$0xff] }
 0x1ec   :  { %vm1380_vm10 = vmor %vm5436_vm11, %vm5435_vm15  ;;  %v1508_v22 = vmul.f32 -0.20706727, %v4574_v27  ;;  %vm773_vm7 = vcmp.ne.f32.partialorder %v5426_v30, %v5426_v30  ;;  %vm5437_vm1 = vcmp.eq.f32.partialorder %v4185_v18, 0  ;;  %vm5438_vm13 = vcmp.eq.f32.partialorder %v4127_v63, 1065353216 }
 0x1ed   :  { %v1381_v43 = vsel %vm1380_vm10, 2143289344, %v1377_v47  ;;  %vm1382_vm9 = vmor %vm5438_vm13, %vm5437_vm1  ;;  %vm749_vm6 = vcmp.eq.f32.partialorder %v4196_v25, 1065353216  ;;  %vm764_vm2 = vcmp.eq.f32.partialorder %v4196_v25, 3212836864  ;;  %v1118_v15 = vmul.f32 %v4424_v1, %v1117_v17  ;;  %v5455_v47 = vld [vmem:[#allocation21_spill] sm:$0xff] }
 0x1ee   :  { %v1491_v36 = vshrl.u32 %v1490_v3, 23  ;;  %v1898_v52 = vand.u32 8388607, %v4585_v59  ;;  %v1383_v44 = vsel %vm1382_vm9, 1065353216, %v1381_v43  ;;  %v763_v33 = vsel %vm762_vm14, 2139095040, %v5129_v51  ;;  %vm4626_vm3 = vmand %vm4517_vm8, %vm1148_vm5 }
 0x1ef   :  { %v1507_v60 = vadd.f32 0.21545328, %v1506_v7  ;;  %v1509_v0 = vadd.f32 -0.23896284, %v1508_v22  ;;  %vm729_vm1 = vcmp.eq.f32.partialorder %v5426_v30, 0  ;;  %v1384_v1 = vsel %vm1336_vm12, %v4127_v63, %v1383_v44  ;;  %v5457_v7 = vld [vmem:[#allocation42_spill] sm:$0xff] }
 0x1f0   :  { %vm752_vm15 = vcmp.eq.f32.partialorder %v4223_v56, 2139095040  ;;  %v1120_v8 = vadd.f32 %v1119_v19, %v1118_v15  ;;  %vm1121_vm9 = vcmp.eq.f32.partialorder %v4321_v29, 1.0  ;;  %v1899_v28 = vor.u32 8388608, %v1898_v52  ;;  %334 = vst [vmem:[%s4963_s4 + $0x48] sm:$0xff] %v1384_v1  ;;  %v2020_v37 = vpop.eup %2019  ;;  %v5458_v22 = vld [vmem:[#allocation51_spill] sm:$0xff]  ;;  %v5463_v52 = vld [vmem:[#allocation25_spill] sm:$0xff] }
 0x1f1   :  { %vm1122_vm12 = vcmp.eq.f32.partialorder %v4321_v29, 0.0  ;;  %vm1124_vm4 = vweird.f32 %v4321_v29  ;;  %v1510_v63 = vmul.f32 %v1507_v60, %v4574_v27  ;;  %v1512_v18 = vmul.f32 %v1509_v0, %v4574_v27  ;;  %v5464_v44 = vld [vmem:[#allocation34_spill] sm:$0xff]  ;;  %v5466_v60 = vld [vmem:[#allocation17_spill] sm:$0xff] }
 0x1f2   :  { %vm5442_vm14 = vnez %v5441_v21  ;;  %vm5443_vm8 = vcmp.lt.f32.partialorder %v4196_v25, 0  ;;  %vm1123_vm11 = vcmp.lt.f32.partialorder %v4321_v29, 0.0  ;;  %v1125_v6 = vsel %vm1124_vm4, %v4321_v29, %v1120_v8 }
 0x1f3   :  { %vm753_vm5 = vmand %vm5443_vm8, %vm5442_vm14  ;;  %v1587_v40 = vadd.s32 4294967169, %v1491_v36  ;;  %v1901_v62 = vand.u32 8388607, %v1899_v28  ;;  %vm730_vm13 = vcmp.eq.f32.partialorder %v5426_v30, 1065353216  ;;  %v1126_v31 = vsel %vm1123_vm11, nan, %v1125_v6 }
 0x1f4   :  { %v754_v5 = vsel %vm753_vm5, 2143289344, %v2020_v37  ;;  %v1511_v24 = vadd.f32 0.28795174, %v1510_v63  ;;  %v1513_v10 = vadd.f32 -0.3607037, %v1512_v18  ;;  %vm5445_vm10 = vcmp.eq.f32.partialorder %v4196_v25, 0 }
 0x1f5   :  { %v756_v2 = vsel %vm5445_vm10, %v5444_v57, %v754_v5  ;;  %v1127_v16 = vsel %vm1122_vm12, -inf, %v1126_v31  ;;  %vm1155_vm14 = vcmp.gt.f32.partialorder %v4321_v29, 1065353216  ;;  %v4650_v53 = vor.u32 1065353216, %v1901_v62 }
 0x1f6   :  { %vm5446_vm4 = vcmp.lt.f32.partialorder %v3755_v32, 1266679808  ;;  %v758_v55 = vxor.u32 2147483648, %v756_v2  ;;  %v1128_v26 = vsel %vm1121_vm9, 0.0, %v1127_v16  ;;  %v1514_v42 = vmul.f32 %v1511_v24, %v4574_v27 }
 0x1f7   :  { %vm4656_vm8 = vmand %vm5446_vm4, %vm4626_vm3  ;;  %v1516_v39 = vmul.f32 %v1513_v10, %v4574_v27  ;;  %vm5450_vm10 = vnez %v5449_v13  ;;  %vm5451_vm12 = vcmp.lt.s32.totalorder %v4196_v25, 0  ;;  %v1129_v9 = vmul.f32 %v1128_v26, %v3422_v20 }
 0x1f8   :  { %vm757_vm5 = vmand %vm5451_vm12, %vm5450_vm10  ;;  %v1502_v48 = vadd.s32 1, %v1587_v40  ;;  %vm5053_vm3 = vcmp.ge.f32.partialorder %v4650_v53, 1.4142135  ;;  %v1904_v50 = vmul.f32 0.5, %v4650_v53  ;;  %v765_v12 = vsel %vm764_vm2, 1065353216, %v763_v33  ;;  %v5465_v33 = vld [vmem:[#allocation4_spill] sm:$0xff] }
 0x1f9   :  { %v759_v3 = vsel %vm757_vm5, %v758_v55, %v756_v2  ;;  %vm5452_vm9 = vcmp.ne.f32.partialorder %v4196_v25, %v4196_v25  ;;  %v1515_v23 = vadd.f32 0.48090908, %v1514_v42  ;;  %v1517_v17 = vadd.f32 -0.72134733, %v1516_v39 }
 0x1fa   :  { %vm4679_vm11 = vmor %vm5452_vm9, %vm773_vm7  ;;  %vm5456_vm4 = vcmp.eq.f32.partialorder %v5455_v47, 2139095040  ;;  %vm5459_vm10 = vcmp.lt.f32.partialorder %v4196_v25, 0  ;;  %2021 = vpow2.f32 %v1129_v9  ;;  %vm5460_vm2 = vcmp.lt.f32.partialorder %v3422_v20, 0 }
 0x1fb   :  { %v766_v19 = vsel %vm5456_vm4, %v765_v12, %v759_v3  ;;  %v770_v43 = vsel %vm5459_vm10, %v5458_v22, %v5457_v7  ;;  %vm4693_vm12 = vmxor %vm5460_vm2, %vm1155_vm14  ;;  %v1905_v36 = vsel %vm5053_vm3, %v1904_v50, %v4650_v53  ;;  %vm1536_vm7 = vcmp.eq.f32.partialorder %v5463_v52, 2139095040  ;;  %v5477_v7 = vld [vmem:[#allocation36_spill] sm:$0xff] }
 0x1fc   :  { %vm1544_vm5 = vcmp.ne.f32.partialorder %v5465_v33, %v5464_v44  ;;  %v4704_v0 = vand.u32 2147483647, %v5466_v60  ;;  %v771_v1 = vsel %vm752_vm15, %v770_v43, %v766_v19  ;;  %vm776_vm14 = vmor %vm749_vm6, %vm729_vm1  ;;  %v1518_v8 = vmul.f32 %v1515_v23, %v4574_v27 }
 0x1fd   :  { %v4713_v28 = vadd.f32 -1.0, %v1905_v36  ;;  %v1173_v45 = vsel %vm4656_vm8, %v1172_v46, %v4148_v38  ;;  %vm1177_vm9 = vcmp.ne.f32.partialorder %v3422_v20, %v3422_v20  ;;  %v775_v56 = vsel %vm4679_vm11, 2143289344, %v771_v1  ;;  %vm5468_vm1 = vmmov %vm5460_vm2 }
 0x1fe   :  { %vm1151_vm15 = vcmp.lt.f32.partialorder %v4294_v11, 0  ;;  %vm5467_vm6 = vcmp.eq.f32.partialorder %v4294_v11, 0  ;;  %vm5471_vm10 = vcmp.ge.f32.partialorder %v4497_v4, 1.4142135  ;;  %vm1133_vm2 = vcmp.eq.f32.partialorder %v3422_v20, 0 }
 0x1ff   :  { %vm4729_vm4 = vmand %vm5468_vm1, %vm5467_vm6  ;;  %v1503_v63 = vsel %vm5471_vm10, %v1502_v48, %v1587_v40  ;;  %v777_v46 = vsel %vm776_vm14, 1065353216, %v775_v56  ;;  %v1519_v18 = vadd.f32 1.442695, %v1518_v8  ;;  %v1520_v37 = vmul.f32 %v4552_v35, %v1517_v17 }
 0x200   :  { %vm1166_vm11 = vmor %vm4729_vm4, %vm4693_vm12  ;;  %v4743_v21 = vmul.f32 %v4713_v28, %v4713_v28  ;;  %v778_v6 = vsel %vm730_vm13, %v4196_v25, %v777_v46  ;;  %v1894_v40 = vand.u32 2139095040, %v4585_v59  ;;  %v2022_v24 = vpop.eup %2021  ;;  %vm1156_vm10 = vcmp.eq.f32.partialorder %v4321_v29, 2139095040 }
 0x201   :  { %vm5472_vm6 = vmmov %vm5468_vm1  ;;  %vm1154_vm1 = vcmp.lt.s32.totalorder %v4294_v11, 0  ;;  %v1521_v62 = vadd.f32 %v1520_v37, %v1519_v18  ;;  %328 = vst [vmem:[%s4963_s4 + $0x18] sm:$0xff] %v778_v6  ;;  %v1167_v25 = vsel %vm1166_vm11, 2139095040, %v5129_v51  ;;  %v1523_v30 = vcvt.s32.f32 %v1503_v63 }
 0x202   :  { %v1159_v4 = vsel %vm5472_vm6, 2139095040, %v5129_v51  ;;  %v1910_v5 = vmul.f32 0.12621109, %v4743_v21  ;;  %v1912_v31 = vmul.f32 -0.20706727, %v4743_v21  ;;  %vm1157_vm13 = vmand %vm1151_vm15, %vm4508_vm0  ;;  %vm1168_vm6 = vcmp.eq.f32.partialorder %v4294_v11, 3212836864 }
 0x203   :  { %vm1539_vm3 = vcmp.lt.f32.partialorder %v5465_v33, 0  ;;  %v1158_v10 = vsel %vm1157_vm13, 2143289344, %v2022_v24  ;;  %v1522_v57 = vmul.f32 %v4552_v35, %v1521_v62  ;;  %vm5473_vm14 = vcmp.eq.f32.partialorder %v4294_v11, 0  ;;  %vm1161_vm12 = vmand %vm1154_vm1, %vm4656_vm8 }
 0x204   :  { %v1911_v2 = vadd.f32 0.21545328, %v1910_v5  ;;  %v1913_v34 = vadd.f32 -0.23896284, %v1912_v31  ;;  %v1160_v16 = vsel %vm5473_vm14, %v1159_v4, %v1158_v10  ;;  %v1174_v55 = vsel %vm1151_vm15, %v1173_v45, %v4148_v38  ;;  %vm4797_vm8 = vmor %vm1544_vm5, %vm1536_vm7 }
 0x205   :  { %vm1176_vm0 = vcmp.ne.f32.partialorder %v4294_v11, %v4294_v11  ;;  %v1895_v26 = vshrl.u32 %v1894_v40, 23  ;;  %v1162_v42 = vxor.u32 2147483648, %v1160_v16  ;;  %v1524_v39 = vadd.f32 %v1523_v30, %v1522_v57 }
 0x206   :  { %v1914_v13 = vmul.f32 %v1911_v2, %v4743_v21  ;;  %v1916_v9 = vmul.f32 %v1913_v34, %v4743_v21  ;;  %v1169_v35 = vsel %vm1168_vm6, 1065353216, %v1167_v25  ;;  %vm1525_vm15 = vcmp.eq.f32.partialorder %v4454_v49, 1.0  ;;  %vm1178_vm5 = vmor %vm1176_vm0, %vm1177_vm9 }
 0x207   :  { %vm1527_vm4 = vcmp.lt.f32.partialorder %v4454_v49, 0.0  ;;  %vm1528_vm11 = vweird.f32 %v4454_v49  ;;  %v1163_v38 = vsel %vm1161_vm12, %v1162_v42, %v1160_v16  ;;  %vm5476_vm14 = vcmp.eq.f32.partialorder %v3755_v32, 2139095040  ;;  %vm1552_vm9 = vmneg %vm4797_vm8 }
 0x208   :  { %v1529_v48 = vsel %vm1528_vm11, %v4454_v49, %v1524_v39  ;;  %v1915_v50 = vadd.f32 0.28795174, %v1914_v13  ;;  %v1917_v3 = vadd.f32 -0.3607037, %v1916_v9  ;;  %v1170_v12 = vsel %vm5476_vm14, %v1169_v35, %v1163_v38 }
 0x209   :  { %vm1526_vm1 = vcmp.eq.f32.partialorder %v4454_v49, 0.0  ;;  %v1530_v54 = vsel %vm1527_vm4, nan, %v1529_v48  ;;  %v1991_v23 = vadd.s32 4294967169, %v1895_v26  ;;  %v1175_v17 = vsel %vm1156_vm10, %v1174_v55, %v1170_v12 }
 0x20a   :  { %v1531_v47 = vsel %vm1526_vm1, -inf, %v1530_v54  ;;  %v1918_v19 = vmul.f32 %v1915_v50, %v4743_v21  ;;  %v1920_v32 = vmul.f32 %v1917_v3, %v4743_v21  ;;  %v5478_v22 = vand.u32 1, %v5477_v7 }
 0x20b   :  { %vm1134_vm6 = vcmp.eq.f32.partialorder %v3422_v20, 1065353216  ;;  %v1179_v43 = vsel %vm1178_vm5, 2143289344, %v1175_v17  ;;  %vm5479_vm10 = vcmp.eq.f32.partialorder %v4294_v11, 1065353216  ;;  %v1532_v29 = vsel %vm1525_vm15, 0.0, %v1531_v47 }
 0x20c   :  { %vm1551_vm13 = vcmp.eq.s32.totalorder %v5478_v22, 1  ;;  %vm1180_vm12 = vmor %vm5479_vm10, %vm1133_vm2  ;;  %v1533_v36 = vmul.f32 %v1532_v29, %v5465_v33  ;;  %v1919_v44 = vadd.f32 0.48090908, %v1918_v19  ;;  %v1921_v1 = vadd.f32 -0.72134733, %v1920_v32 }
 0x20d   :  { %v1181_v15 = vsel %vm1180_vm12, 1065353216, %v1179_v43  ;;  %v1945_v8 = vceil.f32 %v5466_v60  ;;  %vm1559_vm0 = vcmp.gt.f32.partialorder %v4454_v49, 1065353216  ;;  %v1906_v20 = vadd.s32 1, %v1991_v23  ;;  %vm1553_vm4 = vmand %vm1551_vm13, %vm1552_vm9 }
 0x20e   :  { %v1182_v45 = vsel %vm1134_vm6, %v4294_v11, %v1181_v15  ;;  %v1946_v56 = vfloor.f32 %v5466_v60  ;;  %v1952_v27 = vfloor.f32 %v4704_v0  ;;  %2023 = vpow2.f32 %v1533_v36  ;;  %vm4843_vm14 = vmxor %vm1539_vm3, %vm1559_vm0 }
 0x20f   :  { %v1922_v63 = vmul.f32 %v1919_v44, %v4743_v21  ;;  %332 = vst [vmem:[%s4963_s4 + $0x38] sm:$0xff] %v1182_v45  ;;  %v1575_v46 = vsel %vm1539_vm3, 0, %v5251_v61  ;;  %vm1944_vm2 = vcmp.lt.s32.totalorder %v5466_v60, 0  ;;  %vm1556_vm15 = vcmp.eq.f32.partialorder %v4416_v58, 0 }
 0x210   :  { %vm1546_vm11 = vcmp.lt.f32.partialorder %v5463_v52, 1266679808  ;;  %v1924_v37 = vmul.f32 %v4713_v28, %v1921_v1  ;;  %vm1555_vm5 = vcmp.lt.f32.partialorder %v4416_v58, 0  ;;  %vm5484_vm13 = vcmp.ge.f32.partialorder %v4650_v53, 1.4142135  ;;  %vm4859_vm6 = vmand %vm1539_vm3, %vm1556_vm15 }
 0x211   :  { %v1923_v18 = vadd.f32 1.442695, %v1922_v63  ;;  %vm4848_vm1 = vmand %vm1546_vm11, %vm1553_vm4  ;;  %v1907_v4 = vsel %vm5484_vm13, %v1906_v20, %v1991_v23  ;;  %v1576_v6 = vxor.u32 2147483648, %v1575_v46  ;;  %v1947_v40 = vsel %vm1944_vm2, %v1945_v8, %v1946_v56 }
 0x212   :  { %v1953_v62 = vcvt.f32.s32 %v1952_v27  ;;  %v1563_v24 = vsel %vm1539_vm3, 2139095040, %v5129_v51  ;;  %vm1570_vm10 = vmor %vm4859_vm6, %vm4843_vm14  ;;  %vm1581_vm12 = vcmp.ne.f32.partialorder %v5465_v33, %v5465_v33  ;;  %v1927_v10 = vcvt.s32.f32 %v1907_v4 }
 0x213   :  { %v1925_v31 = vadd.f32 %v1924_v37, %v1923_v18  ;;  %v1577_v25 = vsel %vm4848_vm1, %v1576_v6, %v1575_v46  ;;  %vm1561_vm9 = vmand %vm1555_vm5, %vm4797_vm8  ;;  %vm1940_vm3 = vcmp.eq.f32.partialorder %v4704_v0, 2139095040  ;;  %vm1948_vm0 = vcmp.ne.f32.partialorder %v5466_v60, %v1947_v40 }
 0x214   :  { %v2024_v53 = vpop.eup %2023  ;;  %vm1558_vm4 = vcmp.lt.s32.totalorder %v4416_v58, 0  ;;  %v1954_v2 = vand.u32 1, %v1953_v62  ;;  %v1571_v16 = vsel %vm1570_vm10, 2139095040, %v5129_v51  ;;  %vm1557_vm2 = vcmp.eq.f32.partialorder %v4416_v58, 1065353216 }
 0x215   :  { %v1926_v30 = vmul.f32 %v4713_v28, %v1925_v31  ;;  %v1562_v57 = vsel %vm1561_vm9, 2143289344, %v2024_v53  ;;  %vm1560_vm8 = vcmp.eq.f32.partialorder %v4454_v49, 2139095040  ;;  %vm1932_vm11 = vweird.f32 %v4585_v59  ;;  %vm1565_vm14 = vmand %vm1558_vm4, %vm4848_vm1 }
 0x216   :  { %v1564_v34 = vsel %vm1556_vm15, %v1563_v24, %v1562_v57  ;;  %vm1572_vm13 = vcmp.eq.f32.partialorder %v4416_v58, 3212836864  ;;  %vm1580_vm6 = vcmp.ne.f32.partialorder %v4416_v58, %v4416_v58  ;;  %vm1931_vm15 = vcmp.lt.f32.partialorder %v4585_v59, 0.0  ;;  %vm4900_vm9 = vmor %vm1948_vm0, %vm1940_vm3 }
 0x217   :  { %v1928_v55 = vadd.f32 %v1927_v10, %v1926_v30  ;;  %v1566_v28 = vxor.u32 2147483648, %v1564_v34  ;;  %v1573_v39 = vsel %vm1572_vm13, 1065353216, %v1571_v16  ;;  %vm1930_vm10 = vcmp.eq.f32.partialorder %v4585_v59, 0.0  ;;  %vm1582_vm0 = vmor %vm1580_vm6, %vm1581_vm12 }
 0x218   :  { %v1578_v38 = vsel %vm1555_vm5, %v1577_v25, %v1575_v46  ;;  %vm1929_vm1 = vcmp.eq.f32.partialorder %v4585_v59, 1.0  ;;  %vm1537_vm4 = vcmp.eq.f32.partialorder %v5465_v33, 0  ;;  %vm1538_vm5 = vcmp.eq.f32.partialorder %v5465_v33, 1065353216  ;;  %vm1956_vm12 = vmneg %vm4900_vm9 }
 0x219   :  { %v1933_v26 = vsel %vm1932_vm11, %v4585_v59, %v1928_v55  ;;  %v1567_v42 = vsel %vm1565_vm14, %v1566_v28, %v1564_v34  ;;  %vm1963_vm11 = vcmp.gt.f32.partialorder %v4585_v59, 1065353216  ;;  %vm1955_vm14 = vcmp.eq.s32.totalorder %v1954_v2, 1 }
 0x21a   :  { %v1934_v13 = vsel %vm1931_vm15, nan, %v1933_v26  ;;  %v1574_v35 = vsel %vm1536_vm7, %v1573_v39, %v1567_v42  ;;  %vm1584_vm7 = vmor %vm1557_vm2, %vm1537_vm4  ;;  %vm1960_vm13 = vcmp.eq.f32.partialorder %v4494_v41, 0  ;;  %vm1959_vm15 = vcmp.lt.f32.partialorder %v4494_v41, 0 }
 0x21b   :  { %v1935_v48 = vsel %vm1930_vm10, -inf, %v1934_v13  ;;  %v1579_v50 = vsel %vm1560_vm8, %v1578_v38, %v1574_v35  ;;  %vm1943_vm8 = vcmp.lt.f32.partialorder %v5466_v60, 0  ;;  %vm1957_vm6 = vmand %vm1955_vm14, %vm1956_vm12  ;;  %vm1976_vm14 = vcmp.eq.f32.partialorder %v4494_v41, 3212836864 }
 0x21c   :  { %v1936_v3 = vsel %vm1929_vm1, 0.0, %v1935_v48  ;;  %v1583_v14 = vsel %vm1582_vm0, 2143289344, %v1579_v50  ;;  %vm1973_vm2 = vmxor %vm1943_vm8, %vm1963_vm11  ;;  %v1979_v33 = vsel %vm1943_vm8, 0, %v5251_v61  ;;  %vm1950_vm0 = vcmp.lt.f32.partialorder %v4704_v0, 1266679808 }
 0x21d   :  { %v1937_v52 = vmul.f32 %v1936_v3, %v5466_v60  ;;  %v1585_v12 = vsel %vm1584_vm7, 1065353216, %v1583_v14  ;;  %vm1972_vm10 = vmand %vm1943_vm8, %vm1960_vm13  ;;  %v1967_v54 = vsel %vm1943_vm8, 2139095040, %v5129_v51  ;;  %vm1962_vm7 = vcmp.lt.s32.totalorder %v4494_v41, 0 }
 0x21e   :  { %v1586_v49 = vsel %vm1538_vm5, %v4416_v58, %v1585_v12  ;;  %vm1974_vm1 = vmor %vm1972_vm10, %vm1973_vm2  ;;  %v1980_v19 = vxor.u32 2147483648, %v1979_v33  ;;  %vm1961_vm8 = vcmp.eq.f32.partialorder %v4494_v41, 1065353216  ;;  %vm1985_vm12 = vcmp.ne.f32.partialorder %v5466_v60, %v5466_v60 }
 0x21f   :  { %2025 = vpow2.f32 %v1937_v52  ;;  %336 = vst [vmem:[%s4963_s4 + $0x58] sm:$0xff] %v1586_v49  ;;  %vm1965_vm4 = vmand %vm1959_vm15, %vm4900_vm9  ;;  %v1975_v47 = vsel %vm1974_vm1, 2139095040, %v5129_v51  ;;  %vm1984_vm9 = vcmp.ne.f32.partialorder %v4494_v41, %v4494_v41  ;;  %vm1941_vm2 = vcmp.eq.f32.partialorder %v5466_v60, 0 }
 0x220   :  { %vm1958_vm5 = vmand %vm1950_vm0, %vm1957_vm6  ;;  %v1977_v22 = vsel %vm1976_vm14, 1065353216, %v1975_v47  ;;  %vm1942_vm1 = vcmp.eq.f32.partialorder %v5466_v60, 1065353216 }
 0x221   :  { %vm1969_vm11 = vmand %vm1962_vm7, %vm1958_vm5  ;;  %v1981_v32 = vsel %vm1958_vm5, %v1980_v19, %v1979_v33 }
 0x222   :  { %v1982_v43 = vsel %vm1959_vm15, %v1981_v32, %v1979_v33  ;;  %vm1986_vm6 = vmor %vm1984_vm9, %vm1985_vm12 }
 0x223   :  { %vm1988_vm10 = vmor %vm1961_vm8, %vm1941_vm2 }
 0x225   :  { %v2026_v58 = vpop.eup %2025 }
 0x226   :  { %v1966_v23 = vsel %vm1965_vm4, 2143289344, %v2026_v58 }
 0x227   :  { %v1968_v17 = vsel %vm1960_vm13, %v1967_v54, %v1966_v23  ;;  %vm1964_vm13 = vcmp.eq.f32.partialorder %v4585_v59, 2139095040 }
 0x228   :  { %v1970_v61 = vxor.u32 2147483648, %v1968_v17 }
 0x22a   :  { %v1971_v7 = vsel %vm1969_vm11, %v1970_v61, %v1968_v17 }
 0x22b   :  { %v1978_v51 = vsel %vm1940_vm3, %v1977_v22, %v1971_v7 }
 0x22c   :  { %v1983_v29 = vsel %vm1964_vm13, %v1982_v43, %v1978_v51 }
 0x22d   :  { %v1987_v15 = vsel %vm1986_vm6, 2143289344, %v1983_v29 }
 0x22e   :  { %v1989_v36 = vsel %vm1988_vm10, 1065353216, %v1987_v15 }
 0x22f   :  { %v1990_v44 = vsel %vm1942_vm1, %v4494_v41, %v1989_v36 }
 0x230   :  { %340 = vst [vmem:[%s4963_s4 + $0x78] sm:$0xff] %v1990_v44 }

</bundles_post_ra>
